<compile_context>
chip_gen: v5e
topology: v5e:2x2
jax: 0.10.0
libtpu: 0.0.40
codegen_flags: <defaults>
</compile_context>

<pallas_src>
import functools

import jax
import jax.numpy as jnp
import numpy as np
from jax.experimental import pallas as pl
from jax.experimental.pallas import tpu as pltpu

LANE = 128     # per-gate column padding (vreg lane width)
GROUP = 8      # timesteps per deferred lane-dense store


# ----------------------------------------------------------------------------
# Pallas kernel: the sequential recurrence only.
# ----------------------------------------------------------------------------
def lstm_recurrence_kernel(gx_ref, whh_ref, h_out_ref, h_scr, c_scr, *,
                           hidden_pad, chunk):
    """One grid step = one chunk of `chunk` timesteps.

    gx_ref  : (B, chunk, 4*Hp)  precomputed input gates, order [i, f, o, g],
                                each gate padded to Hp=128-lane blocks.
    whh_ref : (Hp, 4*Hp)        recurrent weights (padded rows/cols are zero).
    h_out   : (B, chunk*Hp)     lane-flattened hidden states for this chunk.
    h_scr/c_scr : (B, Hp)       recurrent state carried across grid steps.
    """
    Hp = hidden_pad

    @pl.when(pl.program_id(0) == 0)
    def _():
        h_scr[...] = jnp.zeros_like(h_scr)
        c_scr[...] = jnp.zeros_like(c_scr)

    h = h_scr[...]                     # (B, Hp)
    c = c_scr[...]                     # (B, Hp)
    whh = whh_ref[...]                 # (Hp, 4Hp) — hoisted out of the loop

    # Lane-constant scale/shift so ONE tanh push covers all four gates:
    #   sigmoid(x) = 0.5*tanh(0.5*x) + 0.5  on the first 3 gate blocks (i,f,o),
    #   tanh(x)                             on the last block (g).
    lane = jax.lax.broadcasted_iota(jnp.int32, (1, 4 * Hp), 1)
    scale = jnp.where(lane < 3 * Hp, 0.5, 1.0).astype(jnp.float32)
    shift = jnp.where(lane < 3 * Hp, 0.5, 0.0).astype(jnp.float32)

    for g0 in range(0, chunk, GROUP):
        gsz = min(GROUP, chunk - g0)
        hs = []                        # deferred h's for one lane-dense store
        for s in range(g0, g0 + gsz):
            gates = gx_ref[:, s, :] + jnp.dot(
                h, whh, preferred_element_type=jnp.float32)       # (B, 4Hp)
            act = jnp.tanh(gates * scale) * scale + shift
            i_g = act[:, 0 * Hp:1 * Hp]
            f_g = act[:, 1 * Hp:2 * Hp]
            o_g = act[:, 2 * Hp:3 * Hp]
            g_g = act[:, 3 * Hp:4 * Hp]
            c = f_g * c + i_g * g_g
            h = o_g * jnp.tanh(c)
            hs.append(h)
        # One (B, gsz*Hp) lane-dense store per group of timesteps (static offsets).
        h_out_ref[:, pl.ds(g0 * Hp, gsz * Hp)] = jnp.concatenate(hs, axis=-1)

    h_scr[...] = h
    c_scr[...] = c


# ----------------------------------------------------------------------------
# Wrapper: batched GEMMs outside the recurrence + pallas_call for the scan.
# ----------------------------------------------------------------------------
def lstm_forward(x, params, *, chunk=16):
    """x: (B, S, IN) float32.  Returns (B, S, OUT)."""
    wih_p, whh_p, bias_p, wout_p, b_out = params   # gate order [i, f, o, g], padded
    B, S, IN = x.shape
    Hp = whh_p.shape[0]
    OUT = wout_p.shape[1]

    # Time block must be 8-aligned (sublane) or span S.
    if S % chunk != 0 or chunk % GROUP != 0:
        chunk = S
    n_chunks = S // chunk

    # (1) Input projection for ALL timesteps: one big GEMM, M = B*S.
    gates_x = jnp.einsum('bsi,ig->bsg', x, wih_p,
                         preferred_element_type=jnp.float32) + bias_p  # (B,S,4Hp)

    # (2) Sequential recurrence in Pallas; h/c carried in VMEM scratch.
    h_flat = pl.pallas_call(
        functools.partial(lstm_recurrence_kernel, hidden_pad=Hp, chunk=chunk),
        out_shape=jax.ShapeDtypeStruct((B, S * Hp), jnp.float32),
        grid_spec=pltpu.PrefetchScalarGridSpec(
            num_scalar_prefetch=0,
            grid=(n_chunks,),
            in_specs=[
                pl.BlockSpec((B, chunk, 4 * Hp), lambda k: (0, k, 0)),  # gates_x
                pl.BlockSpec((Hp, 4 * Hp), lambda k: (0, 0)),           # W_hh^T
            ],
            out_specs=pl.BlockSpec((B, chunk * Hp), lambda k: (0, k)),
            scratch_shapes=[
                pltpu.VMEM((B, Hp), jnp.float32),   # h state
                pltpu.VMEM((B, Hp), jnp.float32),   # c state
            ],
        ),
        compiler_params=pltpu.CompilerParams(
            dimension_semantics=("arbitrary",),     # sequential over time chunks
        ),
    )(gates_x, whh_p)

    # (3) Output projection for ALL timesteps: one big GEMM, M = B*S.
    #     Row-major reshape is free; head weight is row-padded to Hp so the
    #     zero-padded hidden lanes contribute nothing (no slice needed).
    h_all = h_flat.reshape(B, S, Hp)
    y = jnp.einsum('bsh,ho->bso', h_all, wout_p,
                   preferred_element_type=jnp.float32) + b_out
    return y


# ----------------------------------------------------------------------------
# Parameter init (PyTorch layout) and conversion to the padded kernel layout.
# ----------------------------------------------------------------------------
def _xavier_uniform(key, shape):
    fan_out, fan_in = shape
    bound = float(np.sqrt(6.0 / (fan_in + fan_out)))
    return jax.random.uniform(key, shape, jnp.float32, -bound, bound)


def init_torch_params(key, in_features, hidden, out_features):
    """PyTorch-layout params: weight_ih (4H,IN), weight_hh (4H,H), gate order [i,f,g,o]."""
    k1, k2, k3 = jax.random.split(key, 3)
    w_ih = _xavier_uniform(k1, (4 * hidden, in_features))
    w_hh = _xavier_uniform(k2, (4 * hidden, hidden))
    b_ih = jnp.zeros((4 * hidden,), jnp.float32)
    b_hh = jnp.zeros((4 * hidden,), jnp.float32)
    w_out = _xavier_uniform(k3, (out_features, hidden))
    b_out = jnp.zeros((out_features,), jnp.float32)
    return (w_ih, w_hh, b_ih, b_hh, w_out, b_out)


def prepare_kernel_params(torch_params):
    """[i,f,g,o] -> [i,f,o,g], transpose, and pad each gate block to Hp=128 lanes."""
    w_ih, w_hh, b_ih, b_hh, w_out, b_out = torch_params
    H = w_hh.shape[1]
    Hp = max(LANE, ((H + LANE - 1) // LANE) * LANE)

    def permuted_blocks(a, axis=0):
        i, f, g, o = jnp.split(a, 4, axis=axis)
        return [i, f, o, g]                            # [i,f,g,o] -> [i,f,o,g]

    def pad_gate_cols(blocks_t):                       # each (*, H) -> (*, Hp), concat
        return jnp.concatenate(
            [jnp.pad(b, ((0, 0), (0, Hp - H))) for b in blocks_t], axis=1)

    wih_p = pad_gate_cols([b.T for b in permuted_blocks(w_ih)])     # (IN, 4Hp)
    whh_p = pad_gate_cols([b.T for b in permuted_blocks(w_hh)])     # (H, 4Hp)
    whh_p = jnp.pad(whh_p, ((0, Hp - H), (0, 0)))                   # (Hp, 4Hp)

    bias = b_ih + b_hh
    bias_p = jnp.concatenate(
        [jnp.pad(b, (0, Hp - H)) for b in permuted_blocks(bias)])   # (4Hp,)

    wout_p = jnp.pad(w_out.T, ((0, Hp - H), (0, 0)))                # (Hp, OUT)
    return (wih_p, whh_p, bias_p, wout_p, b_out)


# ----------------------------------------------------------------------------
# Pure-JAX reference mirroring torch.nn.LSTM + Linear (batch_first).
# ----------------------------------------------------------------------------
def lstm_reference(x, torch_params):
    w_ih, w_hh, b_ih, b_hh, w_out, b_out = torch_params
    B, S, IN = x.shape
    H = w_hh.shape[1]

    def step(carry, x_t):
        h, c = carry
        gates = x_t @ w_ih.T + b_ih + h @ w_hh.T + b_hh
        i = jax.nn.sigmoid(gates[:, 0 * H:1 * H])
        f = jax.nn.sigmoid(gates[:, 1 * H:2 * H])
        g = jnp.tanh(gates[:, 2 * H:3 * H])
        o = jax.nn.sigmoid(gates[:, 3 * H:4 * H])
        c_new = f * c + i * g
        h_new = o * jnp.tanh(c_new)
        return (h_new, c_new), h_new

    h0 = jnp.zeros((B, H), jnp.float32)
    c0 = jnp.zeros((B, H), jnp.float32)
    _, hs = jax.lax.scan(step, (h0, c0), jnp.transpose(x, (1, 0, 2)))
    hs = jnp.transpose(hs, (1, 0, 2))       # (B, S, H)
    return hs @ w_out.T + b_out


if __name__ == "__main__":
    IN_FEATURES = 16
    HIDDEN = 32
    OUT_FEATURES = 8
    BATCH = 2
    SEQ = 32          # 2 chunks of 16 -> exercises the h/c carry across grid steps
    CHUNK = 16        # 2 groups of 8 per chunk -> exercises the deferred stores

    key = jax.random.PRNGKey(0)
    kp, kx = jax.random.split(key)
    torch_params = init_torch_params(kp, IN_FEATURES, HIDDEN, OUT_FEATURES)
    kernel_params = prepare_kernel_params(torch_params)
    x = jax.random.normal(kx, (BATCH, SEQ, IN_FEATURES), jnp.float32)

    fwd = jax.jit(functools.partial(lstm_forward, chunk=CHUNK))
    y = jax.block_until_ready(fwd(x, kernel_params))

    y_ref = jax.block_until_ready(lstm_reference(x, torch_params))
    np.testing.assert_allclose(np.asarray(y), np.asarray(y_ref),
                               rtol=1e-4, atol=1e-4)

    print("KERNEL_OK")
</pallas_src>

<mosaic_0001>
module attributes {stable_mosaic.version = 11 : i64} {
  func.func @lstm_recurrence_kernel(%arg0: i32, %arg1: memref<2x16x512xf32, #tpu.memory_space<vmem>>, %arg2: memref<128x512xf32, #tpu.memory_space<vmem>>, %arg3: memref<2x2048xf32, #tpu.memory_space<vmem>>, %arg4: memref<2x128xf32, #tpu.memory_space<vmem>>, %arg5: memref<2x128xf32, #tpu.memory_space<vmem>>) attributes {dimension_semantics = [#tpu.dimension_semantics<arbitrary>], iteration_bounds = array<i64: 2>, scalar_prefetch = 0 : i64, scratch_operands = 2 : i64, tpu.core_type = #tpu.core_type<tc>, window_params = [{transform_indices = @transform_0, window_bounds = array<i64: 2, 16, 512>}, {pipeline_mode = #tpu.pipeline_mode<synchronous>, transform_indices = @transform_1, window_bounds = array<i64: 128, 512>}, {transform_indices = @transform_2, window_bounds = array<i64: 2, 2048>}]} {
    %c0_i32 = arith.constant 0 : i32
    %0 = arith.cmpi eq, %arg0, %c0_i32 : i32
    %1 = arith.extui %0 : i1 to i32
    %c0_i32_0 = arith.constant 0 : i32
    %2 = arith.cmpi ne, %1, %c0_i32_0 : i32
    scf.if %2 {
      %cst_66 = arith.constant 0.000000e+00 : f32
      %343 = vector.broadcast %cst_66 : f32 to vector<2x128xf32>
      %c0_67 = arith.constant 0 : index
      %c0_68 = arith.constant 0 : index
      %344 = vector.load %arg4[%c0_67, %c0_68] : memref<2x128xf32, #tpu.memory_space<vmem>>, vector<2x128xf32>
      tpu.vector_store %arg4[%c0_67, %c0_68], %343 {strides = array<i32>} : memref<2x128xf32, #tpu.memory_space<vmem>>, vector<2x128xf32>,
      %cst_69 = arith.constant 0.000000e+00 : f32
      %345 = vector.broadcast %cst_69 : f32 to vector<2x128xf32>
      %c0_70 = arith.constant 0 : index
      %c0_71 = arith.constant 0 : index
      %346 = vector.load %arg5[%c0_70, %c0_71] : memref<2x128xf32, #tpu.memory_space<vmem>>, vector<2x128xf32>
      tpu.vector_store %arg5[%c0_70, %c0_71], %345 {strides = array<i32>} : memref<2x128xf32, #tpu.memory_space<vmem>>, vector<2x128xf32>,
    } else {
    }
    %c0 = arith.constant 0 : index
    %c0_1 = arith.constant 0 : index
    %3 = vector.load %arg4[%c0, %c0_1] : memref<2x128xf32, #tpu.memory_space<vmem>>, vector<2x128xf32>
    %c0_2 = arith.constant 0 : index
    %c0_3 = arith.constant 0 : index
    %4 = vector.load %arg5[%c0_2, %c0_3] : memref<2x128xf32, #tpu.memory_space<vmem>>, vector<2x128xf32>
    %c0_4 = arith.constant 0 : index
    %c0_5 = arith.constant 0 : index
    %5 = vector.load %arg2[%c0_4, %c0_5] : memref<128x512xf32, #tpu.memory_space<vmem>>, vector<128x512xf32>
    %6 = tpu.iota {dimensions = array<i32: 1>} : vector<1x512xi32>
    %c384_i32 = arith.constant 384 : i32
    %7 = vector.broadcast %c384_i32 : i32 to vector<1x512xi32>
    %8 = arith.cmpi slt, %6, %7 : vector<1x512xi32>
    %cst = arith.constant 5.000000e-01 : f32
    %cst_6 = arith.constant 1.000000e+00 : f32
    %9 = vector.broadcast %cst : f32 to vector<1x512xf32>
    %10 = vector.broadcast %cst_6 : f32 to vector<1x512xf32>
    %11 = arith.select %8, %9, %10 : vector<1x512xi1>, vector<1x512xf32>
    %c384_i32_7 = arith.constant 384 : i32
    %12 = vector.broadcast %c384_i32_7 : i32 to vector<1x512xi32>
    %13 = arith.cmpi slt, %6, %12 : vector<1x512xi32>
    %cst_8 = arith.constant 5.000000e-01 : f32
    %cst_9 = arith.constant 0.000000e+00 : f32
    %14 = vector.broadcast %cst_8 : f32 to vector<1x512xf32>
    %15 = vector.broadcast %cst_9 : f32 to vector<1x512xf32>
    %16 = arith.select %13, %14, %15 : vector<1x512xi1>, vector<1x512xf32>
    %c0_10 = arith.constant 0 : index
    %c0_11 = arith.constant 0 : index
    %c0_12 = arith.constant 0 : index
    %17 = vector.load %arg1[%c0_10, %c0_11, %c0_12] : memref<2x16x512xf32, #tpu.memory_space<vmem>>, vector<2x1x512xf32>
    %18 = vector.shape_cast %17 : vector<2x1x512xf32> to vector<2x512xf32>
    %cst_13 = arith.constant dense<0.000000e+00> : vector<2x512xf32>
    %19 = tpu.matmul %3, %5, %cst_13 {dimension_numbers = #tpu.dot_dimension_numbers<[1], [0], [0], [1], [0, 0, 1, 1], [], []>} : vector<2x128xf32>, vector<128x512xf32>, vector<2x512xf32> -> vector<2x512xf32>
    %20 = arith.addf %18, %19 : vector<2x512xf32>
    %21 = vector.broadcast %11 : vector<1x512xf32> to vector<2x512xf32>
    %22 = arith.mulf %20, %21 : vector<2x512xf32>
    %23 = math.tanh %22 : vector<2x512xf32>
    %24 = vector.broadcast %11 : vector<1x512xf32> to vector<2x512xf32>
    %25 = arith.mulf %23, %24 : vector<2x512xf32>
    %26 = vector.broadcast %16 : vector<1x512xf32> to vector<2x512xf32>
    %27 = arith.addf %25, %26 : vector<2x512xf32>
    %28 = vector.extract_strided_slice %27 {offsets = [0, 0], sizes = [2, 128], strides = [1, 1]} : vector<2x512xf32> to vector<2x128xf32>
    %29 = vector.extract_strided_slice %27 {offsets = [0, 128], sizes = [2, 128], strides = [1, 1]} : vector<2x512xf32> to vector<2x128xf32>
    %30 = vector.extract_strided_slice %27 {offsets = [0, 256], sizes = [2, 128], strides = [1, 1]} : vector<2x512xf32> to vector<2x128xf32>
    %31 = vector.extract_strided_slice %27 {offsets = [0, 384], sizes = [2, 128], strides = [1, 1]} : vector<2x512xf32> to vector<2x128xf32>
    %32 = arith.mulf %29, %4 : vector<2x128xf32>
    %33 = arith.mulf %28, %31 : vector<2x128xf32>
    %34 = arith.addf %32, %33 : vector<2x128xf32>
    %35 = math.tanh %34 : vector<2x128xf32>
    %36 = arith.mulf %30, %35 : vector<2x128xf32>
    %c0_14 = arith.constant 0 : index
    %c1 = arith.constant 1 : index
    %c0_15 = arith.constant 0 : index
    %37 = vector.load %arg1[%c0_14, %c1, %c0_15] : memref<2x16x512xf32, #tpu.memory_space<vmem>>, vector<2x1x512xf32>
    %38 = vector.shape_cast %37 : vector<2x1x512xf32> to vector<2x512xf32>
    %cst_16 = arith.constant dense<0.000000e+00> : vector<2x512xf32>
    %39 = tpu.matmul %36, %5, %cst_16 {dimension_numbers = #tpu.dot_dimension_numbers<[1], [0], [0], [1], [0, 0, 1, 1], [], []>} : vector<2x128xf32>, vector<128x512xf32>, vector<2x512xf32> -> vector<2x512xf32>
    %40 = arith.addf %38, %39 : vector<2x512xf32>
    %41 = vector.broadcast %11 : vector<1x512xf32> to vector<2x512xf32>
    %42 = arith.mulf %40, %41 : vector<2x512xf32>
    %43 = math.tanh %42 : vector<2x512xf32>
    %44 = vector.broadcast %11 : vector<1x512xf32> to vector<2x512xf32>
    %45 = arith.mulf %43, %44 : vector<2x512xf32>
    %46 = vector.broadcast %16 : vector<1x512xf32> to vector<2x512xf32>
    %47 = arith.addf %45, %46 : vector<2x512xf32>
    %48 = vector.extract_strided_slice %47 {offsets = [0, 0], sizes = [2, 128], strides = [1, 1]} : vector<2x512xf32> to vector<2x128xf32>
    %49 = vector.extract_strided_slice %47 {offsets = [0, 128], sizes = [2, 128], strides = [1, 1]} : vector<2x512xf32> to vector<2x128xf32>
    %50 = vector.extract_strided_slice %47 {offsets = [0, 256], sizes = [2, 128], strides = [1, 1]} : vector<2x512xf32> to vector<2x128xf32>
    %51 = vector.extract_strided_slice %47 {offsets = [0, 384], sizes = [2, 128], strides = [1, 1]} : vector<2x512xf32> to vector<2x128xf32>
    %52 = arith.mulf %49, %34 : vector<2x128xf32>
    %53 = arith.mulf %48, %51 : vector<2x128xf32>
    %54 = arith.addf %52, %53 : vector<2x128xf32>
    %55 = math.tanh %54 : vector<2x128xf32>
    %56 = arith.mulf %50, %55 : vector<2x128xf32>
    %c0_17 = arith.constant 0 : index
    %c2 = arith.constant 2 : index
    %c0_18 = arith.constant 0 : index
    %57 = vector.load %arg1[%c0_17, %c2, %c0_18] : memref<2x16x512xf32, #tpu.memory_space<vmem>>, vector<2x1x512xf32>
    %58 = vector.shape_cast %57 : vector<2x1x512xf32> to vector<2x512xf32>
    %cst_19 = arith.constant dense<0.000000e+00> : vector<2x512xf32>
    %59 = tpu.matmul %56, %5, %cst_19 {dimension_numbers = #tpu.dot_dimension_numbers<[1], [0], [0], [1], [0, 0, 1, 1], [], []>} : vector<2x128xf32>, vector<128x512xf32>, vector<2x512xf32> -> vector<2x512xf32>
    %60 = arith.addf %58, %59 : vector<2x512xf32>
    %61 = vector.broadcast %11 : vector<1x512xf32> to vector<2x512xf32>
    %62 = arith.mulf %60, %61 : vector<2x512xf32>
    %63 = math.tanh %62 : vector<2x512xf32>
    %64 = vector.broadcast %11 : vector<1x512xf32> to vector<2x512xf32>
    %65 = arith.mulf %63, %64 : vector<2x512xf32>
    %66 = vector.broadcast %16 : vector<1x512xf32> to vector<2x512xf32>
    %67 = arith.addf %65, %66 : vector<2x512xf32>
    %68 = vector.extract_strided_slice %67 {offsets = [0, 0], sizes = [2, 128], strides = [1, 1]} : vector<2x512xf32> to vector<2x128xf32>
    %69 = vector.extract_strided_slice %67 {offsets = [0, 128], sizes = [2, 128], strides = [1, 1]} : vector<2x512xf32> to vector<2x128xf32>
    %70 = vector.extract_strided_slice %67 {offsets = [0, 256], sizes = [2, 128], strides = [1, 1]} : vector<2x512xf32> to vector<2x128xf32>
    %71 = vector.extract_strided_slice %67 {offsets = [0, 384], sizes = [2, 128], strides = [1, 1]} : vector<2x512xf32> to vector<2x128xf32>
    %72 = arith.mulf %69, %54 : vector<2x128xf32>
    %73 = arith.mulf %68, %71 : vector<2x128xf32>
    %74 = arith.addf %72, %73 : vector<2x128xf32>
    %75 = math.tanh %74 : vector<2x128xf32>
    %76 = arith.mulf %70, %75 : vector<2x128xf32>
    %c0_20 = arith.constant 0 : index
    %c3 = arith.constant 3 : index
    %c0_21 = arith.constant 0 : index
    %77 = vector.load %arg1[%c0_20, %c3, %c0_21] : memref<2x16x512xf32, #tpu.memory_space<vmem>>, vector<2x1x512xf32>
    %78 = vector.shape_cast %77 : vector<2x1x512xf32> to vector<2x512xf32>
    %cst_22 = arith.constant dense<0.000000e+00> : vector<2x512xf32>
    %79 = tpu.matmul %76, %5, %cst_22 {dimension_numbers = #tpu.dot_dimension_numbers<[1], [0], [0], [1], [0, 0, 1, 1], [], []>} : vector<2x128xf32>, vector<128x512xf32>, vector<2x512xf32> -> vector<2x512xf32>
    %80 = arith.addf %78, %79 : vector<2x512xf32>
    %81 = vector.broadcast %11 : vector<1x512xf32> to vector<2x512xf32>
    %82 = arith.mulf %80, %81 : vector<2x512xf32>
    %83 = math.tanh %82 : vector<2x512xf32>
    %84 = vector.broadcast %11 : vector<1x512xf32> to vector<2x512xf32>
    %85 = arith.mulf %83, %84 : vector<2x512xf32>
    %86 = vector.broadcast %16 : vector<1x512xf32> to vector<2x512xf32>
    %87 = arith.addf %85, %86 : vector<2x512xf32>
    %88 = vector.extract_strided_slice %87 {offsets = [0, 0], sizes = [2, 128], strides = [1, 1]} : vector<2x512xf32> to vector<2x128xf32>
    %89 = vector.extract_strided_slice %87 {offsets = [0, 128], sizes = [2, 128], strides = [1, 1]} : vector<2x512xf32> to vector<2x128xf32>
    %90 = vector.extract_strided_slice %87 {offsets = [0, 256], sizes = [2, 128], strides = [1, 1]} : vector<2x512xf32> to vector<2x128xf32>
    %91 = vector.extract_strided_slice %87 {offsets = [0, 384], sizes = [2, 128], strides = [1, 1]} : vector<2x512xf32> to vector<2x128xf32>
    %92 = arith.mulf %89, %74 : vector<2x128xf32>
    %93 = arith.mulf %88, %91 : vector<2x128xf32>
    %94 = arith.addf %92, %93 : vector<2x128xf32>
    %95 = math.tanh %94 : vector<2x128xf32>
    %96 = arith.mulf %90, %95 : vector<2x128xf32>
    %c0_23 = arith.constant 0 : index
    %c4 = arith.constant 4 : index
    %c0_24 = arith.constant 0 : index
    %97 = vector.load %arg1[%c0_23, %c4, %c0_24] : memref<2x16x512xf32, #tpu.memory_space<vmem>>, vector<2x1x512xf32>
    %98 = vector.shape_cast %97 : vector<2x1x512xf32> to vector<2x512xf32>
    %cst_25 = arith.constant dense<0.000000e+00> : vector<2x512xf32>
    %99 = tpu.matmul %96, %5, %cst_25 {dimension_numbers = #tpu.dot_dimension_numbers<[1], [0], [0], [1], [0, 0, 1, 1], [], []>} : vector<2x128xf32>, vector<128x512xf32>, vector<2x512xf32> -> vector<2x512xf32>
    %100 = arith.addf %98, %99 : vector<2x512xf32>
    %101 = vector.broadcast %11 : vector<1x512xf32> to vector<2x512xf32>
    %102 = arith.mulf %100, %101 : vector<2x512xf32>
    %103 = math.tanh %102 : vector<2x512xf32>
    %104 = vector.broadcast %11 : vector<1x512xf32> to vector<2x512xf32>
    %105 = arith.mulf %103, %104 : vector<2x512xf32>
    %106 = vector.broadcast %16 : vector<1x512xf32> to vector<2x512xf32>
    %107 = arith.addf %105, %106 : vector<2x512xf32>
    %108 = vector.extract_strided_slice %107 {offsets = [0, 0], sizes = [2, 128], strides = [1, 1]} : vector<2x512xf32> to vector<2x128xf32>
    %109 = vector.extract_strided_slice %107 {offsets = [0, 128], sizes = [2, 128], strides = [1, 1]} : vector<2x512xf32> to vector<2x128xf32>
    %110 = vector.extract_strided_slice %107 {offsets = [0, 256], sizes = [2, 128], strides = [1, 1]} : vector<2x512xf32> to vector<2x128xf32>
    %111 = vector.extract_strided_slice %107 {offsets = [0, 384], sizes = [2, 128], strides = [1, 1]} : vector<2x512xf32> to vector<2x128xf32>
    %112 = arith.mulf %109, %94 : vector<2x128xf32>
    %113 = arith.mulf %108, %111 : vector<2x128xf32>
    %114 = arith.addf %112, %113 : vector<2x128xf32>
    %115 = math.tanh %114 : vector<2x128xf32>
    %116 = arith.mulf %110, %115 : vector<2x128xf32>
    %c0_26 = arith.constant 0 : index
    %c5 = arith.constant 5 : index
    %c0_27 = arith.constant 0 : index
    %117 = vector.load %arg1[%c0_26, %c5, %c0_27] : memref<2x16x512xf32, #tpu.memory_space<vmem>>, vector<2x1x512xf32>
    %118 = vector.shape_cast %117 : vector<2x1x512xf32> to vector<2x512xf32>
    %cst_28 = arith.constant dense<0.000000e+00> : vector<2x512xf32>
    %119 = tpu.matmul %116, %5, %cst_28 {dimension_numbers = #tpu.dot_dimension_numbers<[1], [0], [0], [1], [0, 0, 1, 1], [], []>} : vector<2x128xf32>, vector<128x512xf32>, vector<2x512xf32> -> vector<2x512xf32>
    %120 = arith.addf %118, %119 : vector<2x512xf32>
    %121 = vector.broadcast %11 : vector<1x512xf32> to vector<2x512xf32>
    %122 = arith.mulf %120, %121 : vector<2x512xf32>
    %123 = math.tanh %122 : vector<2x512xf32>
    %124 = vector.broadcast %11 : vector<1x512xf32> to vector<2x512xf32>
    %125 = arith.mulf %123, %124 : vector<2x512xf32>
    %126 = vector.broadcast %16 : vector<1x512xf32> to vector<2x512xf32>
    %127 = arith.addf %125, %126 : vector<2x512xf32>
    %128 = vector.extract_strided_slice %127 {offsets = [0, 0], sizes = [2, 128], strides = [1, 1]} : vector<2x512xf32> to vector<2x128xf32>
    %129 = vector.extract_strided_slice %127 {offsets = [0, 128], sizes = [2, 128], strides = [1, 1]} : vector<2x512xf32> to vector<2x128xf32>
    %130 = vector.extract_strided_slice %127 {offsets = [0, 256], sizes = [2, 128], strides = [1, 1]} : vector<2x512xf32> to vector<2x128xf32>
    %131 = vector.extract_strided_slice %127 {offsets = [0, 384], sizes = [2, 128], strides = [1, 1]} : vector<2x512xf32> to vector<2x128xf32>
    %132 = arith.mulf %129, %114 : vector<2x128xf32>
    %133 = arith.mulf %128, %131 : vector<2x128xf32>
    %134 = arith.addf %132, %133 : vector<2x128xf32>
    %135 = math.tanh %134 : vector<2x128xf32>
    %136 = arith.mulf %130, %135 : vector<2x128xf32>
    %c0_29 = arith.constant 0 : index
    %c6 = arith.constant 6 : index
    %c0_30 = arith.constant 0 : index
    %137 = vector.load %arg1[%c0_29, %c6, %c0_30] : memref<2x16x512xf32, #tpu.memory_space<vmem>>, vector<2x1x512xf32>
    %138 = vector.shape_cast %137 : vector<2x1x512xf32> to vector<2x512xf32>
    %cst_31 = arith.constant dense<0.000000e+00> : vector<2x512xf32>
    %139 = tpu.matmul %136, %5, %cst_31 {dimension_numbers = #tpu.dot_dimension_numbers<[1], [0], [0], [1], [0, 0, 1, 1], [], []>} : vector<2x128xf32>, vector<128x512xf32>, vector<2x512xf32> -> vector<2x512xf32>
    %140 = arith.addf %138, %139 : vector<2x512xf32>
    %141 = vector.broadcast %11 : vector<1x512xf32> to vector<2x512xf32>
    %142 = arith.mulf %140, %141 : vector<2x512xf32>
    %143 = math.tanh %142 : vector<2x512xf32>
    %144 = vector.broadcast %11 : vector<1x512xf32> to vector<2x512xf32>
    %145 = arith.mulf %143, %144 : vector<2x512xf32>
    %146 = vector.broadcast %16 : vector<1x512xf32> to vector<2x512xf32>
    %147 = arith.addf %145, %146 : vector<2x512xf32>
    %148 = vector.extract_strided_slice %147 {offsets = [0, 0], sizes = [2, 128], strides = [1, 1]} : vector<2x512xf32> to vector<2x128xf32>
    %149 = vector.extract_strided_slice %147 {offsets = [0, 128], sizes = [2, 128], strides = [1, 1]} : vector<2x512xf32> to vector<2x128xf32>
    %150 = vector.extract_strided_slice %147 {offsets = [0, 256], sizes = [2, 128], strides = [1, 1]} : vector<2x512xf32> to vector<2x128xf32>
    %151 = vector.extract_strided_slice %147 {offsets = [0, 384], sizes = [2, 128], strides = [1, 1]} : vector<2x512xf32> to vector<2x128xf32>
    %152 = arith.mulf %149, %134 : vector<2x128xf32>
    %153 = arith.mulf %148, %151 : vector<2x128xf32>
    %154 = arith.addf %152, %153 : vector<2x128xf32>
    %155 = math.tanh %154 : vector<2x128xf32>
    %156 = arith.mulf %150, %155 : vector<2x128xf32>
    %c0_32 = arith.constant 0 : index
    %c7 = arith.constant 7 : index
    %c0_33 = arith.constant 0 : index
    %157 = vector.load %arg1[%c0_32, %c7, %c0_33] : memref<2x16x512xf32, #tpu.memory_space<vmem>>, vector<2x1x512xf32>
    %158 = vector.shape_cast %157 : vector<2x1x512xf32> to vector<2x512xf32>
    %cst_34 = arith.constant dense<0.000000e+00> : vector<2x512xf32>
    %159 = tpu.matmul %156, %5, %cst_34 {dimension_numbers = #tpu.dot_dimension_numbers<[1], [0], [0], [1], [0, 0, 1, 1], [], []>} : vector<2x128xf32>, vector<128x512xf32>, vector<2x512xf32> -> vector<2x512xf32>
    %160 = arith.addf %158, %159 : vector<2x512xf32>
    %161 = vector.broadcast %11 : vector<1x512xf32> to vector<2x512xf32>
    %162 = arith.mulf %160, %161 : vector<2x512xf32>
    %163 = math.tanh %162 : vector<2x512xf32>
    %164 = vector.broadcast %11 : vector<1x512xf32> to vector<2x512xf32>
    %165 = arith.mulf %163, %164 : vector<2x512xf32>
    %166 = vector.broadcast %16 : vector<1x512xf32> to vector<2x512xf32>
    %167 = arith.addf %165, %166 : vector<2x512xf32>
    %168 = vector.extract_strided_slice %167 {offsets = [0, 0], sizes = [2, 128], strides = [1, 1]} : vector<2x512xf32> to vector<2x128xf32>
    %169 = vector.extract_strided_slice %167 {offsets = [0, 128], sizes = [2, 128], strides = [1, 1]} : vector<2x512xf32> to vector<2x128xf32>
    %170 = vector.extract_strided_slice %167 {offsets = [0, 256], sizes = [2, 128], strides = [1, 1]} : vector<2x512xf32> to vector<2x128xf32>
    %171 = vector.extract_strided_slice %167 {offsets = [0, 384], sizes = [2, 128], strides = [1, 1]} : vector<2x512xf32> to vector<2x128xf32>
    %172 = arith.mulf %169, %154 : vector<2x128xf32>
    %173 = arith.mulf %168, %171 : vector<2x128xf32>
    %174 = arith.addf %172, %173 : vector<2x128xf32>
    %175 = math.tanh %174 : vector<2x128xf32>
    %176 = arith.mulf %170, %175 : vector<2x128xf32>
    %177 = tpu.concatenate %36, %56, %76, %96, %116, %136, %156, %176 in 1 : vector<2x128xf32>, vector<2x128xf32>, vector<2x128xf32>, vector<2x128xf32>, vector<2x128xf32>, vector<2x128xf32>, vector<2x128xf32>, vector<2x128xf32> -> vector<2x1024xf32>
    %c0_35 = arith.constant 0 : index
    %c0_36 = arith.constant 0 : index
    %178 = vector.load %arg3[%c0_35, %c0_36] : memref<2x2048xf32, #tpu.memory_space<vmem>>, vector<2x1024xf32>
    tpu.vector_store %arg3[%c0_35, %c0_36], %177 {strides = array<i32>} : memref<2x2048xf32, #tpu.memory_space<vmem>>, vector<2x1024xf32>,
    %c0_37 = arith.constant 0 : index
    %c8 = arith.constant 8 : index
    %c0_38 = arith.constant 0 : index
    %179 = vector.load %arg1[%c0_37, %c8, %c0_38] : memref<2x16x512xf32, #tpu.memory_space<vmem>>, vector<2x1x512xf32>
    %180 = vector.shape_cast %179 : vector<2x1x512xf32> to vector<2x512xf32>
    %cst_39 = arith.constant dense<0.000000e+00> : vector<2x512xf32>
    %181 = tpu.matmul %176, %5, %cst_39 {dimension_numbers = #tpu.dot_dimension_numbers<[1], [0], [0], [1], [0, 0, 1, 1], [], []>} : vector<2x128xf32>, vector<128x512xf32>, vector<2x512xf32> -> vector<2x512xf32>
    %182 = arith.addf %180, %181 : vector<2x512xf32>
    %183 = vector.broadcast %11 : vector<1x512xf32> to vector<2x512xf32>
    %184 = arith.mulf %182, %183 : vector<2x512xf32>
    %185 = math.tanh %184 : vector<2x512xf32>
    %186 = vector.broadcast %11 : vector<1x512xf32> to vector<2x512xf32>
    %187 = arith.mulf %185, %186 : vector<2x512xf32>
    %188 = vector.broadcast %16 : vector<1x512xf32> to vector<2x512xf32>
    %189 = arith.addf %187, %188 : vector<2x512xf32>
    %190 = vector.extract_strided_slice %189 {offsets = [0, 0], sizes = [2, 128], strides = [1, 1]} : vector<2x512xf32> to vector<2x128xf32>
    %191 = vector.extract_strided_slice %189 {offsets = [0, 128], sizes = [2, 128], strides = [1, 1]} : vector<2x512xf32> to vector<2x128xf32>
    %192 = vector.extract_strided_slice %189 {offsets = [0, 256], sizes = [2, 128], strides = [1, 1]} : vector<2x512xf32> to vector<2x128xf32>
    %193 = vector.extract_strided_slice %189 {offsets = [0, 384], sizes = [2, 128], strides = [1, 1]} : vector<2x512xf32> to vector<2x128xf32>
    %194 = arith.mulf %191, %174 : vector<2x128xf32>
    %195 = arith.mulf %190, %193 : vector<2x128xf32>
    %196 = arith.addf %194, %195 : vector<2x128xf32>
    %197 = math.tanh %196 : vector<2x128xf32>
    %198 = arith.mulf %192, %197 : vector<2x128xf32>
    %c0_40 = arith.constant 0 : index
    %c9 = arith.constant 9 : index
    %c0_41 = arith.constant 0 : index
    %199 = vector.load %arg1[%c0_40, %c9, %c0_41] : memref<2x16x512xf32, #tpu.memory_space<vmem>>, vector<2x1x512xf32>
    %200 = vector.shape_cast %199 : vector<2x1x512xf32> to vector<2x512xf32>
    %cst_42 = arith.constant dense<0.000000e+00> : vector<2x512xf32>
    %201 = tpu.matmul %198, %5, %cst_42 {dimension_numbers = #tpu.dot_dimension_numbers<[1], [0], [0], [1], [0, 0, 1, 1], [], []>} : vector<2x128xf32>, vector<128x512xf32>, vector<2x512xf32> -> vector<2x512xf32>
    %202 = arith.addf %200, %201 : vector<2x512xf32>
    %203 = vector.broadcast %11 : vector<1x512xf32> to vector<2x512xf32>
    %204 = arith.mulf %202, %203 : vector<2x512xf32>
    %205 = math.tanh %204 : vector<2x512xf32>
    %206 = vector.broadcast %11 : vector<1x512xf32> to vector<2x512xf32>
    %207 = arith.mulf %205, %206 : vector<2x512xf32>
    %208 = vector.broadcast %16 : vector<1x512xf32> to vector<2x512xf32>
    %209 = arith.addf %207, %208 : vector<2x512xf32>
    %210 = vector.extract_strided_slice %209 {offsets = [0, 0], sizes = [2, 128], strides = [1, 1]} : vector<2x512xf32> to vector<2x128xf32>
    %211 = vector.extract_strided_slice %209 {offsets = [0, 128], sizes = [2, 128], strides = [1, 1]} : vector<2x512xf32> to vector<2x128xf32>
    %212 = vector.extract_strided_slice %209 {offsets = [0, 256], sizes = [2, 128], strides = [1, 1]} : vector<2x512xf32> to vector<2x128xf32>
    %213 = vector.extract_strided_slice %209 {offsets = [0, 384], sizes = [2, 128], strides = [1, 1]} : vector<2x512xf32> to vector<2x128xf32>
    %214 = arith.mulf %211, %196 : vector<2x128xf32>
    %215 = arith.mulf %210, %213 : vector<2x128xf32>
    %216 = arith.addf %214, %215 : vector<2x128xf32>
    %217 = math.tanh %216 : vector<2x128xf32>
    %218 = arith.mulf %212, %217 : vector<2x128xf32>
    %c0_43 = arith.constant 0 : index
    %c10 = arith.constant 10 : index
    %c0_44 = arith.constant 0 : index
    %219 = vector.load %arg1[%c0_43, %c10, %c0_44] : memref<2x16x512xf32, #tpu.memory_space<vmem>>, vector<2x1x512xf32>
    %220 = vector.shape_cast %219 : vector<2x1x512xf32> to vector<2x512xf32>
    %cst_45 = arith.constant dense<0.000000e+00> : vector<2x512xf32>
    %221 = tpu.matmul %218, %5, %cst_45 {dimension_numbers = #tpu.dot_dimension_numbers<[1], [0], [0], [1], [0, 0, 1, 1], [], []>} : vector<2x128xf32>, vector<128x512xf32>, vector<2x512xf32> -> vector<2x512xf32>
    %222 = arith.addf %220, %221 : vector<2x512xf32>
    %223 = vector.broadcast %11 : vector<1x512xf32> to vector<2x512xf32>
    %224 = arith.mulf %222, %223 : vector<2x512xf32>
    %225 = math.tanh %224 : vector<2x512xf32>
    %226 = vector.broadcast %11 : vector<1x512xf32> to vector<2x512xf32>
    %227 = arith.mulf %225, %226 : vector<2x512xf32>
    %228 = vector.broadcast %16 : vector<1x512xf32> to vector<2x512xf32>
    %229 = arith.addf %227, %228 : vector<2x512xf32>
    %230 = vector.extract_strided_slice %229 {offsets = [0, 0], sizes = [2, 128], strides = [1, 1]} : vector<2x512xf32> to vector<2x128xf32>
    %231 = vector.extract_strided_slice %229 {offsets = [0, 128], sizes = [2, 128], strides = [1, 1]} : vector<2x512xf32> to vector<2x128xf32>
    %232 = vector.extract_strided_slice %229 {offsets = [0, 256], sizes = [2, 128], strides = [1, 1]} : vector<2x512xf32> to vector<2x128xf32>
    %233 = vector.extract_strided_slice %229 {offsets = [0, 384], sizes = [2, 128], strides = [1, 1]} : vector<2x512xf32> to vector<2x128xf32>
    %234 = arith.mulf %231, %216 : vector<2x128xf32>
    %235 = arith.mulf %230, %233 : vector<2x128xf32>
    %236 = arith.addf %234, %235 : vector<2x128xf32>
    %237 = math.tanh %236 : vector<2x128xf32>
    %238 = arith.mulf %232, %237 : vector<2x128xf32>
    %c0_46 = arith.constant 0 : index
    %c11 = arith.constant 11 : index
    %c0_47 = arith.constant 0 : index
    %239 = vector.load %arg1[%c0_46, %c11, %c0_47] : memref<2x16x512xf32, #tpu.memory_space<vmem>>, vector<2x1x512xf32>
    %240 = vector.shape_cast %239 : vector<2x1x512xf32> to vector<2x512xf32>
    %cst_48 = arith.constant dense<0.000000e+00> : vector<2x512xf32>
    %241 = tpu.matmul %238, %5, %cst_48 {dimension_numbers = #tpu.dot_dimension_numbers<[1], [0], [0], [1], [0, 0, 1, 1], [], []>} : vector<2x128xf32>, vector<128x512xf32>, vector<2x512xf32> -> vector<2x512xf32>
    %242 = arith.addf %240, %241 : vector<2x512xf32>
    %243 = vector.broadcast %11 : vector<1x512xf32> to vector<2x512xf32>
    %244 = arith.mulf %242, %243 : vector<2x512xf32>
    %245 = math.tanh %244 : vector<2x512xf32>
    %246 = vector.broadcast %11 : vector<1x512xf32> to vector<2x512xf32>
    %247 = arith.mulf %245, %246 : vector<2x512xf32>
    %248 = vector.broadcast %16 : vector<1x512xf32> to vector<2x512xf32>
    %249 = arith.addf %247, %248 : vector<2x512xf32>
    %250 = vector.extract_strided_slice %249 {offsets = [0, 0], sizes = [2, 128], strides = [1, 1]} : vector<2x512xf32> to vector<2x128xf32>
    %251 = vector.extract_strided_slice %249 {offsets = [0, 128], sizes = [2, 128], strides = [1, 1]} : vector<2x512xf32> to vector<2x128xf32>
    %252 = vector.extract_strided_slice %249 {offsets = [0, 256], sizes = [2, 128], strides = [1, 1]} : vector<2x512xf32> to vector<2x128xf32>
    %253 = vector.extract_strided_slice %249 {offsets = [0, 384], sizes = [2, 128], strides = [1, 1]} : vector<2x512xf32> to vector<2x128xf32>
    %254 = arith.mulf %251, %236 : vector<2x128xf32>
    %255 = arith.mulf %250, %253 : vector<2x128xf32>
    %256 = arith.addf %254, %255 : vector<2x128xf32>
    %257 = math.tanh %256 : vector<2x128xf32>
    %258 = arith.mulf %252, %257 : vector<2x128xf32>
    %c0_49 = arith.constant 0 : index
    %c12 = arith.constant 12 : index
    %c0_50 = arith.constant 0 : index
    %259 = vector.load %arg1[%c0_49, %c12, %c0_50] : memref<2x16x512xf32, #tpu.memory_space<vmem>>, vector<2x1x512xf32>
    %260 = vector.shape_cast %259 : vector<2x1x512xf32> to vector<2x512xf32>
    %cst_51 = arith.constant dense<0.000000e+00> : vector<2x512xf32>
    %261 = tpu.matmul %258, %5, %cst_51 {dimension_numbers = #tpu.dot_dimension_numbers<[1], [0], [0], [1], [0, 0, 1, 1], [], []>} : vector<2x128xf32>, vector<128x512xf32>, vector<2x512xf32> -> vector<2x512xf32>
    %262 = arith.addf %260, %261 : vector<2x512xf32>
    %263 = vector.broadcast %11 : vector<1x512xf32> to vector<2x512xf32>
    %264 = arith.mulf %262, %263 : vector<2x512xf32>
    %265 = math.tanh %264 : vector<2x512xf32>
    %266 = vector.broadcast %11 : vector<1x512xf32> to vector<2x512xf32>
    %267 = arith.mulf %265, %266 : vector<2x512xf32>
    %268 = vector.broadcast %16 : vector<1x512xf32> to vector<2x512xf32>
    %269 = arith.addf %267, %268 : vector<2x512xf32>
    %270 = vector.extract_strided_slice %269 {offsets = [0, 0], sizes = [2, 128], strides = [1, 1]} : vector<2x512xf32> to vector<2x128xf32>
    %271 = vector.extract_strided_slice %269 {offsets = [0, 128], sizes = [2, 128], strides = [1, 1]} : vector<2x512xf32> to vector<2x128xf32>
    %272 = vector.extract_strided_slice %269 {offsets = [0, 256], sizes = [2, 128], strides = [1, 1]} : vector<2x512xf32> to vector<2x128xf32>
    %273 = vector.extract_strided_slice %269 {offsets = [0, 384], sizes = [2, 128], strides = [1, 1]} : vector<2x512xf32> to vector<2x128xf32>
    %274 = arith.mulf %271, %256 : vector<2x128xf32>
    %275 = arith.mulf %270, %273 : vector<2x128xf32>
    %276 = arith.addf %274, %275 : vector<2x128xf32>
    %277 = math.tanh %276 : vector<2x128xf32>
    %278 = arith.mulf %272, %277 : vector<2x128xf32>
    %c0_52 = arith.constant 0 : index
    %c13 = arith.constant 13 : index
    %c0_53 = arith.constant 0 : index
    %279 = vector.load %arg1[%c0_52, %c13, %c0_53] : memref<2x16x512xf32, #tpu.memory_space<vmem>>, vector<2x1x512xf32>
    %280 = vector.shape_cast %279 : vector<2x1x512xf32> to vector<2x512xf32>
    %cst_54 = arith.constant dense<0.000000e+00> : vector<2x512xf32>
    %281 = tpu.matmul %278, %5, %cst_54 {dimension_numbers = #tpu.dot_dimension_numbers<[1], [0], [0], [1], [0, 0, 1, 1], [], []>} : vector<2x128xf32>, vector<128x512xf32>, vector<2x512xf32> -> vector<2x512xf32>
    %282 = arith.addf %280, %281 : vector<2x512xf32>
    %283 = vector.broadcast %11 : vector<1x512xf32> to vector<2x512xf32>
    %284 = arith.mulf %282, %283 : vector<2x512xf32>
    %285 = math.tanh %284 : vector<2x512xf32>
    %286 = vector.broadcast %11 : vector<1x512xf32> to vector<2x512xf32>
    %287 = arith.mulf %285, %286 : vector<2x512xf32>
    %288 = vector.broadcast %16 : vector<1x512xf32> to vector<2x512xf32>
    %289 = arith.addf %287, %288 : vector<2x512xf32>
    %290 = vector.extract_strided_slice %289 {offsets = [0, 0], sizes = [2, 128], strides = [1, 1]} : vector<2x512xf32> to vector<2x128xf32>
    %291 = vector.extract_strided_slice %289 {offsets = [0, 128], sizes = [2, 128], strides = [1, 1]} : vector<2x512xf32> to vector<2x128xf32>
    %292 = vector.extract_strided_slice %289 {offsets = [0, 256], sizes = [2, 128], strides = [1, 1]} : vector<2x512xf32> to vector<2x128xf32>
    %293 = vector.extract_strided_slice %289 {offsets = [0, 384], sizes = [2, 128], strides = [1, 1]} : vector<2x512xf32> to vector<2x128xf32>
    %294 = arith.mulf %291, %276 : vector<2x128xf32>
    %295 = arith.mulf %290, %293 : vector<2x128xf32>
    %296 = arith.addf %294, %295 : vector<2x128xf32>
    %297 = math.tanh %296 : vector<2x128xf32>
    %298 = arith.mulf %292, %297 : vector<2x128xf32>
    %c0_55 = arith.constant 0 : index
    %c14 = arith.constant 14 : index
    %c0_56 = arith.constant 0 : index
    %299 = vector.load %arg1[%c0_55, %c14, %c0_56] : memref<2x16x512xf32, #tpu.memory_space<vmem>>, vector<2x1x512xf32>
    %300 = vector.shape_cast %299 : vector<2x1x512xf32> to vector<2x512xf32>
    %cst_57 = arith.constant dense<0.000000e+00> : vector<2x512xf32>
    %301 = tpu.matmul %298, %5, %cst_57 {dimension_numbers = #tpu.dot_dimension_numbers<[1], [0], [0], [1], [0, 0, 1, 1], [], []>} : vector<2x128xf32>, vector<128x512xf32>, vector<2x512xf32> -> vector<2x512xf32>
    %302 = arith.addf %300, %301 : vector<2x512xf32>
    %303 = vector.broadcast %11 : vector<1x512xf32> to vector<2x512xf32>
    %304 = arith.mulf %302, %303 : vector<2x512xf32>
    %305 = math.tanh %304 : vector<2x512xf32>
    %306 = vector.broadcast %11 : vector<1x512xf32> to vector<2x512xf32>
    %307 = arith.mulf %305, %306 : vector<2x512xf32>
    %308 = vector.broadcast %16 : vector<1x512xf32> to vector<2x512xf32>
    %309 = arith.addf %307, %308 : vector<2x512xf32>
    %310 = vector.extract_strided_slice %309 {offsets = [0, 0], sizes = [2, 128], strides = [1, 1]} : vector<2x512xf32> to vector<2x128xf32>
    %311 = vector.extract_strided_slice %309 {offsets = [0, 128], sizes = [2, 128], strides = [1, 1]} : vector<2x512xf32> to vector<2x128xf32>
    %312 = vector.extract_strided_slice %309 {offsets = [0, 256], sizes = [2, 128], strides = [1, 1]} : vector<2x512xf32> to vector<2x128xf32>
    %313 = vector.extract_strided_slice %309 {offsets = [0, 384], sizes = [2, 128], strides = [1, 1]} : vector<2x512xf32> to vector<2x128xf32>
    %314 = arith.mulf %311, %296 : vector<2x128xf32>
    %315 = arith.mulf %310, %313 : vector<2x128xf32>
    %316 = arith.addf %314, %315 : vector<2x128xf32>
    %317 = math.tanh %316 : vector<2x128xf32>
    %318 = arith.mulf %312, %317 : vector<2x128xf32>
    %c0_58 = arith.constant 0 : index
    %c15 = arith.constant 15 : index
    %c0_59 = arith.constant 0 : index
    %319 = vector.load %arg1[%c0_58, %c15, %c0_59] : memref<2x16x512xf32, #tpu.memory_space<vmem>>, vector<2x1x512xf32>
    %320 = vector.shape_cast %319 : vector<2x1x512xf32> to vector<2x512xf32>
    %cst_60 = arith.constant dense<0.000000e+00> : vector<2x512xf32>
    %321 = tpu.matmul %318, %5, %cst_60 {dimension_numbers = #tpu.dot_dimension_numbers<[1], [0], [0], [1], [0, 0, 1, 1], [], []>} : vector<2x128xf32>, vector<128x512xf32>, vector<2x512xf32> -> vector<2x512xf32>
    %322 = arith.addf %320, %321 : vector<2x512xf32>
    %323 = vector.broadcast %11 : vector<1x512xf32> to vector<2x512xf32>
    %324 = arith.mulf %322, %323 : vector<2x512xf32>
    %325 = math.tanh %324 : vector<2x512xf32>
    %326 = vector.broadcast %11 : vector<1x512xf32> to vector<2x512xf32>
    %327 = arith.mulf %325, %326 : vector<2x512xf32>
    %328 = vector.broadcast %16 : vector<1x512xf32> to vector<2x512xf32>
    %329 = arith.addf %327, %328 : vector<2x512xf32>
    %330 = vector.extract_strided_slice %329 {offsets = [0, 0], sizes = [2, 128], strides = [1, 1]} : vector<2x512xf32> to vector<2x128xf32>
    %331 = vector.extract_strided_slice %329 {offsets = [0, 128], sizes = [2, 128], strides = [1, 1]} : vector<2x512xf32> to vector<2x128xf32>
    %332 = vector.extract_strided_slice %329 {offsets = [0, 256], sizes = [2, 128], strides = [1, 1]} : vector<2x512xf32> to vector<2x128xf32>
    %333 = vector.extract_strided_slice %329 {offsets = [0, 384], sizes = [2, 128], strides = [1, 1]} : vector<2x512xf32> to vector<2x128xf32>
    %334 = arith.mulf %331, %316 : vector<2x128xf32>
    %335 = arith.mulf %330, %333 : vector<2x128xf32>
    %336 = arith.addf %334, %335 : vector<2x128xf32>
    %337 = math.tanh %336 : vector<2x128xf32>
    %338 = arith.mulf %332, %337 : vector<2x128xf32>
    %339 = tpu.concatenate %198, %218, %238, %258, %278, %298, %318, %338 in 1 : vector<2x128xf32>, vector<2x128xf32>, vector<2x128xf32>, vector<2x128xf32>, vector<2x128xf32>, vector<2x128xf32>, vector<2x128xf32>, vector<2x128xf32> -> vector<2x1024xf32>
    %c0_61 = arith.constant 0 : index
    %c1024 = arith.constant 1024 : index
    %340 = vector.load %arg3[%c0_61, %c1024] : memref<2x2048xf32, #tpu.memory_space<vmem>>, vector<2x1024xf32>
    tpu.vector_store %arg3[%c0_61, %c1024], %339 {strides = array<i32>} : memref<2x2048xf32, #tpu.memory_space<vmem>>, vector<2x1024xf32>,
    %c0_62 = arith.constant 0 : index
    %c0_63 = arith.constant 0 : index
    %341 = vector.load %arg4[%c0_62, %c0_63] : memref<2x128xf32, #tpu.memory_space<vmem>>, vector<2x128xf32>
    tpu.vector_store %arg4[%c0_62, %c0_63], %338 {strides = array<i32>} : memref<2x128xf32, #tpu.memory_space<vmem>>, vector<2x128xf32>,
    %c0_64 = arith.constant 0 : index
    %c0_65 = arith.constant 0 : index
    %342 = vector.load %arg5[%c0_64, %c0_65] : memref<2x128xf32, #tpu.memory_space<vmem>>, vector<2x128xf32>
    tpu.vector_store %arg5[%c0_64, %c0_65], %336 {strides = array<i32>} : memref<2x128xf32, #tpu.memory_space<vmem>>, vector<2x128xf32>,
    return
  }
  func.func @transform_0(%arg0: i32) -> (i32, i32, i32) {
    %c0_i32 = arith.constant 0 : i32
    %c0_i32_0 = arith.constant 0 : i32
    %c0_i32_1 = arith.constant 0 : i32
    return %c0_i32, %arg0, %c0_i32_0 : i32, i32, i32
  }
  func.func @transform_1(%arg0: i32) -> (i32, i32) {
    %c0_i32 = arith.constant 0 : i32
    %c0_i32_0 = arith.constant 0 : i32
    %c0_i32_1 = arith.constant 0 : i32
    return %c0_i32, %c0_i32_0 : i32, i32
  }
  func.func @transform_2(%arg0: i32) -> (i32, i32) {
    %c0_i32 = arith.constant 0 : i32
    %c0_i32_0 = arith.constant 0 : i32
    return %c0_i32, %arg0 : i32, i32
  }
}

</mosaic_0001>

<bundles_post_ra>
// kernel: lstm_forward.1
= control target key start
LH: loop header
LB: loop body
LE: loop exit
PB: predicated region body
PF: predicated region fallthrough
CT: control target
= control target key end

     0   :  { %7 = vsyncpa [#allocation6], 0  ;;  %s3268_s9 = smov 0   ;;  %s3270_s10 = smov 0   ;;  %s5194_s0 = inlined_call_operand.vmem [shape: f32[2,32,512], index: 0, kind: input, shape index: {}]   ;;  %s5195_s1 = inlined_call_operand.hbm [shape: f32[128,512], index: 1, kind: input, shape index: {}]   ;;  %s5196_s2 = inlined_call_operand.vmem [shape: f32[2,4096], index: 2, kind: output, shape index: {}]  }
   0x1   :  { %s3272_s11 = smov 0  }
   0x2 LB: > { %s3284_s12 = sadd.s32 4294967295, %s3244_s11   ;;  %s3287_s13 = sadd.s32 1, %s3244_s11   ;;  %s3244_s11 = sphi %s3272_s11, %s5707_s11   ;;  %s3240_s10 = sphi %s3270_s10, %s5706_s10   ;;  %s3236_s9 = sphi %s3268_s9, %s5705_s9  }
   0x3   : > { %s17_s14 = ssub.s32 %s3244_s11, %s3287_s13  ;;  %s20_s15 = sadd.s32 1, %s3240_s10 }
   0x4   : > { %p18_p0 = scmp.eq.s32.totalorder %s17_s14, 0  ;;  %p27_p1 = scmp.ne.s32.totalorder %s3240_s10, %s3236_s9 }
   0x5   : > { %p28_p2 = scmp.eq.s32.totalorder %s3244_s11, 0  ;;  %p2782_p3 = scmp.ge.s32.totalorder %s3244_s11, 1 }
   0x6   : > { %s3297_s16 = scalar_select %p18_p0, %s3240_s10, %s20_s15  }
   0x7   : > { %p3299_p4 = por %p28_p2, %p27_p1  ;;  %p91_p5 = scmp.lt.s32.totalorder %s3244_s11, 3 }
   0x8   : > { %p2783_p6 = scmp.ne.s32.totalorder %s3284_s12, 0  ;;  %p2838_p7 = scmp.eq.s32.totalorder %s3284_s12, 0 }
   0x9   : > { %p3306_p8 = pnand %p2782_p3, %p91_p5  ;;  %s102_s21 = sshll.u32 %s5195_s1, 4  ;;  %s103_s21 = int_to_ptr.hbm [resolvable:$true] %s102_s21 }
   0xa   : > { %s3246_s22 = smov [#allocation5]   ;;  %s3247_s24 = smov 512  }
   0xb   : > { %p2834_p9 = pneg %p3306_p8  ;;  %s104_s23 = sshll.u32 %s3246_s22, 4  ;;  %s105_s23 = int_to_ptr.vmem [resolvable:$true] %s104_s23 }
   0xc   : > { %s3248_s25 = smov 32   ;;  %p2784_p11 = scmp.ge.s32.totalorder %s3244_s11, 2 }
   0xd   : > { %p2835_p10 = pnand %p2838_p7, %p2834_p9 }
   0xe   : > { %114 = sbr.rel (%p2784_p11) target bundleno = 39 (0x27), region = 20 }
   0xf   : > { %2837 = dma.hbm_to_vmem [thread:$0]  (!%p2835_p10), %s103_s21, 8192, %s105_s23, [#allocation6], %s3247_s24, %s3247_s24, %s3248_s25  }
  0x13   : > { %117 = sbr.rel (!%p3299_p4) target bundleno = 39 (0x27), region = 24  ;;  %s119_s26 = sand.u32 (%p3299_p4), 1, %s3240_s10  }
  0x14   : > { %s2829_s27 = sshll.u32 (%p3299_p4), %s3244_s11, 6  ;;  %s2785_s28 = sshll.u32 (%p3299_p4), %s119_s26, 7 }
  0x15   : > { %s3325_s3 = scalar_lea.vmem (%p3299_p4), %s5194_s0, %s2829_s27  ;;  %s121_s4 = scalar_lea.vmem (%p3299_p4), [#allocation4], %s2785_s28 }
  0x16   : > { %v138_v0 = vld [vmem:[%s3325_s3] sm:$0xff] (%p3299_p4)  ;;  %v140_v1 = vld [vmem:[%s3325_s3 + $0x8] sm:$0xff] (%p3299_p4)  ;;  %v142_v2 = vld [vmem:[%s3325_s3 + $0x10] sm:$0xff] (%p3299_p4) }
  0x17   : > { %139 = vst [vmem:[%s121_s4] sm:$0xff] (%p3299_p4), %v138_v0  ;;  %v144_v3 = vld [vmem:[%s3325_s3 + $0x18] sm:$0xff] (%p3299_p4)  ;;  %v146_v4 = vld [vmem:[%s3325_s3 + $0x20] sm:$0xff] (%p3299_p4)  ;;  %v148_v5 = vld [vmem:[%s3325_s3 + $0x28] sm:$0xff] (%p3299_p4) }
  0x18   : > { %141 = vst [vmem:[%s121_s4 + $0x8] sm:$0xff] %v140_v1  ;;  %v150_v6 = vld [vmem:[%s3325_s3 + $0x30] sm:$0xff]  ;;  %v152_v7 = vld [vmem:[%s3325_s3 + $0x38] sm:$0xff]  ;;  %v154_v8 = vld [vmem:[%s3325_s3 + $0x80] sm:$0xff] }
  0x19   : > { %143 = vst [vmem:[%s121_s4 + $0x10] sm:$0xff] %v142_v2  ;;  %v156_v9 = vld [vmem:[%s3325_s3 + $0x88] sm:$0xff]  ;;  %v158_v10 = vld [vmem:[%s3325_s3 + $0x90] sm:$0xff]  ;;  %v160_v11 = vld [vmem:[%s3325_s3 + $0x98] sm:$0xff] }
  0x1a   : > { %145 = vst [vmem:[%s121_s4 + $0x18] sm:$0xff] %v144_v3  ;;  %v162_v12 = vld [vmem:[%s3325_s3 + $0xa0] sm:$0xff]  ;;  %v164_v13 = vld [vmem:[%s3325_s3 + $0xa8] sm:$0xff]  ;;  %v166_v14 = vld [vmem:[%s3325_s3 + $0xb0] sm:$0xff] }
  0x1b   : > { %147 = vst [vmem:[%s121_s4 + $0x20] sm:$0xff] %v146_v4  ;;  %v168_v15 = vld [vmem:[%s3325_s3 + $0xb8] sm:$0xff] }
  0x1c   : > { %149 = vst [vmem:[%s121_s4 + $0x28] sm:$0xff] %v148_v5 }
  0x1d   : > { %151 = vst [vmem:[%s121_s4 + $0x30] sm:$0xff] %v150_v6 }
  0x1e   : > { %153 = vst [vmem:[%s121_s4 + $0x38] sm:$0xff] %v152_v7 }
  0x1f   : > { %155 = vst [vmem:[%s121_s4 + $0x40] sm:$0xff] %v154_v8 }
  0x20   : > { %157 = vst [vmem:[%s121_s4 + $0x48] sm:$0xff] %v156_v9 }
  0x21   : > { %159 = vst [vmem:[%s121_s4 + $0x50] sm:$0xff] %v158_v10 }
  0x22   : > { %161 = vst [vmem:[%s121_s4 + $0x58] sm:$0xff] %v160_v11 }
  0x23   : > { %163 = vst [vmem:[%s121_s4 + $0x60] sm:$0xff] %v162_v12 }
  0x24   : > { %165 = vst [vmem:[%s121_s4 + $0x68] sm:$0xff] %v164_v13 }
  0x25   : > { %167 = vst [vmem:[%s121_s4 + $0x70] sm:$0xff] %v166_v14 }
  0x26   : > { %169 = vst [vmem:[%s121_s4 + $0x78] sm:$0xff] %v168_v15 }
  0x27 PF: > { %178 = sbr.rel (%p3306_p8) target bundleno = 2958 (0xb8e), region = 47 }
  0x2c   : > { %s181_s5 = sand.u32 1, %s3236_s9  }
  0x2d   : > { %s2790_s6 = sshll.u32 %s181_s5, 7 }
  0x2e   : > { %s3346_s7 = scalar_lea.vmem [#allocation4], %s2790_s6 }
  0x2f   : > { %3231 = dma.done.wait (%p2838_p7), [#allocation6], 8192  }
  0x30   : > { %3233 = vsyncadd (%p2838_p7), [#allocation6], 4294959104  ;;  %s2792_s8 = sshll.u32 %s3284_s12, 4 }
  0x31   : > { %p209_p12 = scmp.lt.s32.totalorder %s2792_s8, 31  ;;  %217 = sbr.rel (%p2783_p6) target bundleno = 57 (0x39), region = 59 }
  0x33   : > { %s5709_s8 = smov (!%p209_p12, %s2792_s8), 31 }
  0x34   : > { %s2793_s11 = sshll.u32 %s5709_s8, 1 }
  0x35   : > { %s3356_s17 = scalar_lea.vmem %s5196_s2, %s2793_s11 }
  0x36   : > { %v3249_v16 = vmov 0.0  }
  0x37   : > { %218 = vst [vmem:[#allocation2] sm:$0x3] %v3249_v16 }
  0x38   : > { %219 = vst [vmem:[#allocation3] sm:$0x3] %v3249_v16 }
  0x39 PF: > { %v3360_v17 = vld [vmem:[#allocation5 + $0x1f0] sm:$0xff]  ;;  %v3362_v18 = vld [vmem:[#allocation5 + $0x1f8] sm:$0xff]  ;;  %v3374_v23 = vld [vmem:[#allocation5 + $0x1e8] sm:$0xff]  ;;  %vm401_vm0 = vcmask 1043459   ;;  %vm393_vm1 = vcmask 1040384   ;;  %vm399_vm2 = vcmask 1041409  }
  0x3a   : > { %v3364_v19 = vld [vmem:[#allocation5 + $0x1d0] sm:$0xff]  ;;  %346 = vmatpush.msra.mxu2 %v3360_v17  ;;  %366 = vmatpush.msra.mxu3 %v3362_v18  ;;  %v3368_v20 = vld [vmem:[#allocation5 + $0x1d8] sm:$0xff]  ;;  %v3378_v24 = vld [vmem:[#allocation5 + $0x1e0] sm:$0xff]  ;;  %vm395_vm3 = vcmask 1042434   ;;  %vm397_vm4 = vcmask 1041408   ;;  %vm403_vm5 = vcmask 1042433  }
  0x3b   : > { %v3370_v21 = vld [vmem:[#allocation5 + $0x1b0] sm:$0xff]  ;;  %v3372_v22 = vld [vmem:[#allocation5 + $0x1b8] sm:$0xff]  ;;  %v3380_v25 = vld [vmem:[#allocation5 + $0x1c8] sm:$0xff]  ;;  %326 = vmatpush.msra.mxu1 %v3374_v23  ;;  %306 = vmatpush.msra.mxu0 %v3378_v24  ;;  %vm1505_vm6 = vcmask 1045508   ;;  %vm1507_vm7 = vcmask 1043456  }
  0x3c   : > { %347 = vmatpush.msra.mxu2 %v3364_v19  ;;  %367 = vmatpush.msra.mxu3 %v3368_v20  ;;  %v3383_v26 = vld [vmem:[#allocation5 + $0x190] sm:$0xff]  ;;  %v3385_v27 = vld [vmem:[#allocation5 + $0x198] sm:$0xff]  ;;  %v3388_v28 = vld [vmem:[#allocation5 + $0x1c0] sm:$0xff] }
  0x3d   : > { %v3392_v29 = vld [vmem:[#allocation5 + $0x1a8] sm:$0xff]  ;;  %v3394_v30 = vld [vmem:[#allocation5 + $0x1a0] sm:$0xff]  ;;  %327 = vmatpush.msra.mxu1 %v3380_v25  ;;  %v3397_v31 = vld [vmem:[#allocation5 + $0x170] sm:$0xff]  ;;  %307 = vmatpush.msra.mxu0 %v3388_v28 }
  0x3e   : > { %348 = vmatpush.msra.mxu2 %v3370_v21  ;;  %368 = vmatpush.msra.mxu3 %v3372_v22  ;;  %v3399_v32 = vld [vmem:[#allocation5 + $0x178] sm:$0xff]  ;;  %v3404_v33 = vld [vmem:[#allocation5 + $0x188] sm:$0xff]  ;;  %v3406_v34 = vld [vmem:[#allocation5 + $0x180] sm:$0xff] }
  0x3f   : > { %328 = vmatpush.msra.mxu1 %v3392_v29  ;;  %v3409_v35 = vld [vmem:[#allocation5 + $0x150] sm:$0xff]  ;;  %v3411_v36 = vld [vmem:[#allocation5 + $0x158] sm:$0xff]  ;;  %308 = vmatpush.msra.mxu0 %v3394_v30  ;;  %v3416_v37 = vld [vmem:[#allocation5 + $0x168] sm:$0xff] }
  0x40   : > { %349 = vmatpush.msra.mxu2 %v3383_v26  ;;  %369 = vmatpush.msra.mxu3 %v3385_v27  ;;  %v3418_v38 = vld [vmem:[#allocation5 + $0x160] sm:$0xff]  ;;  %v3421_v39 = vld [vmem:[#allocation5 + $0x130] sm:$0xff]  ;;  %v3423_v40 = vld [vmem:[#allocation5 + $0x138] sm:$0xff] }
  0x41   : > { %329 = vmatpush.msra.mxu1 %v3404_v33  ;;  %309 = vmatpush.msra.mxu0 %v3406_v34  ;;  %v3428_v41 = vld [vmem:[#allocation5 + $0x148] sm:$0xff]  ;;  %v3430_v42 = vld [vmem:[#allocation5 + $0x140] sm:$0xff]  ;;  %v3433_v43 = vld [vmem:[#allocation5 + $0x110] sm:$0xff] }
  0x42   : > { %350 = vmatpush.msra.mxu2 %v3397_v31  ;;  %370 = vmatpush.msra.mxu3 %v3399_v32  ;;  %v3435_v44 = vld [vmem:[#allocation5 + $0x118] sm:$0xff]  ;;  %v3440_v45 = vld [vmem:[#allocation5 + $0x128] sm:$0xff]  ;;  %v3442_v46 = vld [vmem:[#allocation5 + $0x120] sm:$0xff] }
  0x43   : > { %330 = vmatpush.msra.mxu1 %v3416_v37  ;;  %310 = vmatpush.msra.mxu0 %v3418_v38  ;;  %v3445_v47 = vld [vmem:[#allocation5 + $0xf0] sm:$0xff]  ;;  %v3447_v48 = vld [vmem:[#allocation5 + $0xf8] sm:$0xff]  ;;  %v3452_v49 = vld [vmem:[#allocation5 + $0x108] sm:$0xff] }
  0x44   : > { %351 = vmatpush.msra.mxu2 %v3409_v35  ;;  %371 = vmatpush.msra.mxu3 %v3411_v36  ;;  %v3454_v50 = vld [vmem:[#allocation5 + $0x100] sm:$0xff]  ;;  %v3457_v51 = vld [vmem:[#allocation5 + $0xd0] sm:$0xff]  ;;  %v3459_v52 = vld [vmem:[#allocation5 + $0xd8] sm:$0xff] }
  0x45   : > { %331 = vmatpush.msra.mxu1 %v3428_v41  ;;  %311 = vmatpush.msra.mxu0 %v3430_v42  ;;  %v3464_v53 = vld [vmem:[#allocation5 + $0xe8] sm:$0xff]  ;;  %v3466_v54 = vld [vmem:[#allocation5 + $0xe0] sm:$0xff]  ;;  %v3469_v55 = vld [vmem:[#allocation5 + $0xb0] sm:$0xff] }
  0x46   : > { %352 = vmatpush.msra.mxu2 %v3421_v39  ;;  %372 = vmatpush.msra.mxu3 %v3423_v40  ;;  %5362 = vst [vmem:[#allocation8_spill] sm:$0xff] %v3469_v55  ;;  %v3471_v56 = vld [vmem:[#allocation5 + $0xb8] sm:$0xff]  ;;  %v3476_v57 = vld [vmem:[#allocation5 + $0xc8] sm:$0xff]  ;;  %v3478_v58 = vld [vmem:[#allocation5 + $0xc0] sm:$0xff] }
  0x47   : > { %332 = vmatpush.msra.mxu1 %v3440_v45  ;;  %312 = vmatpush.msra.mxu0 %v3442_v46  ;;  %5363 = vst [vmem:[#allocation9_spill] sm:$0xff] %v3471_v56  ;;  %v3481_v59 = vld [vmem:[#allocation5 + $0x90] sm:$0xff]  ;;  %v3483_v60 = vld [vmem:[#allocation5 + $0x98] sm:$0xff]  ;;  %v3488_v61 = vld [vmem:[#allocation5 + $0xa8] sm:$0xff] }
  0x48   : > { %353 = vmatpush.msra.mxu2 %v3433_v43  ;;  %373 = vmatpush.msra.mxu3 %v3435_v44  ;;  %5364 = vst [vmem:[#allocation10_spill] sm:$0xff] %v3481_v59  ;;  %v3490_v62 = vld [vmem:[#allocation5 + $0xa0] sm:$0xff]  ;;  %v3493_v63 = vld [vmem:[#allocation5 + $0x70] sm:$0xff]  ;;  %v3495_v0 = vld [vmem:[#allocation5 + $0x78] sm:$0xff] }
  0x49   : > { %333 = vmatpush.msra.mxu1 %v3452_v49  ;;  %313 = vmatpush.msra.mxu0 %v3454_v50  ;;  %5365 = vst [vmem:[#allocation11_spill] sm:$0xff] %v3483_v60  ;;  %v3500_v1 = vld [vmem:[#allocation5 + $0x88] sm:$0xff]  ;;  %v3502_v2 = vld [vmem:[#allocation5 + $0x80] sm:$0xff]  ;;  %v3505_v3 = vld [vmem:[#allocation5 + $0x50] sm:$0xff] }
  0x4a   : > { %354 = vmatpush.msra.mxu2 %v3445_v47  ;;  %374 = vmatpush.msra.mxu3 %v3447_v48  ;;  %5366 = vst [vmem:[#allocation12_spill] sm:$0xff] %v3488_v61  ;;  %v3507_v4 = vld [vmem:[#allocation5 + $0x58] sm:$0xff]  ;;  %v3512_v5 = vld [vmem:[#allocation5 + $0x68] sm:$0xff]  ;;  %v3514_v6 = vld [vmem:[#allocation5 + $0x60] sm:$0xff] }
  0x4b   : > { %334 = vmatpush.msra.mxu1 %v3464_v53  ;;  %314 = vmatpush.msra.mxu0 %v3466_v54  ;;  %5367 = vst [vmem:[#allocation13_spill] sm:$0xff] %v3490_v62  ;;  %v3517_v7 = vld [vmem:[#allocation5 + $0x30] sm:$0xff]  ;;  %v3519_v8 = vld [vmem:[#allocation5 + $0x38] sm:$0xff]  ;;  %v3524_v9 = vld [vmem:[#allocation5 + $0x48] sm:$0xff] }
  0x4c   : > { %355 = vmatpush.msra.mxu2 %v3457_v51  ;;  %375 = vmatpush.msra.mxu3 %v3459_v52  ;;  %5368 = vst [vmem:[#allocation14_spill] sm:$0xff] %v3493_v63  ;;  %v3526_v10 = vld [vmem:[#allocation5 + $0x40] sm:$0xff]  ;;  %v3529_v11 = vld [vmem:[#allocation5 + $0x10] sm:$0xff]  ;;  %v3531_v12 = vld [vmem:[#allocation5 + $0x18] sm:$0xff] }
  0x4d   : > { %335 = vmatpush.msra.mxu1 %v3476_v57  ;;  %5369 = vst [vmem:[#allocation15_spill] sm:$0xff] %v3495_v0  ;;  %315 = vmatpush.msra.mxu0 %v3478_v58  ;;  %v220_v13 = vld [vmem:[#allocation2] sm:$0x3]  ;;  %v3538_v14 = vld [vmem:[#allocation5 + $0x28] sm:$0xff]  ;;  %v3540_v15 = vld [vmem:[#allocation5 + $0x20] sm:$0xff] }
  0x4e   : > { %356 = vmatpush.msra.mxu2 %v3469_v55  ;;  %376 = vmatpush.msra.mxu3 %v3471_v56  ;;  %5370 = vst [vmem:[#allocation16_spill] sm:$0xff] %v3500_v1  ;;  %v3544_v16 = vld [vmem:[#allocation5 + $0x8] sm:$0xff] }
  0x4f   : > { %5371 = vst [vmem:[#allocation17_spill] sm:$0xff] %v3502_v2  ;;  %336 = vmatpush.msra.mxu1 %v3488_v61  ;;  %316 = vmatpush.msra.mxu0 %v3490_v62 }
  0x50   : > { %357 = vmatpush.msra.mxu2 %v3481_v59  ;;  %377 = vmatpush.msra.mxu3 %v3483_v60  ;;  %5372 = vst [vmem:[#allocation18_spill] sm:$0xff] %v3505_v3 }
  0x51   : > { %5373 = vst [vmem:[#allocation19_spill] sm:$0xff] %v3507_v4  ;;  %337 = vmatpush.msra.mxu1 %v3500_v1  ;;  %317 = vmatpush.msra.mxu0 %v3502_v2 }
  0x52   : > { %358 = vmatpush.msra.mxu2 %v3493_v63  ;;  %378 = vmatpush.msra.mxu3 %v3495_v0  ;;  %5374 = vst [vmem:[#allocation20_spill] sm:$0xff] %v3512_v5 }
  0x53   : > { %5375 = vst [vmem:[#allocation21_spill] sm:$0xff] %v3514_v6  ;;  %338 = vmatpush.msra.mxu1 %v3512_v5  ;;  %318 = vmatpush.msra.mxu0 %v3514_v6 }
  0x54   : > { %5376 = vst [vmem:[#allocation22_spill] sm:$0xff] %v3517_v7  ;;  %359 = vmatpush.msra.mxu2 %v3505_v3  ;;  %379 = vmatpush.msra.mxu3 %v3507_v4 }
  0x55   : > { %5377 = vst [vmem:[#allocation23_spill] sm:$0xff] %v3519_v8  ;;  %339 = vmatpush.msra.mxu1 %v3524_v9  ;;  %319 = vmatpush.msra.mxu0 %v3526_v10 }
  0x56   : > { %5378 = vst [vmem:[#allocation24_spill] sm:$0xff] %v3524_v9  ;;  %360 = vmatpush.msra.mxu2 %v3517_v7  ;;  %380 = vmatpush.msra.mxu3 %v3519_v8  ;;  %v3546_v7 = vld [vmem:[#allocation5] sm:$0xff] }
  0x57   : > { %5379 = vst [vmem:[#allocation25_spill] sm:$0xff] %v3526_v10  ;;  %340 = vmatpush.msra.mxu1 %v3538_v14  ;;  %320 = vmatpush.msra.mxu0 %v3540_v15 }
  0x58   : > { %5380 = vst [vmem:[#allocation26_spill] sm:$0xff] %v3529_v11  ;;  %361 = vmatpush.msra.mxu2 %v3529_v11  ;;  %381 = vmatpush.msra.mxu3 %v3531_v12 }
  0x59   : > { %5381 = vst [vmem:[#allocation27_spill] sm:$0xff] %v3531_v12  ;;  %362 = vmatmul.f32.vlgmr.msra.gmra.mxu2 %v220_v13  ;;  %382 = vmatmul.f32.vlgmr.msra.gmra.mxu3 %v220_v13 }
  0x5a   : > { %5382 = vst [vmem:[#allocation28_spill] sm:$0xff] %v3538_v14  ;;  %528 = vmatpush.msrb.mxu2 %v3360_v17  ;;  %548 = vmatpush.msrb.mxu3 %v3362_v18 }
  0x5b   : > { %5383 = vst [vmem:[#allocation29_spill] sm:$0xff] %v3540_v15  ;;  %341 = vmatpush.msra.mxu1 %v3544_v16  ;;  %321 = vmatpush.msra.mxu0 %v3546_v7 }
  0x5c   : > { %5384 = vst [vmem:[#allocation30_spill] sm:$0xff] %v3544_v16  ;;  %342 = vmatmul.f32.vlgmr.msra.gmra.mxu1 %v220_v13  ;;  %322 = vmatmul.f32.vlgmr.msra.gmra.mxu0 %v220_v13  ;;  %v5386_v13 = vld [vmem:[#allocation22_spill] sm:$0xff] }
  0x5d   : > { %5385 = vst [vmem:[#allocation31_spill] sm:$0xff] %v3546_v7  ;;  %488 = vmatpush.msrb.mxu0 %v3378_v24  ;;  %508 = vmatpush.msrb.mxu1 %v3374_v23 }
  0x5e   : > { %529 = vmatpush.msrb.mxu2 %v3364_v19  ;;  %549 = vmatpush.msrb.mxu3 %v3368_v20 }
  0x5f   : > { %489 = vmatpush.msrb.mxu0 %v3388_v28  ;;  %509 = vmatpush.msrb.mxu1 %v3380_v25 }
  0x60   : > { %530 = vmatpush.msrb.mxu2 %v3370_v21  ;;  %550 = vmatpush.msrb.mxu3 %v3372_v22 }
  0x61   : > { %490 = vmatpush.msrb.mxu0 %v3394_v30  ;;  %510 = vmatpush.msrb.mxu1 %v3392_v29 }
  0x62   : > { %531 = vmatpush.msrb.mxu2 %v3383_v26  ;;  %551 = vmatpush.msrb.mxu3 %v3385_v27 }
  0x63   : > { %491 = vmatpush.msrb.mxu0 %v3406_v34  ;;  %511 = vmatpush.msrb.mxu1 %v3404_v33 }
  0x64   : > { %532 = vmatpush.msrb.mxu2 %v3397_v31  ;;  %552 = vmatpush.msrb.mxu3 %v3399_v32 }
  0x65   : > { %492 = vmatpush.msrb.mxu0 %v3418_v38  ;;  %512 = vmatpush.msrb.mxu1 %v3416_v37 }
  0x66   : > { %533 = vmatpush.msrb.mxu2 %v3409_v35  ;;  %553 = vmatpush.msrb.mxu3 %v3411_v36 }
  0x67   : > { %493 = vmatpush.msrb.mxu0 %v3430_v42  ;;  %513 = vmatpush.msrb.mxu1 %v3428_v41 }
  0x68   : > { %534 = vmatpush.msrb.mxu2 %v3421_v39  ;;  %554 = vmatpush.msrb.mxu3 %v3423_v40 }
  0x69   : > { %494 = vmatpush.msrb.mxu0 %v3442_v46  ;;  %514 = vmatpush.msrb.mxu1 %v3440_v45 }
  0x6a   : > { %535 = vmatpush.msrb.mxu2 %v3433_v43  ;;  %555 = vmatpush.msrb.mxu3 %v3435_v44 }
  0x6b   : > { %495 = vmatpush.msrb.mxu0 %v3454_v50  ;;  %515 = vmatpush.msrb.mxu1 %v3452_v49 }
  0x6c   : > { %536 = vmatpush.msrb.mxu2 %v3445_v47  ;;  %556 = vmatpush.msrb.mxu3 %v3447_v48 }
  0x6d   : > { %496 = vmatpush.msrb.mxu0 %v3466_v54  ;;  %516 = vmatpush.msrb.mxu1 %v3464_v53 }
  0x6e   : > { %537 = vmatpush.msrb.mxu2 %v3457_v51  ;;  %557 = vmatpush.msrb.mxu3 %v3459_v52 }
  0x6f   : > { %497 = vmatpush.msrb.mxu0 %v3478_v58  ;;  %517 = vmatpush.msrb.mxu1 %v3476_v57 }
  0x70   : > { %538 = vmatpush.msrb.mxu2 %v3469_v55  ;;  %558 = vmatpush.msrb.mxu3 %v3471_v56 }
  0x71   : > { %498 = vmatpush.msrb.mxu0 %v3490_v62  ;;  %518 = vmatpush.msrb.mxu1 %v3488_v61 }
  0x72   : > { %539 = vmatpush.msrb.mxu2 %v3481_v59  ;;  %559 = vmatpush.msrb.mxu3 %v3483_v60 }
  0x73   : > { %499 = vmatpush.msrb.mxu0 %v3502_v2  ;;  %519 = vmatpush.msrb.mxu1 %v3500_v1 }
  0x74   : > { %540 = vmatpush.msrb.mxu2 %v3493_v63  ;;  %560 = vmatpush.msrb.mxu3 %v3495_v0 }
  0x75   : > { %500 = vmatpush.msrb.mxu0 %v3514_v6  ;;  %520 = vmatpush.msrb.mxu1 %v3512_v5 }
  0x76   : > { %541 = vmatpush.msrb.mxu2 %v3505_v3  ;;  %561 = vmatpush.msrb.mxu3 %v3507_v4 }
  0x77   : > { %501 = vmatpush.msrb.mxu0 %v3526_v10  ;;  %521 = vmatpush.msrb.mxu1 %v3524_v9 }
  0x78   : > { %542 = vmatpush.msrb.mxu2 %v5386_v13  ;;  %562 = vmatpush.msrb.mxu3 %v3519_v8 }
  0x79   : > { %502 = vmatpush.msrb.mxu0 %v3540_v15  ;;  %522 = vmatpush.msrb.mxu1 %v3538_v14 }
  0x7a   : > { %543 = vmatpush.msrb.mxu2 %v3529_v11  ;;  %563 = vmatpush.msrb.mxu3 %v3531_v12 }
  0x7b   : > { %503 = vmatpush.msrb.mxu0 %v3546_v7  ;;  %523 = vmatpush.msrb.mxu1 %v3544_v16 }
  0x7c   : > { %669 = vmatpush.msra.mxu2 %v3360_v17  ;;  %689 = vmatpush.msra.mxu3 %v3362_v18 }
  0x7d   : > { %629 = vmatpush.msra.mxu0 %v3378_v24  ;;  %649 = vmatpush.msra.mxu1 %v3374_v23 }
  0x7e   : > { %670 = vmatpush.msra.mxu2 %v3364_v19  ;;  %690 = vmatpush.msra.mxu3 %v3368_v20 }
  0x7f   : > { %630 = vmatpush.msra.mxu0 %v3388_v28  ;;  %650 = vmatpush.msra.mxu1 %v3380_v25 }
  0x80   : > { %671 = vmatpush.msra.mxu2 %v3370_v21  ;;  %691 = vmatpush.msra.mxu3 %v3372_v22 }
  0x81   : > { %631 = vmatpush.msra.mxu0 %v3394_v30  ;;  %651 = vmatpush.msra.mxu1 %v3392_v29 }
  0x82   : > { %672 = vmatpush.msra.mxu2 %v3383_v26  ;;  %692 = vmatpush.msra.mxu3 %v3385_v27 }
  0x83   : > { %632 = vmatpush.msra.mxu0 %v3406_v34  ;;  %652 = vmatpush.msra.mxu1 %v3404_v33 }
  0x84   : > { %673 = vmatpush.msra.mxu2 %v3397_v31  ;;  %693 = vmatpush.msra.mxu3 %v3399_v32 }
  0x85   : > { %633 = vmatpush.msra.mxu0 %v3418_v38  ;;  %653 = vmatpush.msra.mxu1 %v3416_v37 }
  0x86   : > { %674 = vmatpush.msra.mxu2 %v3409_v35  ;;  %694 = vmatpush.msra.mxu3 %v3411_v36 }
  0x87   : > { %634 = vmatpush.msra.mxu0 %v3430_v42  ;;  %654 = vmatpush.msra.mxu1 %v3428_v41 }
  0x88   : > { %675 = vmatpush.msra.mxu2 %v3421_v39  ;;  %695 = vmatpush.msra.mxu3 %v3423_v40 }
  0x89   : > { %635 = vmatpush.msra.mxu0 %v3442_v46  ;;  %655 = vmatpush.msra.mxu1 %v3440_v45 }
  0x8a   : > { %676 = vmatpush.msra.mxu2 %v3433_v43  ;;  %696 = vmatpush.msra.mxu3 %v3435_v44 }
  0x8b   : > { %636 = vmatpush.msra.mxu0 %v3454_v50  ;;  %656 = vmatpush.msra.mxu1 %v3452_v49 }
  0x8c   : > { %677 = vmatpush.msra.mxu2 %v3445_v47  ;;  %697 = vmatpush.msra.mxu3 %v3447_v48 }
  0x8d   : > { %637 = vmatpush.msra.mxu0 %v3466_v54  ;;  %657 = vmatpush.msra.mxu1 %v3464_v53 }
  0x8e   : > { %678 = vmatpush.msra.mxu2 %v3457_v51  ;;  %698 = vmatpush.msra.mxu3 %v3459_v52 }
  0x8f   : > { %638 = vmatpush.msra.mxu0 %v3478_v58  ;;  %658 = vmatpush.msra.mxu1 %v3476_v57 }
  0x90   : > { %679 = vmatpush.msra.mxu2 %v3469_v55  ;;  %699 = vmatpush.msra.mxu3 %v3471_v56 }
  0x91   : > { %639 = vmatpush.msra.mxu0 %v3490_v62  ;;  %659 = vmatpush.msra.mxu1 %v3488_v61 }
  0x92   : > { %680 = vmatpush.msra.mxu2 %v3481_v59  ;;  %700 = vmatpush.msra.mxu3 %v3483_v60 }
  0x93   : > { %640 = vmatpush.msra.mxu0 %v3502_v2  ;;  %660 = vmatpush.msra.mxu1 %v3500_v1  ;;  %v2795_v2 = vld [vmem:[%s3346_s7 + $0x40] ss:$8 sm:$0xf] }
  0x94   : > { %681 = vmatpush.msra.mxu2 %v3493_v63  ;;  %701 = vmatpush.msra.mxu3 %v3495_v0 }
  0x95   : > { %641 = vmatpush.msra.mxu0 %v3514_v6  ;;  %661 = vmatpush.msra.mxu1 %v3512_v5  ;;  %v303_v6 = vld [vmem:[%s3346_s7] ss:$8 sm:$0xf] }
  0x96   : > { %682 = vmatpush.msra.mxu2 %v3505_v3  ;;  %702 = vmatpush.msra.mxu3 %v3507_v4  ;;  %v3251_v4 = vmov 1.0  }
  0x97   : > { %642 = vmatpush.msra.mxu0 %v3526_v10  ;;  %662 = vmatpush.msra.mxu1 %v3524_v9  ;;  %v3250_v9 = vmov 0.5   ;;  %v416_v0 = vrot.slane %v3251_v4, 5 }
  0x98   : > { %683 = vmatpush.msra.mxu2 %v5386_v13  ;;  %703 = vmatpush.msra.mxu3 %v3519_v8  ;;  %v414_v3 = vrot.slane %v3250_v9, 7  ;;  %v415_v10 = vrot.slane %v3250_v9, 6 }
  0x99   : > { %643 = vmatpush.msra.mxu0 %v3540_v15  ;;  %663 = vmatpush.msra.mxu1 %v3538_v14 }
  0x9a   : > { %684 = vmatpush.msra.mxu2 %v3529_v11  ;;  %704 = vmatpush.msra.mxu3 %v3531_v12  ;;  %v421_v11 = vsel %vm401_vm0, %v415_v10, %v416_v0  ;;  %v417_v9 = vsel %vm393_vm1, 0.5, %v414_v3  ;;  %v418_v4 = vsel %vm395_vm3, %v415_v10, %v416_v0 }
  0x9b   : > { %644 = vmatpush.msra.mxu0 %v3546_v7  ;;  %664 = vmatpush.msra.mxu1 %v3544_v16  ;;  %v420_v7 = vsel %vm399_vm2, 0.5, %v414_v3  ;;  %v3694_v0 = vsel %vm397_vm4, %v417_v9, %v418_v4 }
  0x9c   : > { %v422_v60 = vsel %vm403_vm5, %v420_v7, %v421_v11 }
  0x9d   : > { %v3696_v55 = vrot.slane %v422_v60, 1 }
  0xd9   : > { %v343_v15 = vpop.f32.mrf.mxu1  ;;  %v323_v14 = vpop.f32.mrf.mxu0 }
  0xda   : > { %v390_v8 = vrot.slane %v343_v15, 7 }
  0xdc   : > { %v363_v16 = vpop.f32.mrf.mxu2  ;;  %v383_v12 = vpop.f32.mrf.mxu3  ;;  %v394_v5 = vsel %vm393_vm1, %v323_v14, %v390_v8  ;;  %v400_v15 = vsel %vm399_vm2, %v323_v14, %v390_v8  ;;  %v3252_v8 = vmov 0.0  }
  0xdd   : > { %v391_v13 = vrot.slane %v363_v16, 6  ;;  %v392_v63 = vrot.slane %v383_v12, 5  ;;  %v438_v14 = vrot.slane %v3252_v8, 5 }
  0xdf   : > { %v396_v59 = vsel %vm395_vm3, %v391_v13, %v392_v63  ;;  %v402_v1 = vsel %vm401_vm0, %v391_v13, %v392_v63  ;;  %v443_v63 = vsel %vm401_vm0, %v415_v10, %v438_v14  ;;  %v221_v13 = vld [vmem:[#allocation3] sm:$0x3] }
  0xe0   : > { %v398_v56 = vsel %vm397_vm4, %v394_v5, %v396_v59  ;;  %v404_v3 = vsel %vm403_vm5, %v400_v15, %v402_v1  ;;  %v440_v59 = vsel %vm395_vm3, %v415_v10, %v438_v14  ;;  %v444_v1 = vsel %vm403_vm5, %v420_v7, %v443_v63 }
  0xe1   : > { %v405_v12 = vrot.slane %v404_v3, 1  ;;  %v408_v16 = vadd.f32 %v398_v56, %v303_v6  ;;  %v3704_v56 = vsel %vm397_vm4, %v417_v9, %v440_v59  ;;  %v3707_v6 = vrot.slane %v444_v1, 1 }
  0xe2   : > { %v457_v10 = vrot.slane %v221_v13, 1 }
  0xe3   : > { %v409_v61 = vadd.f32 %v2795_v2, %v405_v12  ;;  %v426_v11 = vmul.f32 %v3694_v0, %v408_v16 }
  0xe5   : > { %v427_v62 = vmul.f32 %v3696_v55, %v409_v61  ;;  %2871 = vtanh.f32 %v426_v11 }
  0xe7   : > { %2873 = vtanh.f32 %v427_v62 }
  0xeb   : > { %v2872_v5 = vpop.eup %2871 }
  0xec   : > { %v430_v60 = vmul.f32 %v2872_v5, %v3694_v0 }
  0xed   : > { %v2874_v2 = vpop.eup %2873 }
  0xee   : > { %v431_v61 = vmul.f32 %v2874_v2, %v3696_v55  ;;  %v448_v4 = vadd.f32 %v3704_v56, %v430_v60 }
  0xf0   : > { %v449_v62 = vadd.f32 %v3707_v6, %v431_v61  ;;  %v452_v15 = vrot.slane %v448_v4, 1  ;;  %v461_v3 = vrot.slane %v448_v4, 3  ;;  %v471_v59 = vrot.slane %v448_v4, 2 }
  0xf2   : > { %v453_v7 = vrot.slane %v449_v62, 1  ;;  %v459_v12 = vmul.f32 %v452_v15, %v221_v13  ;;  %v462_v16 = vrot.slane %v449_v62, 3  ;;  %v465_v9 = vmul.f32 %v461_v3, %v448_v4  ;;  %v5389_v4 = vld [vmem:[#allocation13_spill] sm:$0xff]  ;;  %v5391_v15 = vld [vmem:[#allocation8_spill] sm:$0xff] }
  0xf3   : > { %v472_v5 = vrot.slane %v449_v62, 2  ;;  %v5393_v3 = vld [vmem:[#allocation17_spill] sm:$0xff] }
  0xf4   : > { %v460_v8 = vmul.f32 %v457_v10, %v453_v7  ;;  %v466_v14 = vmul.f32 %v462_v16, %v449_v62  ;;  %v3712_v11 = vadd.f32 %v465_v9, %v459_v12  ;;  %v5390_v62 = vld [vmem:[#allocation12_spill] sm:$0xff]  ;;  %v5392_v10 = vld [vmem:[#allocation9_spill] sm:$0xff]  ;;  %v5395_v12 = vld [vmem:[#allocation10_spill] sm:$0xff] }
  0xf5   : > { %v5394_v7 = vld [vmem:[#allocation16_spill] sm:$0xff]  ;;  %v5396_v16 = vld [vmem:[#allocation11_spill] sm:$0xff]  ;;  %v5397_v9 = vld [vmem:[#allocation21_spill] sm:$0xff] }
  0xf6   : > { %v3714_v63 = vadd.f32 %v466_v14, %v460_v8  ;;  %2875 = vtanh.f32 %v3712_v11  ;;  %v5398_v8 = vld [vmem:[#allocation20_spill] sm:$0xff]  ;;  %v5399_v14 = vld [vmem:[#allocation14_spill] sm:$0xff] }
  0xf8   : > { %2877 = vtanh.f32 %v3714_v63 }
  0xfc   : > { %v2876_v1 = vpop.eup %2875 }
  0xfd   : > { %v3718_v60 = vmul.f32 %v2876_v1, %v471_v59  ;;  %v5400_v59 = vld [vmem:[#allocation15_spill] sm:$0xff]  ;;  %v5401_v1 = vld [vmem:[#allocation25_spill] sm:$0xff] }
  0xfe   : > { %v2878_v2 = vpop.eup %2877 }
  0xff   : > { %5387 = vst [vmem:[#allocation32_spill] sm:$0xff] %v3718_v60  ;;  %v3720_v61 = vmul.f32 %v2878_v2, %v472_v5  ;;  %v5402_v5 = vld [vmem:[#allocation24_spill] sm:$0xff]  ;;  %v5403_v2 = vld [vmem:[#allocation18_spill] sm:$0xff] }
 0x100   : > { %483 = vst [vmem:[#allocation1] ss:$9 sm:$0xff] %v3718_v60  ;;  %v5406_v60 = vld [vmem:[#allocation28_spill] sm:$0xff] }
 0x101   : > { %5388 = vst [vmem:[#allocation33_spill] sm:$0xff] %v3720_v61 }
 0x102   : > { %485 = vst [vmem:[#allocation1 + $0x1] ss:$9 sm:$0xff] %v3720_v61  ;;  %v5405_v61 = vld [vmem:[#allocation29_spill] sm:$0xff] }
 0x109   : > { %v486_v13 = vld [vmem:[#allocation1] sm:$0xff] }
 0x10a   : > { %504 = vmatmul.f32.vlgmr.msrb.gmra.mxu0 %v486_v13  ;;  %524 = vmatmul.f32.vlgmr.msrb.gmra.mxu1 %v486_v13 }
 0x10b   : > { %544 = vmatmul.f32.vlgmr.msrb.gmra.mxu2 %v486_v13  ;;  %564 = vmatmul.f32.vlgmr.msrb.gmra.mxu3 %v486_v13  ;;  %v5404_v13 = vld [vmem:[#allocation19_spill] sm:$0xff] }
 0x10c   : > { %770 = vmatpush.msrb.mxu0 %v3378_v24  ;;  %790 = vmatpush.msrb.mxu1 %v3374_v23 }
 0x10d   : > { %810 = vmatpush.msrb.mxu2 %v3360_v17  ;;  %830 = vmatpush.msrb.mxu3 %v3362_v18 }
 0x10e   : > { %771 = vmatpush.msrb.mxu0 %v3388_v28  ;;  %791 = vmatpush.msrb.mxu1 %v3380_v25 }
 0x10f   : > { %811 = vmatpush.msrb.mxu2 %v3364_v19  ;;  %831 = vmatpush.msrb.mxu3 %v3368_v20 }
 0x110   : > { %772 = vmatpush.msrb.mxu0 %v3394_v30  ;;  %792 = vmatpush.msrb.mxu1 %v3392_v29 }
 0x111   : > { %812 = vmatpush.msrb.mxu2 %v3370_v21  ;;  %832 = vmatpush.msrb.mxu3 %v3372_v22 }
 0x112   : > { %773 = vmatpush.msrb.mxu0 %v3406_v34  ;;  %793 = vmatpush.msrb.mxu1 %v3404_v33 }
 0x113   : > { %813 = vmatpush.msrb.mxu2 %v3383_v26  ;;  %833 = vmatpush.msrb.mxu3 %v3385_v27 }
 0x114   : > { %774 = vmatpush.msrb.mxu0 %v3418_v38  ;;  %794 = vmatpush.msrb.mxu1 %v3416_v37 }
 0x115   : > { %814 = vmatpush.msrb.mxu2 %v3397_v31  ;;  %834 = vmatpush.msrb.mxu3 %v3399_v32 }
 0x116   : > { %775 = vmatpush.msrb.mxu0 %v3430_v42  ;;  %795 = vmatpush.msrb.mxu1 %v3428_v41 }
 0x117   : > { %815 = vmatpush.msrb.mxu2 %v3409_v35  ;;  %835 = vmatpush.msrb.mxu3 %v3411_v36 }
 0x118   : > { %776 = vmatpush.msrb.mxu0 %v3442_v46  ;;  %796 = vmatpush.msrb.mxu1 %v3440_v45 }
 0x119   : > { %816 = vmatpush.msrb.mxu2 %v3421_v39  ;;  %836 = vmatpush.msrb.mxu3 %v3423_v40 }
 0x11a   : > { %777 = vmatpush.msrb.mxu0 %v3454_v50  ;;  %797 = vmatpush.msrb.mxu1 %v3452_v49 }
 0x11b   : > { %817 = vmatpush.msrb.mxu2 %v3433_v43  ;;  %837 = vmatpush.msrb.mxu3 %v3435_v44 }
 0x11c   : > { %778 = vmatpush.msrb.mxu0 %v3466_v54  ;;  %798 = vmatpush.msrb.mxu1 %v3464_v53 }
 0x11d   : > { %818 = vmatpush.msrb.mxu2 %v3445_v47  ;;  %838 = vmatpush.msrb.mxu3 %v3447_v48 }
 0x11e   : > { %779 = vmatpush.msrb.mxu0 %v3478_v58  ;;  %799 = vmatpush.msrb.mxu1 %v3476_v57 }
 0x11f   : > { %819 = vmatpush.msrb.mxu2 %v3457_v51  ;;  %839 = vmatpush.msrb.mxu3 %v3459_v52 }
 0x120   : > { %780 = vmatpush.msrb.mxu0 %v5389_v4  ;;  %800 = vmatpush.msrb.mxu1 %v5390_v62 }
 0x121   : > { %820 = vmatpush.msrb.mxu2 %v5391_v15  ;;  %840 = vmatpush.msrb.mxu3 %v5392_v10  ;;  %v2797_v10 = vld [vmem:[%s3346_s7 + $0x41] ss:$8 sm:$0xf] }
 0x122   : > { %781 = vmatpush.msrb.mxu0 %v5393_v3  ;;  %801 = vmatpush.msrb.mxu1 %v5394_v7  ;;  %v2796_v3 = vld [vmem:[%s3346_s7 + $0x1] ss:$8 sm:$0xf] }
 0x123   : > { %821 = vmatpush.msrb.mxu2 %v5395_v12  ;;  %841 = vmatpush.msrb.mxu3 %v5396_v16 }
 0x124   : > { %782 = vmatpush.msrb.mxu0 %v5397_v9  ;;  %802 = vmatpush.msrb.mxu1 %v5398_v8  ;;  %v5407_v9 = vld [vmem:[#allocation22_spill] sm:$0xff]  ;;  %v5408_v8 = vld [vmem:[#allocation23_spill] sm:$0xff] }
 0x125   : > { %822 = vmatpush.msrb.mxu2 %v5399_v14  ;;  %842 = vmatpush.msrb.mxu3 %v5400_v59  ;;  %v5409_v14 = vld [vmem:[#allocation31_spill] sm:$0xff]  ;;  %v5410_v59 = vld [vmem:[#allocation30_spill] sm:$0xff] }
 0x126   : > { %783 = vmatpush.msrb.mxu0 %v5401_v1  ;;  %803 = vmatpush.msrb.mxu1 %v5402_v5  ;;  %v5411_v1 = vld [vmem:[#allocation26_spill] sm:$0xff]  ;;  %v5412_v5 = vld [vmem:[#allocation27_spill] sm:$0xff] }
 0x127   : > { %823 = vmatpush.msrb.mxu2 %v5403_v2  ;;  %843 = vmatpush.msrb.mxu3 %v5404_v13 }
 0x128   : > { %784 = vmatpush.msrb.mxu0 %v5405_v61  ;;  %804 = vmatpush.msrb.mxu1 %v5406_v60 }
 0x129   : > { %824 = vmatpush.msrb.mxu2 %v5407_v9  ;;  %844 = vmatpush.msrb.mxu3 %v5408_v8 }
 0x12a   : > { %785 = vmatpush.msrb.mxu0 %v5409_v14  ;;  %805 = vmatpush.msrb.mxu1 %v5410_v59 }
 0x12b   : > { %825 = vmatpush.msrb.mxu2 %v5411_v1  ;;  %845 = vmatpush.msrb.mxu3 %v5412_v5 }
 0x187   : > { %v525_v2 = vpop.f32.mrf.mxu1  ;;  %v505_v60 = vpop.f32.mrf.mxu0 }
 0x188   : > { %v572_v13 = vrot.slane %v525_v2, 7 }
 0x18a   : > { %v575_v9 = vsel %vm393_vm1, %v505_v60, %v572_v13  ;;  %v578_v8 = vsel %vm399_vm2, %v505_v60, %v572_v13 }
 0x18e   : > { %v545_v16 = vpop.f32.mrf.mxu2  ;;  %v565_v12 = vpop.f32.mrf.mxu3 }
 0x18f   : > { %v573_v61 = vrot.slane %v545_v16, 6  ;;  %v574_v7 = vrot.slane %v565_v12, 5 }
 0x191   : > { %v576_v14 = vsel %vm395_vm3, %v573_v61, %v574_v7  ;;  %v579_v59 = vsel %vm401_vm0, %v573_v61, %v574_v7 }
 0x192   : > { %v577_v1 = vsel %vm397_vm4, %v575_v9, %v576_v14  ;;  %v580_v5 = vsel %vm403_vm5, %v578_v8, %v579_v59 }
 0x193   : > { %v581_v2 = vrot.slane %v580_v5, 1  ;;  %v584_v15 = vadd.f32 %v2796_v3, %v577_v1 }
 0x195   : > { %v585_v62 = vadd.f32 %v2797_v10, %v581_v2  ;;  %v586_v12 = vmul.f32 %v584_v15, %v3694_v0 }
 0x197   : > { %v587_v16 = vmul.f32 %v585_v62, %v3696_v55  ;;  %2879 = vtanh.f32 %v586_v12 }
 0x199   : > { %2881 = vtanh.f32 %v587_v16 }
 0x19d   : > { %v2880_v4 = vpop.eup %2879 }
 0x19e   : > { %v590_v60 = vmul.f32 %v2880_v4, %v3694_v0 }
 0x19f   : > { %v2882_v13 = vpop.eup %2881 }
 0x1a0   : > { %v591_v61 = vmul.f32 %v2882_v13, %v3696_v55  ;;  %v592_v7 = vadd.f32 %v590_v60, %v3704_v56 }
 0x1a2   : > { %v593_v9 = vadd.f32 %v591_v61, %v3707_v6  ;;  %v596_v8 = vrot.slane %v592_v7, 1  ;;  %v602_v14 = vrot.slane %v592_v7, 3  ;;  %v612_v2 = vrot.slane %v592_v7, 2 }
 0x1a4   : > { %v597_v3 = vrot.slane %v593_v9, 1  ;;  %v600_v10 = vmul.f32 %v596_v8, %v3712_v11  ;;  %v603_v15 = vrot.slane %v593_v9, 3  ;;  %v606_v59 = vmul.f32 %v602_v14, %v592_v7 }
 0x1a5   : > { %v613_v16 = vrot.slane %v593_v9, 2 }
 0x1a6   : > { %v601_v62 = vmul.f32 %v597_v3, %v3714_v63  ;;  %v607_v1 = vmul.f32 %v603_v15, %v593_v9  ;;  %v3804_v5 = vadd.f32 %v606_v59, %v600_v10 }
 0x1a8   : > { %v3806_v4 = vadd.f32 %v607_v1, %v601_v62  ;;  %2883 = vtanh.f32 %v3804_v5 }
 0x1aa   : > { %2885 = vtanh.f32 %v3806_v4 }
 0x1ae   : > { %v2884_v12 = vpop.eup %2883 }
 0x1af   : > { %v3810_v60 = vmul.f32 %v2884_v12, %v612_v2 }
 0x1b0   : > { %v2886_v13 = vpop.eup %2885 }
 0x1b1   : > { %5413 = vst [vmem:[#allocation34_spill] sm:$0xff] %v3810_v60  ;;  %v3812_v11 = vmul.f32 %v2886_v13, %v613_v16 }
 0x1b2   : > { %624 = vst [vmem:[#allocation1] ss:$9 sm:$0xff] %v3810_v60  ;;  %v4070_v60 = vld [vmem:[#allocation5 + $0x50] sm:$0xff] }
 0x1b3   : > { %5414 = vst [vmem:[#allocation35_spill] sm:$0xff] %v3812_v11 }
 0x1b4   : > { %626 = vst [vmem:[#allocation1 + $0x1] ss:$9 sm:$0xff] %v3812_v11  ;;  %v4067_v11 = vld [vmem:[#allocation5 + $0x48] sm:$0xff] }
 0x1bb   : > { %v627_v63 = vld [vmem:[#allocation1] sm:$0xff] }
 0x1bc   : > { %645 = vmatmul.f32.vlgmr.msra.gmra.mxu0 %v627_v63  ;;  %665 = vmatmul.f32.vlgmr.msra.gmra.mxu1 %v627_v63 }
 0x1bd   : > { %685 = vmatmul.f32.vlgmr.msra.gmra.mxu2 %v627_v63  ;;  %705 = vmatmul.f32.vlgmr.msra.gmra.mxu3 %v627_v63 }
 0x1be   : > { %911 = vmatpush.msra.mxu0 %v3378_v24  ;;  %931 = vmatpush.msra.mxu1 %v3374_v23  ;;  %v5421_v23 = vld [vmem:[#allocation10_spill] sm:$0xff]  ;;  %v5422_v24 = vld [vmem:[#allocation11_spill] sm:$0xff] }
 0x1bf   : > { %951 = vmatpush.msra.mxu2 %v3360_v17  ;;  %971 = vmatpush.msra.mxu3 %v3362_v18  ;;  %v5415_v17 = vld [vmem:[#allocation13_spill] sm:$0xff]  ;;  %v5416_v18 = vld [vmem:[#allocation12_spill] sm:$0xff] }
 0x1c0   : > { %912 = vmatpush.msra.mxu0 %v3388_v28  ;;  %932 = vmatpush.msra.mxu1 %v3380_v25  ;;  %v5423_v25 = vld [vmem:[#allocation21_spill] sm:$0xff]  ;;  %v5426_v28 = vld [vmem:[#allocation15_spill] sm:$0xff] }
 0x1c1   : > { %952 = vmatpush.msra.mxu2 %v3364_v19  ;;  %972 = vmatpush.msra.mxu3 %v3368_v20  ;;  %v5417_v19 = vld [vmem:[#allocation8_spill] sm:$0xff]  ;;  %v5418_v20 = vld [vmem:[#allocation9_spill] sm:$0xff] }
 0x1c2   : > { %913 = vmatpush.msra.mxu0 %v3394_v30  ;;  %933 = vmatpush.msra.mxu1 %v3392_v29  ;;  %v5427_v29 = vld [vmem:[#allocation25_spill] sm:$0xff]  ;;  %v5428_v30 = vld [vmem:[#allocation24_spill] sm:$0xff] }
 0x1c3   : > { %953 = vmatpush.msra.mxu2 %v3370_v21  ;;  %973 = vmatpush.msra.mxu3 %v3372_v22  ;;  %v5419_v21 = vld [vmem:[#allocation17_spill] sm:$0xff]  ;;  %v5420_v22 = vld [vmem:[#allocation16_spill] sm:$0xff] }
 0x1c4   : > { %914 = vmatpush.msra.mxu0 %v3406_v34  ;;  %934 = vmatpush.msra.mxu1 %v3404_v33  ;;  %v5431_v33 = vld [vmem:[#allocation29_spill] sm:$0xff]  ;;  %v5432_v34 = vld [vmem:[#allocation28_spill] sm:$0xff] }
 0x1c5   : > { %954 = vmatpush.msra.mxu2 %v3383_v26  ;;  %974 = vmatpush.msra.mxu3 %v3385_v27  ;;  %v5424_v26 = vld [vmem:[#allocation20_spill] sm:$0xff]  ;;  %v5425_v27 = vld [vmem:[#allocation14_spill] sm:$0xff]  ;;  %5455 = vst [vmem:[#allocation29_spill] sm:$0xff] %v4070_v60 }
 0x1c6   : > { %915 = vmatpush.msra.mxu0 %v3418_v38  ;;  %935 = vmatpush.msra.mxu1 %v3416_v37  ;;  %v5435_v37 = vld [vmem:[#allocation31_spill] sm:$0xff]  ;;  %v5436_v38 = vld [vmem:[#allocation30_spill] sm:$0xff] }
 0x1c7   : > { %955 = vmatpush.msra.mxu2 %v3397_v31  ;;  %975 = vmatpush.msra.mxu3 %v3399_v32  ;;  %v5429_v31 = vld [vmem:[#allocation18_spill] sm:$0xff]  ;;  %v5430_v32 = vld [vmem:[#allocation19_spill] sm:$0xff] }
 0x1c8   : > { %916 = vmatpush.msra.mxu0 %v3430_v42  ;;  %936 = vmatpush.msra.mxu1 %v3428_v41  ;;  %5454 = vst [vmem:[#allocation19_spill] sm:$0xff] %v4067_v11 }
 0x1c9   : > { %956 = vmatpush.msra.mxu2 %v3409_v35  ;;  %976 = vmatpush.msra.mxu3 %v3411_v36  ;;  %v5433_v35 = vld [vmem:[#allocation22_spill] sm:$0xff]  ;;  %v5434_v36 = vld [vmem:[#allocation23_spill] sm:$0xff] }
 0x1ca   : > { %917 = vmatpush.msra.mxu0 %v3442_v46  ;;  %937 = vmatpush.msra.mxu1 %v3440_v45 }
 0x1cb   : > { %957 = vmatpush.msra.mxu2 %v3421_v39  ;;  %977 = vmatpush.msra.mxu3 %v3423_v40  ;;  %v5437_v39 = vld [vmem:[#allocation26_spill] sm:$0xff]  ;;  %v5438_v40 = vld [vmem:[#allocation27_spill] sm:$0xff] }
 0x1cc   : > { %918 = vmatpush.msra.mxu0 %v3454_v50  ;;  %938 = vmatpush.msra.mxu1 %v3452_v49 }
 0x1cd   : > { %958 = vmatpush.msra.mxu2 %v3433_v43  ;;  %978 = vmatpush.msra.mxu3 %v3435_v44 }
 0x1ce   : > { %919 = vmatpush.msra.mxu0 %v3466_v54  ;;  %939 = vmatpush.msra.mxu1 %v3464_v53  ;;  %v2799_v53 = vld [vmem:[%s3346_s7 + $0x42] ss:$8 sm:$0xf] }
 0x1cf   : > { %959 = vmatpush.msra.mxu2 %v3445_v47  ;;  %979 = vmatpush.msra.mxu3 %v3447_v48  ;;  %v2798_v48 = vld [vmem:[%s3346_s7 + $0x2] ss:$8 sm:$0xf] }
 0x1d0   : > { %920 = vmatpush.msra.mxu0 %v3478_v58  ;;  %940 = vmatpush.msra.mxu1 %v3476_v57 }
 0x1d1   : > { %960 = vmatpush.msra.mxu2 %v3457_v51  ;;  %980 = vmatpush.msra.mxu3 %v3459_v52 }
 0x1d2   : > { %921 = vmatpush.msra.mxu0 %v5415_v17  ;;  %941 = vmatpush.msra.mxu1 %v5416_v18 }
 0x1d3   : > { %961 = vmatpush.msra.mxu2 %v5417_v19  ;;  %981 = vmatpush.msra.mxu3 %v5418_v20 }
 0x1d4   : > { %922 = vmatpush.msra.mxu0 %v5419_v21  ;;  %942 = vmatpush.msra.mxu1 %v5420_v22 }
 0x1d5   : > { %962 = vmatpush.msra.mxu2 %v5421_v23  ;;  %982 = vmatpush.msra.mxu3 %v5422_v24 }
 0x1d6   : > { %923 = vmatpush.msra.mxu0 %v5423_v25  ;;  %943 = vmatpush.msra.mxu1 %v5424_v26  ;;  %v3908_v26 = vld [vmem:[#allocation5 + $0x1e0] sm:$0xff] }
 0x1d7   : > { %963 = vmatpush.msra.mxu2 %v5425_v27  ;;  %983 = vmatpush.msra.mxu3 %v5426_v28  ;;  %v3911_v27 = vld [vmem:[#allocation5 + $0x1e8] sm:$0xff]  ;;  %v3914_v28 = vld [vmem:[#allocation5 + $0x1f0] sm:$0xff] }
 0x1d8   : > { %924 = vmatpush.msra.mxu0 %v5427_v29  ;;  %944 = vmatpush.msra.mxu1 %v5428_v30  ;;  %v3917_v29 = vld [vmem:[#allocation5 + $0x1f8] sm:$0xff]  ;;  %v3920_v30 = vld [vmem:[#allocation5 + $0x1c0] sm:$0xff] }
 0x1d9   : > { %964 = vmatpush.msra.mxu2 %v5429_v31  ;;  %984 = vmatpush.msra.mxu3 %v5430_v32  ;;  %v3923_v31 = vld [vmem:[#allocation5 + $0x1c8] sm:$0xff]  ;;  %v3926_v32 = vld [vmem:[#allocation5 + $0x1d0] sm:$0xff] }
 0x1da   : > { %925 = vmatpush.msra.mxu0 %v5431_v33  ;;  %945 = vmatpush.msra.mxu1 %v5432_v34  ;;  %v3929_v34 = vld [vmem:[#allocation5 + $0x1d8] sm:$0xff] }
 0x1db   : > { %965 = vmatpush.msra.mxu2 %v5433_v35  ;;  %985 = vmatpush.msra.mxu3 %v5434_v36  ;;  %v3932_v35 = vld [vmem:[#allocation5 + $0x1a0] sm:$0xff]  ;;  %v3935_v36 = vld [vmem:[#allocation5 + $0x1a8] sm:$0xff] }
 0x1dc   : > { %926 = vmatpush.msra.mxu0 %v5435_v37  ;;  %946 = vmatpush.msra.mxu1 %v5436_v38 }
 0x1dd   : > { %966 = vmatpush.msra.mxu2 %v5437_v39  ;;  %986 = vmatpush.msra.mxu3 %v5438_v40  ;;  %v3938_v39 = vld [vmem:[#allocation5 + $0x1b0] sm:$0xff]  ;;  %v3941_v40 = vld [vmem:[#allocation5 + $0x1b8] sm:$0xff] }
 0x239   : > { %v666_v41 = vpop.f32.mrf.mxu1  ;;  %v646_v47 = vpop.f32.mrf.mxu0 }
 0x23a   : > { %v713_v42 = vrot.slane %v666_v41, 7  ;;  %v3944_v41 = vld [vmem:[#allocation5 + $0x180] sm:$0xff] }
 0x23c   : > { %v716_v49 = vsel %vm393_vm1, %v646_v47, %v713_v42  ;;  %v719_v50 = vsel %vm399_vm2, %v646_v47, %v713_v42  ;;  %v3947_v42 = vld [vmem:[#allocation5 + $0x188] sm:$0xff]  ;;  %v3962_v47 = vld [vmem:[#allocation5 + $0x170] sm:$0xff] }
 0x240   : > { %v686_v43 = vpop.f32.mrf.mxu2  ;;  %v706_v44 = vpop.f32.mrf.mxu3 }
 0x241   : > { %v714_v45 = vrot.slane %v686_v43, 6  ;;  %v715_v46 = vrot.slane %v706_v44, 5  ;;  %v3950_v43 = vld [vmem:[#allocation5 + $0x190] sm:$0xff]  ;;  %v3953_v44 = vld [vmem:[#allocation5 + $0x198] sm:$0xff] }
 0x243   : > { %v717_v51 = vsel %vm395_vm3, %v714_v45, %v715_v46  ;;  %v720_v52 = vsel %vm401_vm0, %v714_v45, %v715_v46  ;;  %v3956_v45 = vld [vmem:[#allocation5 + $0x160] sm:$0xff]  ;;  %v3959_v46 = vld [vmem:[#allocation5 + $0x168] sm:$0xff] }
 0x244   : > { %v718_v54 = vsel %vm397_vm4, %v716_v49, %v717_v51  ;;  %v721_v57 = vsel %vm403_vm5, %v719_v50, %v720_v52  ;;  %v3968_v49 = vld [vmem:[#allocation5 + $0x140] sm:$0xff]  ;;  %v3971_v50 = vld [vmem:[#allocation5 + $0x148] sm:$0xff]  ;;  %v3974_v51 = vld [vmem:[#allocation5 + $0x150] sm:$0xff] }
 0x245   : > { %v722_v58 = vrot.slane %v721_v57, 1  ;;  %v725_v61 = vadd.f32 %v2798_v48, %v718_v54  ;;  %v3965_v48 = vld [vmem:[#allocation5 + $0x178] sm:$0xff]  ;;  %v3983_v54 = vld [vmem:[#allocation5 + $0x128] sm:$0xff]  ;;  %v3986_v57 = vld [vmem:[#allocation5 + $0x130] sm:$0xff] }
 0x246   : > { %v3977_v52 = vld [vmem:[#allocation5 + $0x158] sm:$0xff] }
 0x247   : > { %v726_v7 = vadd.f32 %v2799_v53, %v722_v58  ;;  %v727_v9 = vmul.f32 %v725_v61, %v3694_v0  ;;  %v3980_v53 = vld [vmem:[#allocation5 + $0x120] sm:$0xff]  ;;  %v3989_v58 = vld [vmem:[#allocation5 + $0x138] sm:$0xff] }
 0x248   : > { %v3992_v61 = vld [vmem:[#allocation5 + $0x100] sm:$0xff] }
 0x249   : > { %v728_v8 = vmul.f32 %v726_v7, %v3696_v55  ;;  %2887 = vtanh.f32 %v727_v9  ;;  %v3995_v7 = vld [vmem:[#allocation5 + $0x108] sm:$0xff]  ;;  %v3998_v9 = vld [vmem:[#allocation5 + $0x110] sm:$0xff] }
 0x24b   : > { %2889 = vtanh.f32 %v728_v8  ;;  %v4001_v8 = vld [vmem:[#allocation5 + $0x118] sm:$0xff] }
 0x24f   : > { %v2888_v14 = vpop.eup %2887 }
 0x250   : > { %v731_v3 = vmul.f32 %v2888_v14, %v3694_v0  ;;  %v4004_v14 = vld [vmem:[#allocation5 + $0xe0] sm:$0xff] }
 0x251   : > { %v2890_v10 = vpop.eup %2889 }
 0x252   : > { %v732_v15 = vmul.f32 %v2890_v10, %v3696_v55  ;;  %v733_v59 = vadd.f32 %v731_v3, %v3704_v56  ;;  %v4007_v3 = vld [vmem:[#allocation5 + $0xe8] sm:$0xff]  ;;  %v4010_v10 = vld [vmem:[#allocation5 + $0xf0] sm:$0xff] }
 0x254   : > { %v734_v62 = vadd.f32 %v732_v15, %v3707_v6  ;;  %v737_v1 = vrot.slane %v733_v59, 1  ;;  %v743_v2 = vrot.slane %v733_v59, 3  ;;  %v753_v21 = vrot.slane %v733_v59, 2  ;;  %v4013_v15 = vld [vmem:[#allocation5 + $0xf8] sm:$0xff] }
 0x256   : > { %v738_v12 = vrot.slane %v734_v62, 1  ;;  %v741_v16 = vmul.f32 %v737_v1, %v3804_v5  ;;  %v744_v13 = vrot.slane %v734_v62, 3  ;;  %v747_v63 = vmul.f32 %v743_v2, %v733_v59  ;;  %v4016_v59 = vld [vmem:[#allocation5 + $0xc0] sm:$0xff]  ;;  %v4022_v1 = vld [vmem:[#allocation5 + $0xd0] sm:$0xff]  ;;  %v4025_v2 = vld [vmem:[#allocation5 + $0xd8] sm:$0xff] }
 0x257   : > { %v754_v23 = vrot.slane %v734_v62, 2 }
 0x258   : > { %v742_v17 = vmul.f32 %v738_v12, %v3806_v4  ;;  %v748_v18 = vmul.f32 %v744_v13, %v734_v62  ;;  %v3896_v19 = vadd.f32 %v747_v63, %v741_v16  ;;  %v4019_v62 = vld [vmem:[#allocation5 + $0xc8] sm:$0xff]  ;;  %v4028_v12 = vld [vmem:[#allocation5 + $0xa0] sm:$0xff]  ;;  %v4034_v13 = vld [vmem:[#allocation5 + $0xb0] sm:$0xff] }
 0x259   : > { %5441 = vst [vmem:[#allocation8_spill] sm:$0xff] %v4028_v12  ;;  %v4031_v16 = vld [vmem:[#allocation5 + $0xa8] sm:$0xff]  ;;  %v4037_v63 = vld [vmem:[#allocation5 + $0xb8] sm:$0xff] }
 0x25a   : > { %v3898_v20 = vadd.f32 %v748_v18, %v742_v17  ;;  %2891 = vtanh.f32 %v3896_v19  ;;  %5442 = vst [vmem:[#allocation9_spill] sm:$0xff] %v4031_v16  ;;  %v4040_v17 = vld [vmem:[#allocation5 + $0x80] sm:$0xff]  ;;  %v4043_v18 = vld [vmem:[#allocation5 + $0x88] sm:$0xff] }
 0x25b   : > { %5443 = vst [vmem:[#allocation17_spill] sm:$0xff] %v4034_v13 }
 0x25c   : > { %2893 = vtanh.f32 %v3898_v20  ;;  %5444 = vst [vmem:[#allocation16_spill] sm:$0xff] %v4037_v63 }
 0x25d   : > { %5445 = vst [vmem:[#allocation10_spill] sm:$0xff] %v4040_v17 }
 0x25e   : > { %5446 = vst [vmem:[#allocation11_spill] sm:$0xff] %v4043_v18 }
 0x260   : > { %v2892_v22 = vpop.eup %2891 }
 0x261   : > { %v3902_v24 = vmul.f32 %v2892_v22, %v753_v21  ;;  %v4046_v21 = vld [vmem:[#allocation5 + $0x90] sm:$0xff]  ;;  %v4049_v22 = vld [vmem:[#allocation5 + $0x98] sm:$0xff] }
 0x262   : > { %v2894_v25 = vpop.eup %2893  ;;  %5447 = vst [vmem:[#allocation21_spill] sm:$0xff] %v4046_v21 }
 0x263   : > { %5439 = vst [vmem:[#allocation13_spill] sm:$0xff] %v3902_v24  ;;  %v3904_v5 = vmul.f32 %v2894_v25, %v754_v23  ;;  %v4052_v23 = vld [vmem:[#allocation5 + $0x60] sm:$0xff]  ;;  %v4055_v25 = vld [vmem:[#allocation5 + $0x68] sm:$0xff] }
 0x264   : > { %765 = vst [vmem:[#allocation1] ss:$9 sm:$0xff] %v3902_v24  ;;  %v4064_v24 = vld [vmem:[#allocation5 + $0x40] sm:$0xff] }
 0x265   : > { %5440 = vst [vmem:[#allocation12_spill] sm:$0xff] %v3904_v5 }
 0x266   : > { %767 = vst [vmem:[#allocation1 + $0x1] ss:$9 sm:$0xff] %v3904_v5  ;;  %v4061_v5 = vld [vmem:[#allocation5 + $0x78] sm:$0xff] }
 0x267   : > { %5448 = vst [vmem:[#allocation20_spill] sm:$0xff] %v4049_v22 }
 0x268   : > { %5449 = vst [vmem:[#allocation14_spill] sm:$0xff] %v4052_v23 }
 0x269   : > { %5450 = vst [vmem:[#allocation15_spill] sm:$0xff] %v4055_v25 }
 0x26a   : > { %5452 = vst [vmem:[#allocation24_spill] sm:$0xff] %v4061_v5 }
 0x26b   : > { %5453 = vst [vmem:[#allocation18_spill] sm:$0xff] %v4064_v24 }
 0x26d   : > { %v768_v4 = vld [vmem:[#allocation1] sm:$0xff] }
 0x26e   : > { %786 = vmatmul.f32.vlgmr.msrb.gmra.mxu0 %v768_v4  ;;  %806 = vmatmul.f32.vlgmr.msrb.gmra.mxu1 %v768_v4 }
 0x26f   : > { %826 = vmatmul.f32.vlgmr.msrb.gmra.mxu2 %v768_v4  ;;  %846 = vmatmul.f32.vlgmr.msrb.gmra.mxu3 %v768_v4  ;;  %v4058_v4 = vld [vmem:[#allocation5 + $0x70] sm:$0xff] }
 0x270   : > { %1052 = vmatpush.msrb.mxu0 %v3908_v26  ;;  %1072 = vmatpush.msrb.mxu1 %v3911_v27  ;;  %5451 = vst [vmem:[#allocation25_spill] sm:$0xff] %v4058_v4 }
 0x271   : > { %1092 = vmatpush.msrb.mxu2 %v3914_v28  ;;  %1112 = vmatpush.msrb.mxu3 %v3917_v29 }
 0x272   : > { %1053 = vmatpush.msrb.mxu0 %v3920_v30  ;;  %1073 = vmatpush.msrb.mxu1 %v3923_v31 }
 0x273   : > { %1093 = vmatpush.msrb.mxu2 %v3926_v32  ;;  %1113 = vmatpush.msrb.mxu3 %v3929_v34 }
 0x274   : > { %1054 = vmatpush.msrb.mxu0 %v3932_v35  ;;  %1074 = vmatpush.msrb.mxu1 %v3935_v36 }
 0x275   : > { %1094 = vmatpush.msrb.mxu2 %v3938_v39  ;;  %1114 = vmatpush.msrb.mxu3 %v3941_v40 }
 0x276   : > { %1055 = vmatpush.msrb.mxu0 %v3944_v41  ;;  %1075 = vmatpush.msrb.mxu1 %v3947_v42 }
 0x277   : > { %1095 = vmatpush.msrb.mxu2 %v3950_v43  ;;  %1115 = vmatpush.msrb.mxu3 %v3953_v44 }
 0x278   : > { %1056 = vmatpush.msrb.mxu0 %v3956_v45  ;;  %1076 = vmatpush.msrb.mxu1 %v3959_v46 }
 0x279   : > { %1096 = vmatpush.msrb.mxu2 %v3962_v47  ;;  %1116 = vmatpush.msrb.mxu3 %v3965_v48 }
 0x27a   : > { %1057 = vmatpush.msrb.mxu0 %v3968_v49  ;;  %1077 = vmatpush.msrb.mxu1 %v3971_v50 }
 0x27b   : > { %1097 = vmatpush.msrb.mxu2 %v3974_v51  ;;  %1117 = vmatpush.msrb.mxu3 %v3977_v52 }
 0x27c   : > { %1058 = vmatpush.msrb.mxu0 %v3980_v53  ;;  %1078 = vmatpush.msrb.mxu1 %v3983_v54 }
 0x27d   : > { %1098 = vmatpush.msrb.mxu2 %v3986_v57  ;;  %1118 = vmatpush.msrb.mxu3 %v3989_v58 }
 0x27e   : > { %1059 = vmatpush.msrb.mxu0 %v3992_v61  ;;  %1079 = vmatpush.msrb.mxu1 %v3995_v7 }
 0x27f   : > { %1099 = vmatpush.msrb.mxu2 %v3998_v9  ;;  %1119 = vmatpush.msrb.mxu3 %v4001_v8 }
 0x280   : > { %1060 = vmatpush.msrb.mxu0 %v4004_v14  ;;  %1080 = vmatpush.msrb.mxu1 %v4007_v3 }
 0x281   : > { %1100 = vmatpush.msrb.mxu2 %v4010_v10  ;;  %1120 = vmatpush.msrb.mxu3 %v4013_v15 }
 0x282   : > { %1061 = vmatpush.msrb.mxu0 %v4016_v59  ;;  %1081 = vmatpush.msrb.mxu1 %v4019_v62 }
 0x283   : > { %1101 = vmatpush.msrb.mxu2 %v4022_v1  ;;  %1121 = vmatpush.msrb.mxu3 %v4025_v2 }
 0x284   : > { %1062 = vmatpush.msrb.mxu0 %v4028_v12  ;;  %1082 = vmatpush.msrb.mxu1 %v4031_v16 }
 0x285   : > { %1102 = vmatpush.msrb.mxu2 %v4034_v13  ;;  %1122 = vmatpush.msrb.mxu3 %v4037_v63 }
 0x286   : > { %1063 = vmatpush.msrb.mxu0 %v4040_v17  ;;  %1083 = vmatpush.msrb.mxu1 %v4043_v18  ;;  %v2801_v17 = vld [vmem:[%s3346_s7 + $0x43] ss:$8 sm:$0xf] }
 0x287   : > { %1103 = vmatpush.msrb.mxu2 %v4046_v21  ;;  %1123 = vmatpush.msrb.mxu3 %v4049_v22  ;;  %v2800_v21 = vld [vmem:[%s3346_s7 + $0x3] ss:$8 sm:$0xf] }
 0x288   : > { %1064 = vmatpush.msrb.mxu0 %v4052_v23  ;;  %1084 = vmatpush.msrb.mxu1 %v4055_v25  ;;  %v4073_v25 = vld [vmem:[#allocation5 + $0x58] sm:$0xff] }
 0x289   : > { %1104 = vmatpush.msrb.mxu2 %v4058_v4  ;;  %1124 = vmatpush.msrb.mxu3 %v4061_v5  ;;  %5456 = vst [vmem:[#allocation28_spill] sm:$0xff] %v4073_v25  ;;  %v4077_v4 = vld [vmem:[#allocation5 + $0x28] sm:$0xff]  ;;  %v4080_v5 = vld [vmem:[#allocation5 + $0x30] sm:$0xff] }
 0x28a   : > { %1065 = vmatpush.msrb.mxu0 %v4064_v24  ;;  %1085 = vmatpush.msrb.mxu1 %v4067_v11  ;;  %5457 = vst [vmem:[#allocation22_spill] sm:$0xff] %v4077_v4  ;;  %v4083_v11 = vld [vmem:[#allocation5 + $0x38] sm:$0xff] }
 0x28b   : > { %1105 = vmatpush.msrb.mxu2 %v4070_v60  ;;  %1125 = vmatpush.msrb.mxu3 %v4073_v25  ;;  %5458 = vst [vmem:[#allocation23_spill] sm:$0xff] %v4080_v5  ;;  %v4088_v25 = vld [vmem:[#allocation5 + $0x10] sm:$0xff] }
 0x28c   : > { %1066 = vmatpush.msrb.mxu0 %v5431_v33  ;;  %1086 = vmatpush.msrb.mxu1 %v4077_v4  ;;  %5459 = vst [vmem:[#allocation31_spill] sm:$0xff] %v4083_v11  ;;  %v4091_v33 = vld [vmem:[#allocation5 + $0x18] sm:$0xff] }
 0x28d   : > { %1106 = vmatpush.msrb.mxu2 %v4080_v5  ;;  %1126 = vmatpush.msrb.mxu3 %v4083_v11  ;;  %5460 = vst [vmem:[#allocation30_spill] sm:$0xff] %v4088_v25 }
 0x28e   : > { %1067 = vmatpush.msrb.mxu0 %v5435_v37  ;;  %1087 = vmatpush.msrb.mxu1 %v5436_v38  ;;  %5461 = vst [vmem:[#allocation26_spill] sm:$0xff] %v4091_v33 }
 0x28f   : > { %1107 = vmatpush.msrb.mxu2 %v4088_v25  ;;  %1127 = vmatpush.msrb.mxu3 %v4091_v33 }
 0x2eb   : > { %v807_v4 = vpop.f32.mrf.mxu1  ;;  %v787_v11 = vpop.f32.mrf.mxu0 }
 0x2ec   : > { %v854_v5 = vrot.slane %v807_v4, 7 }
 0x2ee   : > { %v857_v37 = vsel %vm393_vm1, %v787_v11, %v854_v5  ;;  %v860_v38 = vsel %vm399_vm2, %v787_v11, %v854_v5 }
 0x2f2   : > { %v827_v60 = vpop.f32.mrf.mxu2  ;;  %v847_v24 = vpop.f32.mrf.mxu3 }
 0x2f3   : > { %v855_v23 = vrot.slane %v827_v60, 6  ;;  %v856_v22 = vrot.slane %v847_v24, 5 }
 0x2f5   : > { %v858_v18 = vsel %vm395_vm3, %v855_v23, %v856_v22  ;;  %v861_v25 = vsel %vm401_vm0, %v855_v23, %v856_v22 }
 0x2f6   : > { %v859_v63 = vsel %vm397_vm4, %v857_v37, %v858_v18  ;;  %v862_v33 = vsel %vm403_vm5, %v860_v38, %v861_v25 }
 0x2f7   : > { %v863_v4 = vrot.slane %v862_v33, 1  ;;  %v866_v13 = vadd.f32 %v2800_v21, %v859_v63 }
 0x2f9   : > { %v867_v16 = vadd.f32 %v2801_v17, %v863_v4  ;;  %v868_v60 = vmul.f32 %v866_v13, %v3694_v0 }
 0x2fb   : > { %v869_v24 = vmul.f32 %v867_v16, %v3696_v55  ;;  %2895 = vtanh.f32 %v868_v60 }
 0x2fd   : > { %2897 = vtanh.f32 %v869_v24 }
 0x301   : > { %v2896_v12 = vpop.eup %2895 }
 0x302   : > { %v872_v11 = vmul.f32 %v2896_v12, %v3694_v0 }
 0x303   : > { %v2898_v5 = vpop.eup %2897 }
 0x304   : > { %v873_v22 = vmul.f32 %v2898_v5, %v3696_v55  ;;  %v874_v23 = vadd.f32 %v872_v11, %v3704_v56 }
 0x306   : > { %v875_v18 = vadd.f32 %v873_v22, %v3707_v6  ;;  %v878_v25 = vrot.slane %v874_v23, 1  ;;  %v884_v33 = vrot.slane %v874_v23, 3  ;;  %v894_v4 = vrot.slane %v874_v23, 2  ;;  %v5464_v22 = vld [vmem:[#allocation8_spill] sm:$0xff] }
 0x308   : > { %v879_v63 = vrot.slane %v875_v18, 1  ;;  %v882_v17 = vmul.f32 %v878_v25, %v3896_v19  ;;  %v885_v13 = vrot.slane %v875_v18, 3  ;;  %v888_v21 = vmul.f32 %v884_v33, %v874_v23  ;;  %v5465_v23 = vld [vmem:[#allocation9_spill] sm:$0xff]  ;;  %v5467_v25 = vld [vmem:[#allocation16_spill] sm:$0xff]  ;;  %v5468_v33 = vld [vmem:[#allocation10_spill] sm:$0xff] }
 0x309   : > { %v895_v24 = vrot.slane %v875_v18, 2 }
 0x30a   : > { %v883_v16 = vmul.f32 %v879_v63, %v3898_v20  ;;  %v889_v37 = vmul.f32 %v885_v13, %v875_v18  ;;  %v4110_v38 = vadd.f32 %v888_v21, %v882_v17  ;;  %v5466_v18 = vld [vmem:[#allocation17_spill] sm:$0xff]  ;;  %v5469_v63 = vld [vmem:[#allocation11_spill] sm:$0xff]  ;;  %v5471_v13 = vld [vmem:[#allocation20_spill] sm:$0xff] }
 0x30b   : > { %v5470_v17 = vld [vmem:[#allocation21_spill] sm:$0xff]  ;;  %v5472_v21 = vld [vmem:[#allocation14_spill] sm:$0xff] }
 0x30c   : > { %v4112_v12 = vadd.f32 %v889_v37, %v883_v16  ;;  %2899 = vtanh.f32 %v4110_v38  ;;  %v5473_v16 = vld [vmem:[#allocation15_spill] sm:$0xff]  ;;  %v5474_v37 = vld [vmem:[#allocation25_spill] sm:$0xff] }
 0x30e   : > { %2901 = vtanh.f32 %v4112_v12 }
 0x312   : > { %v2900_v60 = vpop.eup %2899 }
 0x313   : > { %v4116_v11 = vmul.f32 %v2900_v60, %v894_v4  ;;  %v5475_v4 = vld [vmem:[#allocation24_spill] sm:$0xff]  ;;  %v5476_v60 = vld [vmem:[#allocation18_spill] sm:$0xff] }
 0x314   : > { %v2902_v5 = vpop.eup %2901 }
 0x315   : > { %5462 = vst [vmem:[#allocation27_spill] sm:$0xff] %v4116_v11  ;;  %v4118_v19 = vmul.f32 %v2902_v5, %v895_v24  ;;  %v5477_v24 = vld [vmem:[#allocation19_spill] sm:$0xff]  ;;  %v5478_v5 = vld [vmem:[#allocation29_spill] sm:$0xff] }
 0x316   : > { %906 = vst [vmem:[#allocation1] ss:$9 sm:$0xff] %v4116_v11  ;;  %v5481_v11 = vld [vmem:[#allocation22_spill] sm:$0xff] }
 0x317   : > { %5463 = vst [vmem:[#allocation36_spill] sm:$0xff] %v4118_v19 }
 0x318   : > { %908 = vst [vmem:[#allocation1 + $0x1] ss:$9 sm:$0xff] %v4118_v19  ;;  %v4178_v19 = vld [vmem:[#allocation5 + $0x20] sm:$0xff] }
 0x319   : > { %5480 = vst [vmem:[#allocation37_spill] sm:$0xff] %v4178_v19 }
 0x31f   : > { %v909_v20 = vld [vmem:[#allocation1] sm:$0xff] }
 0x320   : > { %927 = vmatmul.f32.vlgmr.msra.gmra.mxu0 %v909_v20  ;;  %947 = vmatmul.f32.vlgmr.msra.gmra.mxu1 %v909_v20 }
 0x321   : > { %967 = vmatmul.f32.vlgmr.msra.gmra.mxu2 %v909_v20  ;;  %987 = vmatmul.f32.vlgmr.msra.gmra.mxu3 %v909_v20  ;;  %v5479_v20 = vld [vmem:[#allocation28_spill] sm:$0xff] }
 0x322   : > { %1193 = vmatpush.msra.mxu0 %v3908_v26  ;;  %1213 = vmatpush.msra.mxu1 %v3911_v27 }
 0x323   : > { %1233 = vmatpush.msra.mxu2 %v3914_v28  ;;  %1253 = vmatpush.msra.mxu3 %v3917_v29 }
 0x324   : > { %1194 = vmatpush.msra.mxu0 %v3920_v30  ;;  %1214 = vmatpush.msra.mxu1 %v3923_v31 }
 0x325   : > { %1234 = vmatpush.msra.mxu2 %v3926_v32  ;;  %1254 = vmatpush.msra.mxu3 %v3929_v34 }
 0x326   : > { %1195 = vmatpush.msra.mxu0 %v3932_v35  ;;  %1215 = vmatpush.msra.mxu1 %v3935_v36 }
 0x327   : > { %1235 = vmatpush.msra.mxu2 %v3938_v39  ;;  %1255 = vmatpush.msra.mxu3 %v3941_v40 }
 0x328   : > { %1196 = vmatpush.msra.mxu0 %v3944_v41  ;;  %1216 = vmatpush.msra.mxu1 %v3947_v42 }
 0x329   : > { %1236 = vmatpush.msra.mxu2 %v3950_v43  ;;  %1256 = vmatpush.msra.mxu3 %v3953_v44 }
 0x32a   : > { %1197 = vmatpush.msra.mxu0 %v3956_v45  ;;  %1217 = vmatpush.msra.mxu1 %v3959_v46 }
 0x32b   : > { %1237 = vmatpush.msra.mxu2 %v3962_v47  ;;  %1257 = vmatpush.msra.mxu3 %v3965_v48 }
 0x32c   : > { %1198 = vmatpush.msra.mxu0 %v3968_v49  ;;  %1218 = vmatpush.msra.mxu1 %v3971_v50 }
 0x32d   : > { %1238 = vmatpush.msra.mxu2 %v3974_v51  ;;  %1258 = vmatpush.msra.mxu3 %v3977_v52 }
 0x32e   : > { %1199 = vmatpush.msra.mxu0 %v3980_v53  ;;  %1219 = vmatpush.msra.mxu1 %v3983_v54 }
 0x32f   : > { %1239 = vmatpush.msra.mxu2 %v3986_v57  ;;  %1259 = vmatpush.msra.mxu3 %v3989_v58 }
 0x330   : > { %1200 = vmatpush.msra.mxu0 %v3992_v61  ;;  %1220 = vmatpush.msra.mxu1 %v3995_v7 }
 0x331   : > { %1240 = vmatpush.msra.mxu2 %v3998_v9  ;;  %1260 = vmatpush.msra.mxu3 %v4001_v8 }
 0x332   : > { %1201 = vmatpush.msra.mxu0 %v4004_v14  ;;  %1221 = vmatpush.msra.mxu1 %v4007_v3 }
 0x333   : > { %1241 = vmatpush.msra.mxu2 %v4010_v10  ;;  %1261 = vmatpush.msra.mxu3 %v4013_v15 }
 0x334   : > { %1202 = vmatpush.msra.mxu0 %v4016_v59  ;;  %1222 = vmatpush.msra.mxu1 %v4019_v62 }
 0x335   : > { %1242 = vmatpush.msra.mxu2 %v4022_v1  ;;  %1262 = vmatpush.msra.mxu3 %v4025_v2 }
 0x336   : > { %1203 = vmatpush.msra.mxu0 %v5464_v22  ;;  %1223 = vmatpush.msra.mxu1 %v5465_v23 }
 0x337   : > { %1243 = vmatpush.msra.mxu2 %v5466_v18  ;;  %1263 = vmatpush.msra.mxu3 %v5467_v25  ;;  %v2803_v25 = vld [vmem:[%s3346_s7 + $0x44] ss:$8 sm:$0xf] }
 0x338   : > { %1204 = vmatpush.msra.mxu0 %v5468_v33  ;;  %1224 = vmatpush.msra.mxu1 %v5469_v63 }
 0x339   : > { %1244 = vmatpush.msra.mxu2 %v5470_v17  ;;  %1264 = vmatpush.msra.mxu3 %v5471_v13  ;;  %v2802_v17 = vld [vmem:[%s3346_s7 + $0x4] ss:$8 sm:$0xf] }
 0x33a   : > { %1205 = vmatpush.msra.mxu0 %v5472_v21  ;;  %1225 = vmatpush.msra.mxu1 %v5473_v16  ;;  %v5482_v21 = vld [vmem:[#allocation23_spill] sm:$0xff] }
 0x33b   : > { %1245 = vmatpush.msra.mxu2 %v5474_v37  ;;  %1265 = vmatpush.msra.mxu3 %v5475_v4  ;;  %v5483_v37 = vld [vmem:[#allocation31_spill] sm:$0xff]  ;;  %v4184_v4 = vld [vmem:[#allocation5] sm:$0xff] }
 0x33c   : > { %1206 = vmatpush.msra.mxu0 %v5476_v60  ;;  %1226 = vmatpush.msra.mxu1 %v5477_v24  ;;  %5484 = vst [vmem:[#allocation38_spill] sm:$0xff] %v4184_v4  ;;  %v4187_v24 = vld [vmem:[#allocation5 + $0x8] sm:$0xff] }
 0x33d   : > { %1246 = vmatpush.msra.mxu2 %v5478_v5  ;;  %1266 = vmatpush.msra.mxu3 %v5479_v20  ;;  %5485 = vst [vmem:[#allocation39_spill] sm:$0xff] %v4187_v24  ;;  %v5486_v20 = vld [vmem:[#allocation30_spill] sm:$0xff] }
 0x33e   : > { %1207 = vmatpush.msra.mxu0 %v4178_v19  ;;  %1227 = vmatpush.msra.mxu1 %v5481_v11  ;;  %v5487_v5 = vld [vmem:[#allocation26_spill] sm:$0xff] }
 0x33f   : > { %1247 = vmatpush.msra.mxu2 %v5482_v21  ;;  %1267 = vmatpush.msra.mxu3 %v5483_v37 }
 0x340   : > { %1208 = vmatpush.msra.mxu0 %v4184_v4  ;;  %1228 = vmatpush.msra.mxu1 %v4187_v24 }
 0x341   : > { %1248 = vmatpush.msra.mxu2 %v5486_v20  ;;  %1268 = vmatpush.msra.mxu3 %v5487_v5 }
 0x39d   : > { %v948_v19 = vpop.f32.mrf.mxu1  ;;  %v928_v37 = vpop.f32.mrf.mxu0 }
 0x39e   : > { %v995_v11 = vrot.slane %v948_v19, 7 }
 0x3a0   : > { %v998_v63 = vsel %vm393_vm1, %v928_v37, %v995_v11  ;;  %v1001_v4 = vsel %vm399_vm2, %v928_v37, %v995_v11 }
 0x3a4   : > { %v968_v60 = vpop.f32.mrf.mxu2  ;;  %v988_v16 = vpop.f32.mrf.mxu3 }
 0x3a5   : > { %v996_v21 = vrot.slane %v968_v60, 6  ;;  %v997_v13 = vrot.slane %v988_v16, 5 }
 0x3a7   : > { %v999_v33 = vsel %vm395_vm3, %v996_v21, %v997_v13  ;;  %v1002_v24 = vsel %vm401_vm0, %v996_v21, %v997_v13 }
 0x3a8   : > { %v1000_v20 = vsel %vm397_vm4, %v998_v63, %v999_v33  ;;  %v1003_v5 = vsel %vm403_vm5, %v1001_v4, %v1002_v24 }
 0x3a9   : > { %v1004_v19 = vrot.slane %v1003_v5, 1  ;;  %v1007_v18 = vadd.f32 %v2802_v17, %v1000_v20 }
 0x3ab   : > { %v1008_v23 = vadd.f32 %v2803_v25, %v1004_v19  ;;  %v1009_v16 = vmul.f32 %v1007_v18, %v3694_v0 }
 0x3ad   : > { %v1010_v60 = vmul.f32 %v1008_v23, %v3696_v55  ;;  %2903 = vtanh.f32 %v1009_v16 }
 0x3af   : > { %2905 = vtanh.f32 %v1010_v60 }
 0x3b3   : > { %v2904_v22 = vpop.eup %2903 }
 0x3b4   : > { %v1013_v11 = vmul.f32 %v2904_v22, %v3694_v0 }
 0x3b5   : > { %v2906_v37 = vpop.eup %2905 }
 0x3b6   : > { %v1014_v13 = vmul.f32 %v2906_v37, %v3696_v55  ;;  %v1015_v21 = vadd.f32 %v1013_v11, %v3704_v56 }
 0x3b8   : > { %v1016_v33 = vadd.f32 %v1014_v13, %v3707_v6  ;;  %v1019_v63 = vrot.slane %v1015_v21, 1  ;;  %v1025_v4 = vrot.slane %v1015_v21, 3  ;;  %v1035_v19 = vrot.slane %v1015_v21, 2  ;;  %v5490_v13 = vld [vmem:[#allocation8_spill] sm:$0xff] }
 0x3ba   : > { %v1020_v17 = vrot.slane %v1016_v33, 1  ;;  %v1023_v25 = vmul.f32 %v1019_v63, %v4110_v38  ;;  %v1026_v18 = vrot.slane %v1016_v33, 3  ;;  %v1029_v24 = vmul.f32 %v1025_v4, %v1015_v21  ;;  %v5491_v21 = vld [vmem:[#allocation9_spill] sm:$0xff]  ;;  %v5493_v63 = vld [vmem:[#allocation16_spill] sm:$0xff]  ;;  %v5494_v4 = vld [vmem:[#allocation10_spill] sm:$0xff] }
 0x3bb   : > { %v1036_v60 = vrot.slane %v1016_v33, 2 }
 0x3bc   : > { %v1024_v23 = vmul.f32 %v1020_v17, %v4112_v12  ;;  %v1030_v5 = vmul.f32 %v1026_v18, %v1016_v33  ;;  %v4208_v20 = vadd.f32 %v1029_v24, %v1023_v25  ;;  %v5492_v33 = vld [vmem:[#allocation17_spill] sm:$0xff]  ;;  %v5495_v17 = vld [vmem:[#allocation11_spill] sm:$0xff]  ;;  %v5497_v18 = vld [vmem:[#allocation20_spill] sm:$0xff] }
 0x3bd   : > { %v5496_v25 = vld [vmem:[#allocation21_spill] sm:$0xff]  ;;  %v5498_v24 = vld [vmem:[#allocation14_spill] sm:$0xff] }
 0x3be   : > { %v4210_v22 = vadd.f32 %v1030_v5, %v1024_v23  ;;  %2907 = vtanh.f32 %v4208_v20  ;;  %v5499_v23 = vld [vmem:[#allocation15_spill] sm:$0xff]  ;;  %v5500_v5 = vld [vmem:[#allocation25_spill] sm:$0xff] }
 0x3c0   : > { %2909 = vtanh.f32 %v4210_v22 }
 0x3c4   : > { %v2908_v16 = vpop.eup %2907 }
 0x3c5   : > { %v4214_v11 = vmul.f32 %v2908_v16, %v1035_v19  ;;  %v5501_v19 = vld [vmem:[#allocation24_spill] sm:$0xff]  ;;  %v5502_v16 = vld [vmem:[#allocation18_spill] sm:$0xff] }
 0x3c6   : > { %v2910_v37 = vpop.eup %2909 }
 0x3c7   : > { %5488 = vst [vmem:[#allocation40_spill] sm:$0xff] %v4214_v11  ;;  %v4216_v38 = vmul.f32 %v2910_v37, %v1036_v60  ;;  %v5503_v60 = vld [vmem:[#allocation19_spill] sm:$0xff]  ;;  %v5504_v37 = vld [vmem:[#allocation29_spill] sm:$0xff] }
 0x3c8   : > { %1047 = vst [vmem:[#allocation1] ss:$9 sm:$0xff] %v4214_v11  ;;  %v5507_v11 = vld [vmem:[#allocation22_spill] sm:$0xff] }
 0x3c9   : > { %5489 = vst [vmem:[#allocation41_spill] sm:$0xff] %v4216_v38 }
 0x3ca   : > { %1049 = vst [vmem:[#allocation1 + $0x1] ss:$9 sm:$0xff] %v4216_v38  ;;  %v5506_v38 = vld [vmem:[#allocation37_spill] sm:$0xff] }
 0x3d1   : > { %v1050_v12 = vld [vmem:[#allocation1] sm:$0xff] }
 0x3d2   : > { %1068 = vmatmul.f32.vlgmr.msrb.gmra.mxu0 %v1050_v12  ;;  %1088 = vmatmul.f32.vlgmr.msrb.gmra.mxu1 %v1050_v12 }
 0x3d3   : > { %1108 = vmatmul.f32.vlgmr.msrb.gmra.mxu2 %v1050_v12  ;;  %1128 = vmatmul.f32.vlgmr.msrb.gmra.mxu3 %v1050_v12  ;;  %v5505_v12 = vld [vmem:[#allocation28_spill] sm:$0xff] }
 0x3d4   : > { %1334 = vmatpush.msrb.mxu0 %v3908_v26  ;;  %1354 = vmatpush.msrb.mxu1 %v3911_v27 }
 0x3d5   : > { %1374 = vmatpush.msrb.mxu2 %v3914_v28  ;;  %1394 = vmatpush.msrb.mxu3 %v3917_v29 }
 0x3d6   : > { %1335 = vmatpush.msrb.mxu0 %v3920_v30  ;;  %1355 = vmatpush.msrb.mxu1 %v3923_v31 }
 0x3d7   : > { %1375 = vmatpush.msrb.mxu2 %v3926_v32  ;;  %1395 = vmatpush.msrb.mxu3 %v3929_v34 }
 0x3d8   : > { %1336 = vmatpush.msrb.mxu0 %v3932_v35  ;;  %1356 = vmatpush.msrb.mxu1 %v3935_v36 }
 0x3d9   : > { %1376 = vmatpush.msrb.mxu2 %v3938_v39  ;;  %1396 = vmatpush.msrb.mxu3 %v3941_v40 }
 0x3da   : > { %1337 = vmatpush.msrb.mxu0 %v3944_v41  ;;  %1357 = vmatpush.msrb.mxu1 %v3947_v42 }
 0x3db   : > { %1377 = vmatpush.msrb.mxu2 %v3950_v43  ;;  %1397 = vmatpush.msrb.mxu3 %v3953_v44 }
 0x3dc   : > { %1338 = vmatpush.msrb.mxu0 %v3956_v45  ;;  %1358 = vmatpush.msrb.mxu1 %v3959_v46 }
 0x3dd   : > { %1378 = vmatpush.msrb.mxu2 %v3962_v47  ;;  %1398 = vmatpush.msrb.mxu3 %v3965_v48 }
 0x3de   : > { %1339 = vmatpush.msrb.mxu0 %v3968_v49  ;;  %1359 = vmatpush.msrb.mxu1 %v3971_v50 }
 0x3df   : > { %1379 = vmatpush.msrb.mxu2 %v3974_v51  ;;  %1399 = vmatpush.msrb.mxu3 %v3977_v52 }
 0x3e0   : > { %1340 = vmatpush.msrb.mxu0 %v3980_v53  ;;  %1360 = vmatpush.msrb.mxu1 %v3983_v54 }
 0x3e1   : > { %1380 = vmatpush.msrb.mxu2 %v3986_v57  ;;  %1400 = vmatpush.msrb.mxu3 %v3989_v58 }
 0x3e2   : > { %1341 = vmatpush.msrb.mxu0 %v3992_v61  ;;  %1361 = vmatpush.msrb.mxu1 %v3995_v7 }
 0x3e3   : > { %1381 = vmatpush.msrb.mxu2 %v3998_v9  ;;  %1401 = vmatpush.msrb.mxu3 %v4001_v8 }
 0x3e4   : > { %1342 = vmatpush.msrb.mxu0 %v4004_v14  ;;  %1362 = vmatpush.msrb.mxu1 %v4007_v3 }
 0x3e5   : > { %1382 = vmatpush.msrb.mxu2 %v4010_v10  ;;  %1402 = vmatpush.msrb.mxu3 %v4013_v15 }
 0x3e6   : > { %1343 = vmatpush.msrb.mxu0 %v4016_v59  ;;  %1363 = vmatpush.msrb.mxu1 %v4019_v62 }
 0x3e7   : > { %1383 = vmatpush.msrb.mxu2 %v4022_v1  ;;  %1403 = vmatpush.msrb.mxu3 %v4025_v2 }
 0x3e8   : > { %1344 = vmatpush.msrb.mxu0 %v5490_v13  ;;  %1364 = vmatpush.msrb.mxu1 %v5491_v21 }
 0x3e9   : > { %1384 = vmatpush.msrb.mxu2 %v5492_v33  ;;  %1404 = vmatpush.msrb.mxu3 %v5493_v63  ;;  %v2805_v63 = vld [vmem:[%s3346_s7 + $0x45] ss:$8 sm:$0xf] }
 0x3ea   : > { %1345 = vmatpush.msrb.mxu0 %v5494_v4  ;;  %1365 = vmatpush.msrb.mxu1 %v5495_v17  ;;  %v2804_v4 = vld [vmem:[%s3346_s7 + $0x5] ss:$8 sm:$0xf] }
 0x3eb   : > { %1385 = vmatpush.msrb.mxu2 %v5496_v25  ;;  %1405 = vmatpush.msrb.mxu3 %v5497_v18 }
 0x3ec   : > { %1346 = vmatpush.msrb.mxu0 %v5498_v24  ;;  %1366 = vmatpush.msrb.mxu1 %v5499_v23  ;;  %v5508_v24 = vld [vmem:[#allocation23_spill] sm:$0xff] }
 0x3ed   : > { %1386 = vmatpush.msrb.mxu2 %v5500_v5  ;;  %1406 = vmatpush.msrb.mxu3 %v5501_v19  ;;  %v5509_v23 = vld [vmem:[#allocation31_spill] sm:$0xff]  ;;  %v5510_v5 = vld [vmem:[#allocation38_spill] sm:$0xff] }
 0x3ee   : > { %1347 = vmatpush.msrb.mxu0 %v5502_v16  ;;  %1367 = vmatpush.msrb.mxu1 %v5503_v60  ;;  %v5511_v19 = vld [vmem:[#allocation39_spill] sm:$0xff]  ;;  %v5512_v16 = vld [vmem:[#allocation30_spill] sm:$0xff] }
 0x3ef   : > { %1387 = vmatpush.msrb.mxu2 %v5504_v37  ;;  %1407 = vmatpush.msrb.mxu3 %v5505_v12  ;;  %v5513_v60 = vld [vmem:[#allocation26_spill] sm:$0xff] }
 0x3f0   : > { %1348 = vmatpush.msrb.mxu0 %v5506_v38  ;;  %1368 = vmatpush.msrb.mxu1 %v5507_v11 }
 0x3f1   : > { %1388 = vmatpush.msrb.mxu2 %v5508_v24  ;;  %1408 = vmatpush.msrb.mxu3 %v5509_v23 }
 0x3f2   : > { %1349 = vmatpush.msrb.mxu0 %v5510_v5  ;;  %1369 = vmatpush.msrb.mxu1 %v5511_v19 }
 0x3f3   : > { %1389 = vmatpush.msrb.mxu2 %v5512_v16  ;;  %1409 = vmatpush.msrb.mxu3 %v5513_v60 }
 0x44f   : > { %v1089_v37 = vpop.f32.mrf.mxu1  ;;  %v1069_v11 = vpop.f32.mrf.mxu0 }
 0x450   : > { %v1136_v12 = vrot.slane %v1089_v37, 7 }
 0x452   : > { %v1139_v24 = vsel %vm393_vm1, %v1069_v11, %v1136_v12  ;;  %v1142_v23 = vsel %vm399_vm2, %v1069_v11, %v1136_v12 }
 0x456   : > { %v1109_v18 = vpop.f32.mrf.mxu2  ;;  %v1129_v25 = vpop.f32.mrf.mxu3 }
 0x457   : > { %v1137_v38 = vrot.slane %v1109_v18, 6  ;;  %v1138_v17 = vrot.slane %v1129_v25, 5 }
 0x459   : > { %v1140_v5 = vsel %vm395_vm3, %v1137_v38, %v1138_v17  ;;  %v1143_v19 = vsel %vm401_vm0, %v1137_v38, %v1138_v17 }
 0x45a   : > { %v1141_v16 = vsel %vm397_vm4, %v1139_v24, %v1140_v5  ;;  %v1144_v60 = vsel %vm403_vm5, %v1142_v23, %v1143_v19 }
 0x45b   : > { %v1145_v37 = vrot.slane %v1144_v60, 1  ;;  %v1148_v33 = vadd.f32 %v2804_v4, %v1141_v16 }
 0x45d   : > { %v1149_v21 = vadd.f32 %v2805_v63, %v1145_v37  ;;  %v1150_v25 = vmul.f32 %v1148_v33, %v3694_v0 }
 0x45f   : > { %v1151_v18 = vmul.f32 %v1149_v21, %v3696_v55  ;;  %2911 = vtanh.f32 %v1150_v25 }
 0x461   : > { %2913 = vtanh.f32 %v1151_v18 }
 0x465   : > { %v2912_v13 = vpop.eup %2911 }
 0x466   : > { %v1154_v11 = vmul.f32 %v2912_v13, %v3694_v0 }
 0x467   : > { %v2914_v12 = vpop.eup %2913 }
 0x468   : > { %v1155_v38 = vmul.f32 %v2914_v12, %v3696_v55  ;;  %v1156_v17 = vadd.f32 %v1154_v11, %v3704_v56 }
 0x46a   : > { %v1157_v24 = vadd.f32 %v1155_v38, %v3707_v6  ;;  %v1160_v23 = vrot.slane %v1156_v17, 1  ;;  %v1166_v5 = vrot.slane %v1156_v17, 3  ;;  %v1176_v37 = vrot.slane %v1156_v17, 2  ;;  %v5516_v38 = vld [vmem:[#allocation8_spill] sm:$0xff] }
 0x46c   : > { %v1161_v4 = vrot.slane %v1157_v24, 1  ;;  %v1164_v63 = vmul.f32 %v1160_v23, %v4208_v20  ;;  %v1167_v33 = vrot.slane %v1157_v24, 3  ;;  %v1170_v19 = vmul.f32 %v1166_v5, %v1156_v17  ;;  %v5517_v17 = vld [vmem:[#allocation9_spill] sm:$0xff]  ;;  %v5519_v23 = vld [vmem:[#allocation16_spill] sm:$0xff]  ;;  %v5520_v5 = vld [vmem:[#allocation10_spill] sm:$0xff] }
 0x46d   : > { %v1177_v18 = vrot.slane %v1157_v24, 2 }
 0x46e   : > { %v1165_v21 = vmul.f32 %v1161_v4, %v4210_v22  ;;  %v1171_v16 = vmul.f32 %v1167_v33, %v1157_v24  ;;  %v4300_v60 = vadd.f32 %v1170_v19, %v1164_v63  ;;  %v5518_v24 = vld [vmem:[#allocation17_spill] sm:$0xff]  ;;  %v5521_v4 = vld [vmem:[#allocation11_spill] sm:$0xff]  ;;  %v5523_v33 = vld [vmem:[#allocation20_spill] sm:$0xff] }
 0x46f   : > { %v5522_v63 = vld [vmem:[#allocation21_spill] sm:$0xff]  ;;  %v5524_v19 = vld [vmem:[#allocation14_spill] sm:$0xff] }
 0x470   : > { %v4302_v13 = vadd.f32 %v1171_v16, %v1165_v21  ;;  %2915 = vtanh.f32 %v4300_v60  ;;  %v5525_v21 = vld [vmem:[#allocation15_spill] sm:$0xff]  ;;  %v5526_v16 = vld [vmem:[#allocation25_spill] sm:$0xff] }
 0x472   : > { %2917 = vtanh.f32 %v4302_v13 }
 0x476   : > { %v2916_v25 = vpop.eup %2915 }
 0x477   : > { %v4306_v11 = vmul.f32 %v2916_v25, %v1176_v37  ;;  %v5527_v37 = vld [vmem:[#allocation24_spill] sm:$0xff]  ;;  %v5528_v25 = vld [vmem:[#allocation18_spill] sm:$0xff] }
 0x478   : > { %v2918_v12 = vpop.eup %2917 }
 0x479   : > { %5514 = vst [vmem:[#allocation42_spill] sm:$0xff] %v4306_v11  ;;  %v4308_v20 = vmul.f32 %v2918_v12, %v1177_v18  ;;  %v5529_v18 = vld [vmem:[#allocation19_spill] sm:$0xff]  ;;  %v5530_v12 = vld [vmem:[#allocation29_spill] sm:$0xff] }
 0x47a   : > { %1188 = vst [vmem:[#allocation1] ss:$9 sm:$0xff] %v4306_v11  ;;  %v5533_v11 = vld [vmem:[#allocation22_spill] sm:$0xff] }
 0x47b   : > { %5515 = vst [vmem:[#allocation43_spill] sm:$0xff] %v4308_v20 }
 0x47c   : > { %1190 = vst [vmem:[#allocation1 + $0x1] ss:$9 sm:$0xff] %v4308_v20  ;;  %v5532_v20 = vld [vmem:[#allocation37_spill] sm:$0xff] }
 0x483   : > { %v1191_v22 = vld [vmem:[#allocation1] sm:$0xff] }
 0x484   : > { %1209 = vmatmul.f32.vlgmr.msra.gmra.mxu0 %v1191_v22  ;;  %1229 = vmatmul.f32.vlgmr.msra.gmra.mxu1 %v1191_v22 }
 0x485   : > { %1249 = vmatmul.f32.vlgmr.msra.gmra.mxu2 %v1191_v22  ;;  %1269 = vmatmul.f32.vlgmr.msra.gmra.mxu3 %v1191_v22  ;;  %v5531_v22 = vld [vmem:[#allocation28_spill] sm:$0xff] }
 0x486   : > { %1525 = vmatpush.msra.mxu0 %v3908_v26  ;;  %1545 = vmatpush.msra.mxu1 %v3911_v27 }
 0x487   : > { %1565 = vmatpush.msra.mxu2 %v3914_v28  ;;  %1585 = vmatpush.msra.mxu3 %v3917_v29 }
 0x488   : > { %1526 = vmatpush.msra.mxu0 %v3920_v30  ;;  %1546 = vmatpush.msra.mxu1 %v3923_v31 }
 0x489   : > { %1566 = vmatpush.msra.mxu2 %v3926_v32  ;;  %1586 = vmatpush.msra.mxu3 %v3929_v34 }
 0x48a   : > { %1527 = vmatpush.msra.mxu0 %v3932_v35  ;;  %1547 = vmatpush.msra.mxu1 %v3935_v36 }
 0x48b   : > { %1567 = vmatpush.msra.mxu2 %v3938_v39  ;;  %1587 = vmatpush.msra.mxu3 %v3941_v40 }
 0x48c   : > { %1528 = vmatpush.msra.mxu0 %v3944_v41  ;;  %1548 = vmatpush.msra.mxu1 %v3947_v42 }
 0x48d   : > { %1568 = vmatpush.msra.mxu2 %v3950_v43  ;;  %1588 = vmatpush.msra.mxu3 %v3953_v44 }
 0x48e   : > { %1529 = vmatpush.msra.mxu0 %v3956_v45  ;;  %1549 = vmatpush.msra.mxu1 %v3959_v46 }
 0x48f   : > { %1569 = vmatpush.msra.mxu2 %v3962_v47  ;;  %1589 = vmatpush.msra.mxu3 %v3965_v48 }
 0x490   : > { %1530 = vmatpush.msra.mxu0 %v3968_v49  ;;  %1550 = vmatpush.msra.mxu1 %v3971_v50 }
 0x491   : > { %1570 = vmatpush.msra.mxu2 %v3974_v51  ;;  %1590 = vmatpush.msra.mxu3 %v3977_v52 }
 0x492   : > { %1531 = vmatpush.msra.mxu0 %v3980_v53  ;;  %1551 = vmatpush.msra.mxu1 %v3983_v54 }
 0x493   : > { %1571 = vmatpush.msra.mxu2 %v3986_v57  ;;  %1591 = vmatpush.msra.mxu3 %v3989_v58 }
 0x494   : > { %1532 = vmatpush.msra.mxu0 %v3992_v61  ;;  %1552 = vmatpush.msra.mxu1 %v3995_v7 }
 0x495   : > { %1572 = vmatpush.msra.mxu2 %v3998_v9  ;;  %1592 = vmatpush.msra.mxu3 %v4001_v8 }
 0x496   : > { %1533 = vmatpush.msra.mxu0 %v4004_v14  ;;  %1553 = vmatpush.msra.mxu1 %v4007_v3 }
 0x497   : > { %1573 = vmatpush.msra.mxu2 %v4010_v10  ;;  %1593 = vmatpush.msra.mxu3 %v4013_v15 }
 0x498   : > { %1534 = vmatpush.msra.mxu0 %v4016_v59  ;;  %1554 = vmatpush.msra.mxu1 %v4019_v62 }
 0x499   : > { %1574 = vmatpush.msra.mxu2 %v4022_v1  ;;  %1594 = vmatpush.msra.mxu3 %v4025_v2 }
 0x49a   : > { %1535 = vmatpush.msra.mxu0 %v5516_v38  ;;  %1555 = vmatpush.msra.mxu1 %v5517_v17 }
 0x49b   : > { %1575 = vmatpush.msra.mxu2 %v5518_v24  ;;  %1595 = vmatpush.msra.mxu3 %v5519_v23  ;;  %v2807_v23 = vld [vmem:[%s3346_s7 + $0x46] ss:$8 sm:$0xf] }
 0x49c   : > { %1536 = vmatpush.msra.mxu0 %v5520_v5  ;;  %1556 = vmatpush.msra.mxu1 %v5521_v4  ;;  %v2806_v5 = vld [vmem:[%s3346_s7 + $0x6] ss:$8 sm:$0xf] }
 0x49d   : > { %1576 = vmatpush.msra.mxu2 %v5522_v63  ;;  %1596 = vmatpush.msra.mxu3 %v5523_v33 }
 0x49e   : > { %1537 = vmatpush.msra.mxu0 %v5524_v19  ;;  %1557 = vmatpush.msra.mxu1 %v5525_v21  ;;  %v5534_v19 = vld [vmem:[#allocation23_spill] sm:$0xff] }
 0x49f   : > { %1577 = vmatpush.msra.mxu2 %v5526_v16  ;;  %1597 = vmatpush.msra.mxu3 %v5527_v37  ;;  %v5535_v21 = vld [vmem:[#allocation31_spill] sm:$0xff]  ;;  %v5536_v16 = vld [vmem:[#allocation38_spill] sm:$0xff] }
 0x4a0   : > { %1538 = vmatpush.msra.mxu0 %v5528_v25  ;;  %1558 = vmatpush.msra.mxu1 %v5529_v18  ;;  %v5537_v37 = vld [vmem:[#allocation39_spill] sm:$0xff]  ;;  %v5538_v25 = vld [vmem:[#allocation30_spill] sm:$0xff] }
 0x4a1   : > { %1578 = vmatpush.msra.mxu2 %v5530_v12  ;;  %1598 = vmatpush.msra.mxu3 %v5531_v22  ;;  %v5539_v18 = vld [vmem:[#allocation26_spill] sm:$0xff] }
 0x4a2   : > { %1539 = vmatpush.msra.mxu0 %v5532_v20  ;;  %1559 = vmatpush.msra.mxu1 %v5533_v11 }
 0x4a3   : > { %1579 = vmatpush.msra.mxu2 %v5534_v19  ;;  %1599 = vmatpush.msra.mxu3 %v5535_v21 }
 0x4a4   : > { %1540 = vmatpush.msra.mxu0 %v5536_v16  ;;  %1560 = vmatpush.msra.mxu1 %v5537_v37 }
 0x4a5   : > { %1580 = vmatpush.msra.mxu2 %v5538_v25  ;;  %1600 = vmatpush.msra.mxu3 %v5539_v18 }
 0x501   : > { %v1230_v12 = vpop.f32.mrf.mxu1  ;;  %v1210_v11 = vpop.f32.mrf.mxu0 }
 0x502   : > { %v1277_v22 = vrot.slane %v1230_v12, 7 }
 0x504   : > { %v1280_v19 = vsel %vm393_vm1, %v1210_v11, %v1277_v22  ;;  %v1283_v21 = vsel %vm399_vm2, %v1210_v11, %v1277_v22 }
 0x508   : > { %v1250_v33 = vpop.f32.mrf.mxu2  ;;  %v1270_v63 = vpop.f32.mrf.mxu3 }
 0x509   : > { %v1278_v20 = vrot.slane %v1250_v33, 6  ;;  %v1279_v4 = vrot.slane %v1270_v63, 5 }
 0x50b   : > { %v1281_v16 = vsel %vm395_vm3, %v1278_v20, %v1279_v4  ;;  %v1284_v37 = vsel %vm401_vm0, %v1278_v20, %v1279_v4 }
 0x50c   : > { %v1282_v25 = vsel %vm397_vm4, %v1280_v19, %v1281_v16  ;;  %v1285_v18 = vsel %vm403_vm5, %v1283_v21, %v1284_v37 }
 0x50d   : > { %v1286_v12 = vrot.slane %v1285_v18, 1  ;;  %v1289_v24 = vadd.f32 %v2806_v5, %v1282_v25 }
 0x50f   : > { %v1290_v17 = vadd.f32 %v2807_v23, %v1286_v12  ;;  %v1291_v63 = vmul.f32 %v1289_v24, %v3694_v0 }
 0x511   : > { %v1292_v33 = vmul.f32 %v1290_v17, %v3696_v55  ;;  %2919 = vtanh.f32 %v1291_v63 }
 0x513   : > { %2921 = vtanh.f32 %v1292_v33 }
 0x517   : > { %v2920_v38 = vpop.eup %2919 }
 0x518   : > { %v1295_v11 = vmul.f32 %v2920_v38, %v3694_v0 }
 0x519   : > { %v2922_v22 = vpop.eup %2921 }
 0x51a   : > { %v1296_v20 = vmul.f32 %v2922_v22, %v3696_v55  ;;  %v1297_v4 = vadd.f32 %v1295_v11, %v3704_v56 }
 0x51c   : > { %v1298_v19 = vadd.f32 %v1296_v20, %v3707_v6  ;;  %v1301_v21 = vrot.slane %v1297_v4, 1  ;;  %v1307_v16 = vrot.slane %v1297_v4, 3  ;;  %v1317_v12 = vrot.slane %v1297_v4, 2  ;;  %v5540_v20 = vld [vmem:[#allocation32_spill] sm:$0xff] }
 0x51e   : > { %v1302_v5 = vrot.slane %v1298_v19, 1  ;;  %v1305_v23 = vmul.f32 %v1301_v21, %v4300_v60  ;;  %v1308_v24 = vrot.slane %v1298_v19, 3  ;;  %v1311_v37 = vmul.f32 %v1307_v16, %v1297_v4  ;;  %v5541_v21 = vld [vmem:[#allocation33_spill] sm:$0xff] }
 0x51f   : > { %v1318_v33 = vrot.slane %v1298_v19, 2 }
 0x520   : > { %v1306_v17 = vmul.f32 %v1302_v5, %v4302_v13  ;;  %v1312_v25 = vmul.f32 %v1308_v24, %v1298_v19  ;;  %v4392_v18 = vadd.f32 %v1311_v37, %v1305_v23  ;;  %v5574_v5 = vld [vmem:[#allocation42_spill] sm:$0xff]  ;;  %v5575_v23 = vld [vmem:[#allocation43_spill] sm:$0xff] }
 0x522   : > { %v4394_v38 = vadd.f32 %v1312_v25, %v1306_v17  ;;  %2923 = vtanh.f32 %v4392_v18 }
 0x524   : > { %2925 = vtanh.f32 %v4394_v38 }
 0x528   : > { %v2924_v63 = vpop.eup %2923 }
 0x529   : > { %v4398_v11 = vmul.f32 %v2924_v63, %v1317_v12 }
 0x52a   : > { %v2926_v22 = vpop.eup %2925 }
 0x52b   : > { %v4400_v60 = vmul.f32 %v2926_v22, %v1318_v33  ;;  %1329 = vst [vmem:[#allocation1] ss:$9 sm:$0xff] %v4398_v11 }
 0x52d   : > { %1331 = vst [vmem:[#allocation1 + $0x1] ss:$9 sm:$0xff] %v4400_v60 }
 0x534   : > { %v1332_v13 = vld [vmem:[#allocation1] sm:$0xff] }
 0x535   : > { %1464 = vst [vmem:[#allocation1] ss:$9 sm:$0xff] %v5540_v20  ;;  %1350 = vmatmul.f32.vlgmr.msrb.gmra.mxu0 %v1332_v13  ;;  %1370 = vmatmul.f32.vlgmr.msrb.gmra.mxu1 %v1332_v13 }
 0x536   : > { %1466 = vst [vmem:[#allocation1 + $0x1] ss:$9 sm:$0xff] %v5541_v21  ;;  %1390 = vmatmul.f32.vlgmr.msrb.gmra.mxu2 %v1332_v13  ;;  %1410 = vmatmul.f32.vlgmr.msrb.gmra.mxu3 %v1332_v13  ;;  %v2808_v13 = vld [vmem:[%s3346_s7 + $0x7] ss:$8 sm:$0xf] }
 0x537   : > { %1666 = vmatpush.msrb.mxu0 %v3908_v26  ;;  %1686 = vmatpush.msrb.mxu1 %v3911_v27  ;;  %v5542_v27 = vld [vmem:[#allocation34_spill] sm:$0xff] }
 0x538   : > { %1706 = vmatpush.msrb.mxu2 %v3914_v28  ;;  %1726 = vmatpush.msrb.mxu3 %v3917_v29  ;;  %v5543_v28 = vld [vmem:[#allocation35_spill] sm:$0xff] }
 0x539   : > { %1667 = vmatpush.msrb.mxu0 %v3920_v30  ;;  %1687 = vmatpush.msrb.mxu1 %v3923_v31  ;;  %v5544_v30 = vld [vmem:[#allocation13_spill] sm:$0xff]  ;;  %v5545_v31 = vld [vmem:[#allocation12_spill] sm:$0xff] }
 0x53a   : > { %1707 = vmatpush.msrb.mxu2 %v3926_v32  ;;  %1727 = vmatpush.msrb.mxu3 %v3929_v34  ;;  %v5546_v32 = vld [vmem:[#allocation8_spill] sm:$0xff]  ;;  %v5547_v34 = vld [vmem:[#allocation9_spill] sm:$0xff] }
 0x53b   : > { %1668 = vmatpush.msrb.mxu0 %v3932_v35  ;;  %1688 = vmatpush.msrb.mxu1 %v3935_v36  ;;  %v5548_v35 = vld [vmem:[#allocation17_spill] sm:$0xff]  ;;  %v5549_v36 = vld [vmem:[#allocation16_spill] sm:$0xff] }
 0x53c   : > { %1708 = vmatpush.msrb.mxu2 %v3938_v39  ;;  %1728 = vmatpush.msrb.mxu3 %v3941_v40  ;;  %v5550_v39 = vld [vmem:[#allocation10_spill] sm:$0xff]  ;;  %v5551_v40 = vld [vmem:[#allocation11_spill] sm:$0xff] }
 0x53d   : > { %v4418_v26 = vld [vmem:[#allocation1] sm:$0xff]  ;;  %1669 = vmatpush.msrb.mxu0 %v3944_v41  ;;  %1689 = vmatpush.msrb.mxu1 %v3947_v42  ;;  %v5552_v41 = vld [vmem:[#allocation21_spill] sm:$0xff]  ;;  %v5553_v42 = vld [vmem:[#allocation20_spill] sm:$0xff] }
 0x53e   : > { %1468 = vst [vmem:[#allocation1] ss:$9 sm:$0xff] %v5542_v27  ;;  %1709 = vmatpush.msrb.mxu2 %v3950_v43  ;;  %1729 = vmatpush.msrb.mxu3 %v3953_v44  ;;  %v5554_v44 = vld [vmem:[#allocation14_spill] sm:$0xff] }
 0x53f   : > { %1470 = vst [vmem:[#allocation1 + $0x1] ss:$9 sm:$0xff] %v5543_v28  ;;  %1670 = vmatpush.msrb.mxu0 %v3956_v45  ;;  %1690 = vmatpush.msrb.mxu1 %v3959_v46  ;;  %v5555_v45 = vld [vmem:[#allocation15_spill] sm:$0xff] }
 0x540   : > { %1710 = vmatpush.msrb.mxu2 %v3962_v47  ;;  %1730 = vmatpush.msrb.mxu3 %v3965_v48  ;;  %v5556_v46 = vld [vmem:[#allocation27_spill] sm:$0xff]  ;;  %v5557_v47 = vld [vmem:[#allocation25_spill] sm:$0xff]  ;;  %v5558_v48 = vld [vmem:[#allocation24_spill] sm:$0xff] }
 0x541   : > { %1671 = vmatpush.msrb.mxu0 %v3968_v49  ;;  %1691 = vmatpush.msrb.mxu1 %v3971_v50  ;;  %v5559_v49 = vld [vmem:[#allocation36_spill] sm:$0xff]  ;;  %v5560_v50 = vld [vmem:[#allocation18_spill] sm:$0xff] }
 0x542   : > { %1711 = vmatpush.msrb.mxu2 %v3974_v51  ;;  %1731 = vmatpush.msrb.mxu3 %v3977_v52  ;;  %v5561_v51 = vld [vmem:[#allocation19_spill] sm:$0xff]  ;;  %v5562_v52 = vld [vmem:[#allocation29_spill] sm:$0xff] }
 0x543   : > { %1672 = vmatpush.msrb.mxu0 %v3980_v53  ;;  %1692 = vmatpush.msrb.mxu1 %v3983_v54  ;;  %v5563_v53 = vld [vmem:[#allocation28_spill] sm:$0xff]  ;;  %v5564_v54 = vld [vmem:[#allocation37_spill] sm:$0xff] }
 0x544   : > { %1712 = vmatpush.msrb.mxu2 %v3986_v57  ;;  %1732 = vmatpush.msrb.mxu3 %v3989_v58  ;;  %v5565_v57 = vld [vmem:[#allocation22_spill] sm:$0xff]  ;;  %v5566_v58 = vld [vmem:[#allocation23_spill] sm:$0xff] }
 0x545   : > { %1673 = vmatpush.msrb.mxu0 %v3992_v61  ;;  %1693 = vmatpush.msrb.mxu1 %v3995_v7  ;;  %v5567_v61 = vld [vmem:[#allocation31_spill] sm:$0xff]  ;;  %v5568_v7 = vld [vmem:[#allocation38_spill] sm:$0xff] }
 0x546   : > { %v1471_v29 = vld [vmem:[#allocation1] sm:$0xff]  ;;  %1713 = vmatpush.msrb.mxu2 %v3998_v9  ;;  %1733 = vmatpush.msrb.mxu3 %v4001_v8 }
 0x547   : > { %1472 = vst [vmem:[#allocation1] ss:$9 sm:$0xff] %v5544_v30  ;;  %1674 = vmatpush.msrb.mxu0 %v4004_v14  ;;  %1694 = vmatpush.msrb.mxu1 %v4007_v3  ;;  %v5569_v9 = vld [vmem:[#allocation39_spill] sm:$0xff]  ;;  %v5570_v8 = vld [vmem:[#allocation30_spill] sm:$0xff]  ;;  %v1498_v3 = vrot.slane %v1471_v29, 6 }
 0x548   : > { %1474 = vst [vmem:[#allocation1 + $0x1] ss:$9 sm:$0xff] %v5545_v31  ;;  %1714 = vmatpush.msrb.mxu2 %v4010_v10  ;;  %1734 = vmatpush.msrb.mxu3 %v4013_v15  ;;  %v5571_v14 = vld [vmem:[#allocation26_spill] sm:$0xff]  ;;  %v5572_v15 = vld [vmem:[#allocation40_spill] sm:$0xff] }
 0x549   : > { %1675 = vmatpush.msrb.mxu0 %v4016_v59  ;;  %1695 = vmatpush.msrb.mxu1 %v4019_v62  ;;  %v2809_v28 = vld [vmem:[%s3346_s7 + $0x47] ss:$8 sm:$0xf] }
 0x54a   : > { %1715 = vmatpush.msrb.mxu2 %v4022_v1  ;;  %1735 = vmatpush.msrb.mxu3 %v4025_v2  ;;  %v5573_v1 = vld [vmem:[#allocation41_spill] sm:$0xff]  ;;  %v1504_v2 = vsel %vm397_vm4, %v4418_v26, %v1498_v3 }
 0x54b   : > { %1676 = vmatpush.msrb.mxu0 %v5546_v32  ;;  %1696 = vmatpush.msrb.mxu1 %v5547_v34 }
 0x54c   : > { %1716 = vmatpush.msrb.mxu2 %v5548_v35  ;;  %1736 = vmatpush.msrb.mxu3 %v5549_v36 }
 0x54d   : > { %1677 = vmatpush.msrb.mxu0 %v5550_v39  ;;  %1697 = vmatpush.msrb.mxu1 %v5551_v40 }
 0x54e   : > { %1717 = vmatpush.msrb.mxu2 %v5552_v41  ;;  %1737 = vmatpush.msrb.mxu3 %v5553_v42 }
 0x54f   : > { %v1475_v43 = vld [vmem:[#allocation1] sm:$0xff]  ;;  %1678 = vmatpush.msrb.mxu0 %v5554_v44  ;;  %1698 = vmatpush.msrb.mxu1 %v5555_v45 }
 0x550   : > { %1476 = vst [vmem:[#allocation1] ss:$9 sm:$0xff] %v5556_v46  ;;  %1718 = vmatpush.msrb.mxu2 %v5557_v47  ;;  %1738 = vmatpush.msrb.mxu3 %v5558_v48  ;;  %v1499_v59 = vrot.slane %v1475_v43, 4 }
 0x551   : > { %1478 = vst [vmem:[#allocation1 + $0x1] ss:$9 sm:$0xff] %v5559_v49  ;;  %1679 = vmatpush.msrb.mxu0 %v5560_v50  ;;  %1699 = vmatpush.msrb.mxu1 %v5561_v51 }
 0x552   : > { %1719 = vmatpush.msrb.mxu2 %v5562_v52  ;;  %1739 = vmatpush.msrb.mxu3 %v5563_v53 }
 0x553   : > { %1680 = vmatpush.msrb.mxu0 %v5564_v54  ;;  %1700 = vmatpush.msrb.mxu1 %v5565_v57 }
 0x554   : > { %1720 = vmatpush.msrb.mxu2 %v5566_v58  ;;  %1740 = vmatpush.msrb.mxu3 %v5567_v61 }
 0x555   : > { %1681 = vmatpush.msrb.mxu0 %v5568_v7  ;;  %1701 = vmatpush.msrb.mxu1 %v5569_v9 }
 0x556   : > { %1721 = vmatpush.msrb.mxu2 %v5570_v8  ;;  %1741 = vmatpush.msrb.mxu3 %v5571_v14 }
 0x558   : > { %v1479_v10 = vld [vmem:[#allocation1] sm:$0xff] }
 0x559   : > { %1480 = vst [vmem:[#allocation1] ss:$9 sm:$0xff] %v5572_v15  ;;  %v1500_v62 = vrot.slane %v1479_v10, 2 }
 0x55a   : > { %1482 = vst [vmem:[#allocation1 + $0x1] ss:$9 sm:$0xff] %v5573_v1 }
 0x55b   : > { %v1506_v4 = vsel %vm1505_vm6, %v1499_v59, %v1500_v62 }
 0x55c   : > { %v1508_v19 = vsel %vm1507_vm7, %v1504_v2, %v1506_v4  ;;  %v4515_v4 = vld [vmem:[#allocation5 + $0x1e0] sm:$0xff] }
 0x55d   : > { %1514 = vst [vmem:[%s3356_s17] sm:$0xff] %v1508_v19  ;;  %v4518_v19 = vld [vmem:[#allocation5 + $0x1e8] sm:$0xff] }
 0x561   : > { %v1483_v16 = vld [vmem:[#allocation1] sm:$0xff] }
 0x562   : > { %1484 = vst [vmem:[#allocation1] ss:$9 sm:$0xff] %v5574_v5  ;;  %v4521_v5 = vld [vmem:[#allocation5 + $0x1f0] sm:$0xff] }
 0x563   : > { %1486 = vst [vmem:[#allocation1 + $0x1] ss:$9 sm:$0xff] %v5575_v23  ;;  %v4527_v23 = vld [vmem:[#allocation5 + $0x1c0] sm:$0xff] }
 0x56a   : > { %v1487_v24 = vld [vmem:[#allocation1] sm:$0xff] }
 0x56b   : > { %1488 = vst [vmem:[#allocation1] ss:$9 sm:$0xff] %v4398_v11 }
 0x56c   : > { %1490 = vst [vmem:[#allocation1 + $0x1] ss:$9 sm:$0xff] %v4400_v60 }
 0x5b2   : > { %v1371_v37 = vpop.f32.mrf.mxu1  ;;  %v1351_v22 = vpop.f32.mrf.mxu0 }
 0x5b3   : > { %v1418_v17 = vrot.slane %v1371_v37, 7  ;;  %v4533_v37 = vld [vmem:[#allocation5 + $0x1d0] sm:$0xff] }
 0x5b5   : > { %v1421_v20 = vsel %vm393_vm1, %v1351_v22, %v1418_v17  ;;  %v1424_v21 = vsel %vm399_vm2, %v1351_v22, %v1418_v17  ;;  %v4536_v17 = vld [vmem:[#allocation5 + $0x1d8] sm:$0xff]  ;;  %v4551_v22 = vld [vmem:[#allocation5 + $0x180] sm:$0xff] }
 0x5b9   : > { %v1391_v25 = vpop.f32.mrf.mxu2  ;;  %v1411_v12 = vpop.f32.mrf.mxu3 }
 0x5ba   : > { %v1419_v63 = vrot.slane %v1391_v25, 6  ;;  %v1420_v33 = vrot.slane %v1411_v12, 5  ;;  %v4539_v25 = vld [vmem:[#allocation5 + $0x1a0] sm:$0xff]  ;;  %v4542_v12 = vld [vmem:[#allocation5 + $0x1a8] sm:$0xff] }
 0x5bc   : > { %v1422_v26 = vsel %vm395_vm3, %v1419_v63, %v1420_v33  ;;  %v1425_v27 = vsel %vm401_vm0, %v1419_v63, %v1420_v33  ;;  %v4545_v63 = vld [vmem:[#allocation5 + $0x1b0] sm:$0xff]  ;;  %v4548_v33 = vld [vmem:[#allocation5 + $0x1b8] sm:$0xff] }
 0x5bd   : > { %v1423_v11 = vsel %vm397_vm4, %v1421_v20, %v1422_v26  ;;  %v1426_v60 = vsel %vm403_vm5, %v1424_v21, %v1425_v27  ;;  %v4557_v20 = vld [vmem:[#allocation5 + $0x190] sm:$0xff]  ;;  %v4560_v21 = vld [vmem:[#allocation5 + $0x198] sm:$0xff]  ;;  %v4563_v26 = vld [vmem:[#allocation5 + $0x160] sm:$0xff] }
 0x5be   : > { %v1427_v29 = vrot.slane %v1426_v60, 1  ;;  %v1430_v30 = vadd.f32 %v2808_v13, %v1423_v11  ;;  %v4554_v13 = vld [vmem:[#allocation5 + $0x188] sm:$0xff]  ;;  %v4572_v11 = vld [vmem:[#allocation5 + $0x178] sm:$0xff]  ;;  %v4575_v60 = vld [vmem:[#allocation5 + $0x140] sm:$0xff] }
 0x5bf   : > { %v4566_v27 = vld [vmem:[#allocation5 + $0x168] sm:$0xff] }
 0x5c0   : > { %v1431_v31 = vadd.f32 %v2809_v28, %v1427_v29  ;;  %v1432_v32 = vmul.f32 %v1430_v30, %v3694_v0  ;;  %v4569_v28 = vld [vmem:[#allocation5 + $0x170] sm:$0xff]  ;;  %v4578_v29 = vld [vmem:[#allocation5 + $0x148] sm:$0xff] }
 0x5c1   : > { %v4581_v30 = vld [vmem:[#allocation5 + $0x150] sm:$0xff] }
 0x5c2   : > { %v1433_v34 = vmul.f32 %v1431_v31, %v3696_v55  ;;  %2927 = vtanh.f32 %v1432_v32  ;;  %v4584_v31 = vld [vmem:[#allocation5 + $0x158] sm:$0xff]  ;;  %v4587_v32 = vld [vmem:[#allocation5 + $0x120] sm:$0xff] }
 0x5c4   : > { %2929 = vtanh.f32 %v1433_v34  ;;  %v4590_v34 = vld [vmem:[#allocation5 + $0x128] sm:$0xff] }
 0x5c8   : > { %v2928_v35 = vpop.eup %2927 }
 0x5c9   : > { %v1436_v36 = vmul.f32 %v2928_v35, %v3694_v0  ;;  %v4593_v35 = vld [vmem:[#allocation5 + $0x130] sm:$0xff] }
 0x5ca   : > { %v2930_v39 = vpop.eup %2929 }
 0x5cb   : > { %v1437_v40 = vmul.f32 %v2930_v39, %v3696_v55  ;;  %v1438_v41 = vadd.f32 %v1436_v36, %v3704_v56  ;;  %v4596_v36 = vld [vmem:[#allocation5 + $0x138] sm:$0xff]  ;;  %v4599_v39 = vld [vmem:[#allocation5 + $0x100] sm:$0xff] }
 0x5cd   : > { %v1439_v42 = vadd.f32 %v1437_v40, %v3707_v6  ;;  %v1442_v43 = vrot.slane %v1438_v41, 1  ;;  %v1448_v44 = vrot.slane %v1438_v41, 3  ;;  %v1458_v53 = vrot.slane %v1438_v41, 2  ;;  %v4602_v40 = vld [vmem:[#allocation5 + $0x108] sm:$0xff] }
 0x5cf   : > { %v1443_v45 = vrot.slane %v1439_v42, 1  ;;  %v1446_v46 = vmul.f32 %v1442_v43, %v4392_v18  ;;  %v1449_v47 = vrot.slane %v1439_v42, 3  ;;  %v1452_v48 = vmul.f32 %v1448_v44, %v1438_v41  ;;  %v1491_v18 = vld [vmem:[#allocation1] sm:$0xff]  ;;  %v4611_v43 = vld [vmem:[#allocation5 + $0xe0] sm:$0xff]  ;;  %v4614_v44 = vld [vmem:[#allocation5 + $0xe8] sm:$0xff] }
 0x5d0   : > { %v1459_v58 = vrot.slane %v1439_v42, 2  ;;  %v1502_v10 = vrot.slane %v1491_v18, 4  ;;  %v4605_v41 = vld [vmem:[#allocation5 + $0x110] sm:$0xff]  ;;  %v4650_v18 = vld [vmem:[#allocation5 + $0x88] sm:$0xff] }
 0x5d1   : > { %v1447_v49 = vmul.f32 %v1443_v45, %v4394_v38  ;;  %v1453_v50 = vmul.f32 %v1449_v47, %v1439_v42  ;;  %v4505_v51 = vadd.f32 %v1452_v48, %v1446_v46  ;;  %v1501_v38 = vrot.slane %v1487_v24, 6  ;;  %v4530_v24 = vld [vmem:[#allocation5 + $0x1c8] sm:$0xff]  ;;  %v4608_v42 = vld [vmem:[#allocation5 + $0x118] sm:$0xff]  ;;  %v4617_v45 = vld [vmem:[#allocation5 + $0xf0] sm:$0xff]  ;;  %5581 = vst [vmem:[#allocation12_spill] sm:$0xff] %v4650_v18 }
 0x5d2   : > { %v4620_v46 = vld [vmem:[#allocation5 + $0xf8] sm:$0xff]  ;;  %v4623_v47 = vld [vmem:[#allocation5 + $0xc0] sm:$0xff]  ;;  %v4626_v48 = vld [vmem:[#allocation5 + $0xc8] sm:$0xff] }
 0x5d3   : > { %v4507_v52 = vadd.f32 %v1453_v50, %v1447_v49  ;;  %2931 = vtanh.f32 %v4505_v51  ;;  %v1509_v59 = vsel %vm397_vm4, %v1483_v16, %v1501_v38  ;;  %v4524_v16 = vld [vmem:[#allocation5 + $0x1f8] sm:$0xff]  ;;  %v4629_v49 = vld [vmem:[#allocation5 + $0xd0] sm:$0xff] }
 0x5d4   : > { %v4632_v50 = vld [vmem:[#allocation5 + $0xd8] sm:$0xff] }
 0x5d5   : > { %2933 = vtanh.f32 %v4507_v52  ;;  %v4656_v38 = vld [vmem:[#allocation5 + $0x98] sm:$0xff] }
 0x5d6   : > { %5583 = vst [vmem:[#allocation9_spill] sm:$0xff] %v4656_v38 }
 0x5d9   : > { %v2932_v57 = vpop.eup %2931 }
 0x5da   : > { %v1462_v61 = vmul.f32 %v2932_v57, %v1458_v53  ;;  %v4635_v53 = vld [vmem:[#allocation5 + $0xa0] sm:$0xff]  ;;  %v4638_v57 = vld [vmem:[#allocation5 + $0xa8] sm:$0xff] }
 0x5db   : > { %v2934_v8 = vpop.eup %2933  ;;  %5576 = vst [vmem:[#allocation32_spill] sm:$0xff] %v4635_v53 }
 0x5dc   : > { %v1463_v14 = vmul.f32 %v2934_v8, %v1459_v58  ;;  %1494 = vst [vmem:[#allocation1] ss:$9 sm:$0xff] %v1462_v61  ;;  %v4641_v58 = vld [vmem:[#allocation5 + $0xb0] sm:$0xff]  ;;  %v4647_v8 = vld [vmem:[#allocation5 + $0x80] sm:$0xff] }
 0x5dd   : > { %5577 = vst [vmem:[#allocation33_spill] sm:$0xff] %v4638_v57 }
 0x5de   : > { %1496 = vst [vmem:[#allocation1 + $0x1] ss:$9 sm:$0xff] %v1463_v14 }
 0x5df   : > { %5578 = vst [vmem:[#allocation34_spill] sm:$0xff] %v4641_v58 }
 0x5e0   : > { %5580 = vst [vmem:[#allocation13_spill] sm:$0xff] %v4647_v8 }
 0x5e5   : > { %v1497_v3 = vld [vmem:[#allocation1] sm:$0xff] }
 0x5e6   : > { %1520 = vst [vmem:[#allocation1] ss:$9 sm:$0xff] %v1462_v61  ;;  %v1503_v15 = vrot.slane %v1497_v3, 2  ;;  %v4644_v61 = vld [vmem:[#allocation5 + $0xb8] sm:$0xff]  ;;  %v4659_v3 = vld [vmem:[#allocation5 + $0x60] sm:$0xff] }
 0x5e7   : > { %1522 = vst [vmem:[#allocation1 + $0x1] ss:$9 sm:$0xff] %v1463_v14  ;;  %v4653_v14 = vld [vmem:[#allocation5 + $0x90] sm:$0xff] }
 0x5e8   : > { %v1510_v62 = vsel %vm1505_vm6, %v1502_v10, %v1503_v15  ;;  %5579 = vst [vmem:[#allocation35_spill] sm:$0xff] %v4644_v61  ;;  %v4662_v10 = vld [vmem:[#allocation5 + $0x68] sm:$0xff]  ;;  %v4665_v15 = vld [vmem:[#allocation5 + $0x70] sm:$0xff] }
 0x5e9   : > { %v1511_v1 = vsel %vm1507_vm7, %v1509_v59, %v1510_v62  ;;  %5582 = vst [vmem:[#allocation8_spill] sm:$0xff] %v4653_v14  ;;  %v4668_v59 = vld [vmem:[#allocation5 + $0x78] sm:$0xff]  ;;  %v4671_v62 = vld [vmem:[#allocation5 + $0x40] sm:$0xff] }
 0x5ea   : > { %1515 = vst [vmem:[%s3356_s17 + $0x8] sm:$0xff] %v1511_v1  ;;  %v4674_v1 = vld [vmem:[#allocation5 + $0x48] sm:$0xff] }
 0x5eb   : > { %5584 = vst [vmem:[#allocation17_spill] sm:$0xff] %v4659_v3 }
 0x5ec   : > { %5585 = vst [vmem:[#allocation16_spill] sm:$0xff] %v4662_v10 }
 0x5ed   : > { %5586 = vst [vmem:[#allocation10_spill] sm:$0xff] %v4665_v15 }
 0x5ee   : > { %v1523_v2 = vld [vmem:[#allocation1] sm:$0xff]  ;;  %5587 = vst [vmem:[#allocation11_spill] sm:$0xff] %v4668_v59 }
 0x5ef   : > { %1541 = vmatmul.f32.vlgmr.msra.gmra.mxu0 %v1523_v2  ;;  %1561 = vmatmul.f32.vlgmr.msra.gmra.mxu1 %v1523_v2  ;;  %5588 = vst [vmem:[#allocation21_spill] sm:$0xff] %v4671_v62 }
 0x5f0   : > { %1581 = vmatmul.f32.vlgmr.msra.gmra.mxu2 %v1523_v2  ;;  %1601 = vmatmul.f32.vlgmr.msra.gmra.mxu3 %v1523_v2  ;;  %5589 = vst [vmem:[#allocation20_spill] sm:$0xff] %v4674_v1  ;;  %v4677_v2 = vld [vmem:[#allocation5 + $0x50] sm:$0xff] }
 0x5f1   : > { %1807 = vmatpush.msra.mxu0 %v4515_v4  ;;  %1827 = vmatpush.msra.mxu1 %v4518_v19  ;;  %5590 = vst [vmem:[#allocation14_spill] sm:$0xff] %v4677_v2 }
 0x5f2   : > { %1847 = vmatpush.msra.mxu2 %v4521_v5  ;;  %1867 = vmatpush.msra.mxu3 %v4524_v16 }
 0x5f3   : > { %1808 = vmatpush.msra.mxu0 %v4527_v23  ;;  %1828 = vmatpush.msra.mxu1 %v4530_v24 }
 0x5f4   : > { %1848 = vmatpush.msra.mxu2 %v4533_v37  ;;  %1868 = vmatpush.msra.mxu3 %v4536_v17 }
 0x5f5   : > { %1809 = vmatpush.msra.mxu0 %v4539_v25  ;;  %1829 = vmatpush.msra.mxu1 %v4542_v12 }
 0x5f6   : > { %1849 = vmatpush.msra.mxu2 %v4545_v63  ;;  %1869 = vmatpush.msra.mxu3 %v4548_v33 }
 0x5f7   : > { %1810 = vmatpush.msra.mxu0 %v4551_v22  ;;  %1830 = vmatpush.msra.mxu1 %v4554_v13 }
 0x5f8   : > { %1850 = vmatpush.msra.mxu2 %v4557_v20  ;;  %1870 = vmatpush.msra.mxu3 %v4560_v21 }
 0x5f9   : > { %1811 = vmatpush.msra.mxu0 %v4563_v26  ;;  %1831 = vmatpush.msra.mxu1 %v4566_v27 }
 0x5fa   : > { %1851 = vmatpush.msra.mxu2 %v4569_v28  ;;  %1871 = vmatpush.msra.mxu3 %v4572_v11 }
 0x5fb   : > { %1812 = vmatpush.msra.mxu0 %v4575_v60  ;;  %1832 = vmatpush.msra.mxu1 %v4578_v29 }
 0x5fc   : > { %1852 = vmatpush.msra.mxu2 %v4581_v30  ;;  %1872 = vmatpush.msra.mxu3 %v4584_v31 }
 0x5fd   : > { %1813 = vmatpush.msra.mxu0 %v4587_v32  ;;  %1833 = vmatpush.msra.mxu1 %v4590_v34 }
 0x5fe   : > { %1853 = vmatpush.msra.mxu2 %v4593_v35  ;;  %1873 = vmatpush.msra.mxu3 %v4596_v36 }
 0x5ff   : > { %1814 = vmatpush.msra.mxu0 %v4599_v39  ;;  %1834 = vmatpush.msra.mxu1 %v4602_v40 }
 0x600   : > { %1854 = vmatpush.msra.mxu2 %v4605_v41  ;;  %1874 = vmatpush.msra.mxu3 %v4608_v42 }
 0x601   : > { %1815 = vmatpush.msra.mxu0 %v4611_v43  ;;  %1835 = vmatpush.msra.mxu1 %v4614_v44 }
 0x602   : > { %1855 = vmatpush.msra.mxu2 %v4617_v45  ;;  %1875 = vmatpush.msra.mxu3 %v4620_v46 }
 0x603   : > { %1816 = vmatpush.msra.mxu0 %v4623_v47  ;;  %1836 = vmatpush.msra.mxu1 %v4626_v48 }
 0x604   : > { %1856 = vmatpush.msra.mxu2 %v4629_v49  ;;  %1876 = vmatpush.msra.mxu3 %v4632_v50 }
 0x605   : > { %1817 = vmatpush.msra.mxu0 %v4635_v53  ;;  %1837 = vmatpush.msra.mxu1 %v4638_v57 }
 0x606   : > { %1857 = vmatpush.msra.mxu2 %v4641_v58  ;;  %1877 = vmatpush.msra.mxu3 %v4644_v61 }
 0x607   : > { %1818 = vmatpush.msra.mxu0 %v4647_v8  ;;  %1838 = vmatpush.msra.mxu1 %v4650_v18  ;;  %v2811_v8 = vld [vmem:[%s3346_s7 + $0x60] ss:$8 sm:$0xf] }
 0x608   : > { %1858 = vmatpush.msra.mxu2 %v4653_v14  ;;  %1878 = vmatpush.msra.mxu3 %v4656_v38  ;;  %v2810_v14 = vld [vmem:[%s3346_s7 + $0x20] ss:$8 sm:$0xf] }
 0x609   : > { %1819 = vmatpush.msra.mxu0 %v4659_v3  ;;  %1839 = vmatpush.msra.mxu1 %v4662_v10  ;;  %v4680_v10 = vld [vmem:[#allocation5 + $0x58] sm:$0xff] }
 0x60a   : > { %1859 = vmatpush.msra.mxu2 %v4665_v15  ;;  %1879 = vmatpush.msra.mxu3 %v4668_v59  ;;  %5591 = vst [vmem:[#allocation15_spill] sm:$0xff] %v4680_v10  ;;  %v4684_v15 = vld [vmem:[#allocation5 + $0x28] sm:$0xff]  ;;  %v4687_v59 = vld [vmem:[#allocation5 + $0x30] sm:$0xff] }
 0x60b   : > { %1820 = vmatpush.msra.mxu0 %v4671_v62  ;;  %1840 = vmatpush.msra.mxu1 %v4674_v1  ;;  %5592 = vst [vmem:[#allocation27_spill] sm:$0xff] %v4684_v15  ;;  %v4690_v1 = vld [vmem:[#allocation5 + $0x38] sm:$0xff] }
 0x60c   : > { %1860 = vmatpush.msra.mxu2 %v4677_v2  ;;  %1880 = vmatpush.msra.mxu3 %v4680_v10  ;;  %5593 = vst [vmem:[#allocation25_spill] sm:$0xff] %v4687_v59  ;;  %v4695_v10 = vld [vmem:[#allocation5 + $0x10] sm:$0xff] }
 0x60d   : > { %1821 = vmatpush.msra.mxu0 %v5564_v54  ;;  %1841 = vmatpush.msra.mxu1 %v4684_v15  ;;  %5594 = vst [vmem:[#allocation24_spill] sm:$0xff] %v4690_v1  ;;  %v4698_v54 = vld [vmem:[#allocation5 + $0x18] sm:$0xff] }
 0x60e   : > { %1861 = vmatpush.msra.mxu2 %v4687_v59  ;;  %1881 = vmatpush.msra.mxu3 %v4690_v1  ;;  %5595 = vst [vmem:[#allocation36_spill] sm:$0xff] %v4695_v10 }
 0x60f   : > { %1822 = vmatpush.msra.mxu0 %v5568_v7  ;;  %1842 = vmatpush.msra.mxu1 %v5569_v9  ;;  %5596 = vst [vmem:[#allocation18_spill] sm:$0xff] %v4698_v54 }
 0x610   : > { %1862 = vmatpush.msra.mxu2 %v4695_v10  ;;  %1882 = vmatpush.msra.mxu3 %v4698_v54 }
 0x66c   : > { %v1562_v15 = vpop.f32.mrf.mxu1  ;;  %v1542_v1 = vpop.f32.mrf.mxu0 }
 0x66d   : > { %v1609_v59 = vrot.slane %v1562_v15, 7 }
 0x66f   : > { %v1612_v7 = vsel %vm393_vm1, %v1542_v1, %v1609_v59  ;;  %v1615_v9 = vsel %vm399_vm2, %v1542_v1, %v1609_v59 }
 0x673   : > { %v1582_v2 = vpop.f32.mrf.mxu2  ;;  %v1602_v62 = vpop.f32.mrf.mxu3 }
 0x674   : > { %v1610_v3 = vrot.slane %v1582_v2, 6  ;;  %v1611_v38 = vrot.slane %v1602_v62, 5 }
 0x676   : > { %v1613_v18 = vsel %vm395_vm3, %v1610_v3, %v1611_v38  ;;  %v1616_v10 = vsel %vm401_vm0, %v1610_v3, %v1611_v38 }
 0x677   : > { %v1614_v61 = vsel %vm397_vm4, %v1612_v7, %v1613_v18  ;;  %v1617_v54 = vsel %vm403_vm5, %v1615_v9, %v1616_v10 }
 0x678   : > { %v1618_v15 = vrot.slane %v1617_v54, 1  ;;  %v1621_v58 = vadd.f32 %v2810_v14, %v1614_v61 }
 0x67a   : > { %v1622_v57 = vadd.f32 %v2811_v8, %v1618_v15  ;;  %v1623_v62 = vmul.f32 %v1621_v58, %v3694_v0 }
 0x67c   : > { %v1624_v2 = vmul.f32 %v1622_v57, %v3696_v55  ;;  %2935 = vtanh.f32 %v1623_v62 }
 0x67e   : > { %2937 = vtanh.f32 %v1624_v2 }
 0x682   : > { %v2936_v53 = vpop.eup %2935 }
 0x683   : > { %v1627_v59 = vmul.f32 %v2936_v53, %v3694_v0 }
 0x684   : > { %v2938_v1 = vpop.eup %2937 }
 0x685   : > { %v1628_v38 = vmul.f32 %v2938_v1, %v3696_v55  ;;  %v1629_v3 = vadd.f32 %v1627_v59, %v3704_v56 }
 0x687   : > { %v1630_v18 = vadd.f32 %v1628_v38, %v3707_v6  ;;  %v1633_v10 = vrot.slane %v1629_v3, 1  ;;  %v1639_v54 = vrot.slane %v1629_v3, 3  ;;  %v1649_v15 = vrot.slane %v1629_v3, 2  ;;  %v5599_v38 = vld [vmem:[#allocation32_spill] sm:$0xff] }
 0x689   : > { %v1634_v61 = vrot.slane %v1630_v18, 1  ;;  %v1637_v8 = vmul.f32 %v1633_v10, %v4505_v51  ;;  %v1640_v58 = vrot.slane %v1630_v18, 3  ;;  %v1643_v14 = vmul.f32 %v1639_v54, %v1629_v3  ;;  %v5600_v3 = vld [vmem:[#allocation33_spill] sm:$0xff]  ;;  %v5602_v10 = vld [vmem:[#allocation35_spill] sm:$0xff] }
 0x68a   : > { %v1650_v2 = vrot.slane %v1630_v18, 2  ;;  %v5603_v54 = vld [vmem:[#allocation13_spill] sm:$0xff] }
 0x68b   : > { %v1638_v57 = vmul.f32 %v1634_v61, %v4507_v52  ;;  %v1644_v7 = vmul.f32 %v1640_v58, %v1630_v18  ;;  %v4717_v9 = vadd.f32 %v1643_v14, %v1637_v8  ;;  %v5601_v18 = vld [vmem:[#allocation34_spill] sm:$0xff]  ;;  %v5604_v61 = vld [vmem:[#allocation12_spill] sm:$0xff]  ;;  %v5606_v58 = vld [vmem:[#allocation9_spill] sm:$0xff] }
 0x68c   : > { %v5605_v8 = vld [vmem:[#allocation8_spill] sm:$0xff]  ;;  %v5607_v14 = vld [vmem:[#allocation17_spill] sm:$0xff] }
 0x68d   : > { %v4719_v53 = vadd.f32 %v1644_v7, %v1638_v57  ;;  %2939 = vtanh.f32 %v4717_v9  ;;  %v5608_v57 = vld [vmem:[#allocation16_spill] sm:$0xff]  ;;  %v5609_v7 = vld [vmem:[#allocation10_spill] sm:$0xff] }
 0x68f   : > { %2941 = vtanh.f32 %v4719_v53 }
 0x693   : > { %v2940_v62 = vpop.eup %2939 }
 0x694   : > { %v4723_v59 = vmul.f32 %v2940_v62, %v1649_v15  ;;  %v5610_v15 = vld [vmem:[#allocation11_spill] sm:$0xff]  ;;  %v5611_v62 = vld [vmem:[#allocation21_spill] sm:$0xff] }
 0x695   : > { %v2942_v1 = vpop.eup %2941 }
 0x696   : > { %5597 = vst [vmem:[#allocation19_spill] sm:$0xff] %v4723_v59  ;;  %v4725_v51 = vmul.f32 %v2942_v1, %v1650_v2  ;;  %v5612_v2 = vld [vmem:[#allocation20_spill] sm:$0xff]  ;;  %v5613_v1 = vld [vmem:[#allocation14_spill] sm:$0xff] }
 0x697   : > { %1661 = vst [vmem:[#allocation1] ss:$9 sm:$0xff] %v4723_v59  ;;  %v5616_v59 = vld [vmem:[#allocation27_spill] sm:$0xff] }
 0x698   : > { %5598 = vst [vmem:[#allocation29_spill] sm:$0xff] %v4725_v51 }
 0x699   : > { %1663 = vst [vmem:[#allocation1 + $0x1] ss:$9 sm:$0xff] %v4725_v51  ;;  %v4785_v51 = vld [vmem:[#allocation5 + $0x20] sm:$0xff] }
 0x69a   : > { %5615 = vst [vmem:[#allocation28_spill] sm:$0xff] %v4785_v51 }
 0x6a0   : > { %v1664_v52 = vld [vmem:[#allocation1] sm:$0xff] }
 0x6a1   : > { %1682 = vmatmul.f32.vlgmr.msrb.gmra.mxu0 %v1664_v52  ;;  %1702 = vmatmul.f32.vlgmr.msrb.gmra.mxu1 %v1664_v52 }
 0x6a2   : > { %1722 = vmatmul.f32.vlgmr.msrb.gmra.mxu2 %v1664_v52  ;;  %1742 = vmatmul.f32.vlgmr.msrb.gmra.mxu3 %v1664_v52  ;;  %v5614_v52 = vld [vmem:[#allocation15_spill] sm:$0xff] }
 0x6a3   : > { %1948 = vmatpush.msrb.mxu0 %v4515_v4  ;;  %1968 = vmatpush.msrb.mxu1 %v4518_v19 }
 0x6a4   : > { %1988 = vmatpush.msrb.mxu2 %v4521_v5  ;;  %2008 = vmatpush.msrb.mxu3 %v4524_v16 }
 0x6a5   : > { %1949 = vmatpush.msrb.mxu0 %v4527_v23  ;;  %1969 = vmatpush.msrb.mxu1 %v4530_v24 }
 0x6a6   : > { %1989 = vmatpush.msrb.mxu2 %v4533_v37  ;;  %2009 = vmatpush.msrb.mxu3 %v4536_v17 }
 0x6a7   : > { %1950 = vmatpush.msrb.mxu0 %v4539_v25  ;;  %1970 = vmatpush.msrb.mxu1 %v4542_v12 }
 0x6a8   : > { %1990 = vmatpush.msrb.mxu2 %v4545_v63  ;;  %2010 = vmatpush.msrb.mxu3 %v4548_v33 }
 0x6a9   : > { %1951 = vmatpush.msrb.mxu0 %v4551_v22  ;;  %1971 = vmatpush.msrb.mxu1 %v4554_v13 }
 0x6aa   : > { %1991 = vmatpush.msrb.mxu2 %v4557_v20  ;;  %2011 = vmatpush.msrb.mxu3 %v4560_v21 }
 0x6ab   : > { %1952 = vmatpush.msrb.mxu0 %v4563_v26  ;;  %1972 = vmatpush.msrb.mxu1 %v4566_v27 }
 0x6ac   : > { %1992 = vmatpush.msrb.mxu2 %v4569_v28  ;;  %2012 = vmatpush.msrb.mxu3 %v4572_v11 }
 0x6ad   : > { %1953 = vmatpush.msrb.mxu0 %v4575_v60  ;;  %1973 = vmatpush.msrb.mxu1 %v4578_v29 }
 0x6ae   : > { %1993 = vmatpush.msrb.mxu2 %v4581_v30  ;;  %2013 = vmatpush.msrb.mxu3 %v4584_v31 }
 0x6af   : > { %1954 = vmatpush.msrb.mxu0 %v4587_v32  ;;  %1974 = vmatpush.msrb.mxu1 %v4590_v34 }
 0x6b0   : > { %1994 = vmatpush.msrb.mxu2 %v4593_v35  ;;  %2014 = vmatpush.msrb.mxu3 %v4596_v36 }
 0x6b1   : > { %1955 = vmatpush.msrb.mxu0 %v4599_v39  ;;  %1975 = vmatpush.msrb.mxu1 %v4602_v40 }
 0x6b2   : > { %1995 = vmatpush.msrb.mxu2 %v4605_v41  ;;  %2015 = vmatpush.msrb.mxu3 %v4608_v42 }
 0x6b3   : > { %1956 = vmatpush.msrb.mxu0 %v4611_v43  ;;  %1976 = vmatpush.msrb.mxu1 %v4614_v44 }
 0x6b4   : > { %1996 = vmatpush.msrb.mxu2 %v4617_v45  ;;  %2016 = vmatpush.msrb.mxu3 %v4620_v46 }
 0x6b5   : > { %1957 = vmatpush.msrb.mxu0 %v4623_v47  ;;  %1977 = vmatpush.msrb.mxu1 %v4626_v48 }
 0x6b6   : > { %1997 = vmatpush.msrb.mxu2 %v4629_v49  ;;  %2017 = vmatpush.msrb.mxu3 %v4632_v50 }
 0x6b7   : > { %1958 = vmatpush.msrb.mxu0 %v5599_v38  ;;  %1978 = vmatpush.msrb.mxu1 %v5600_v3 }
 0x6b8   : > { %1998 = vmatpush.msrb.mxu2 %v5601_v18  ;;  %2018 = vmatpush.msrb.mxu3 %v5602_v10  ;;  %v2813_v10 = vld [vmem:[%s3346_s7 + $0x61] ss:$8 sm:$0xf] }
 0x6b9   : > { %1959 = vmatpush.msrb.mxu0 %v5603_v54  ;;  %1979 = vmatpush.msrb.mxu1 %v5604_v61 }
 0x6ba   : > { %1999 = vmatpush.msrb.mxu2 %v5605_v8  ;;  %2019 = vmatpush.msrb.mxu3 %v5606_v58  ;;  %v2812_v8 = vld [vmem:[%s3346_s7 + $0x21] ss:$8 sm:$0xf] }
 0x6bb   : > { %1960 = vmatpush.msrb.mxu0 %v5607_v14  ;;  %1980 = vmatpush.msrb.mxu1 %v5608_v57  ;;  %v5617_v14 = vld [vmem:[#allocation25_spill] sm:$0xff] }
 0x6bc   : > { %2000 = vmatpush.msrb.mxu2 %v5609_v7  ;;  %2020 = vmatpush.msrb.mxu3 %v5610_v15  ;;  %v5618_v7 = vld [vmem:[#allocation24_spill] sm:$0xff] }
 0x6bd   : > { %1961 = vmatpush.msrb.mxu0 %v5611_v62  ;;  %1981 = vmatpush.msrb.mxu1 %v5612_v2  ;;  %v4791_v15 = vld [vmem:[#allocation5] sm:$0xff]  ;;  %v4794_v2 = vld [vmem:[#allocation5 + $0x8] sm:$0xff] }
 0x6be   : > { %2001 = vmatpush.msrb.mxu2 %v5613_v1  ;;  %2021 = vmatpush.msrb.mxu3 %v5614_v52  ;;  %5619 = vst [vmem:[#allocation37_spill] sm:$0xff] %v4791_v15  ;;  %v5621_v52 = vld [vmem:[#allocation36_spill] sm:$0xff]  ;;  %v5622_v1 = vld [vmem:[#allocation18_spill] sm:$0xff] }
 0x6bf   : > { %1962 = vmatpush.msrb.mxu0 %v4785_v51  ;;  %1982 = vmatpush.msrb.mxu1 %v5616_v59  ;;  %5620 = vst [vmem:[#allocation22_spill] sm:$0xff] %v4794_v2 }
 0x6c0   : > { %2002 = vmatpush.msrb.mxu2 %v5617_v14  ;;  %2022 = vmatpush.msrb.mxu3 %v5618_v7 }
 0x6c1   : > { %1963 = vmatpush.msrb.mxu0 %v4791_v15  ;;  %1983 = vmatpush.msrb.mxu1 %v4794_v2 }
 0x6c2   : > { %2003 = vmatpush.msrb.mxu2 %v5621_v52  ;;  %2023 = vmatpush.msrb.mxu3 %v5622_v1 }
 0x71e   : > { %v1703_v51 = vpop.f32.mrf.mxu1  ;;  %v1683_v7 = vpop.f32.mrf.mxu0 }
 0x71f   : > { %v1750_v59 = vrot.slane %v1703_v51, 7 }
 0x721   : > { %v1753_v61 = vsel %vm393_vm1, %v1683_v7, %v1750_v59  ;;  %v1756_v15 = vsel %vm399_vm2, %v1683_v7, %v1750_v59 }
 0x725   : > { %v1723_v62 = vpop.f32.mrf.mxu2  ;;  %v1743_v57 = vpop.f32.mrf.mxu3 }
 0x726   : > { %v1751_v14 = vrot.slane %v1723_v62, 6  ;;  %v1752_v58 = vrot.slane %v1743_v57, 5 }
 0x728   : > { %v1754_v54 = vsel %vm395_vm3, %v1751_v14, %v1752_v58  ;;  %v1757_v2 = vsel %vm401_vm0, %v1751_v14, %v1752_v58 }
 0x729   : > { %v1755_v52 = vsel %vm397_vm4, %v1753_v61, %v1754_v54  ;;  %v1758_v1 = vsel %vm403_vm5, %v1756_v15, %v1757_v2 }
 0x72a   : > { %v1759_v51 = vrot.slane %v1758_v1, 1  ;;  %v1762_v18 = vadd.f32 %v2812_v8, %v1755_v52 }
 0x72c   : > { %v1763_v3 = vadd.f32 %v2813_v10, %v1759_v51  ;;  %v1764_v57 = vmul.f32 %v1762_v18, %v3694_v0 }
 0x72e   : > { %v1765_v62 = vmul.f32 %v1763_v3, %v3696_v55  ;;  %2943 = vtanh.f32 %v1764_v57 }
 0x730   : > { %2945 = vtanh.f32 %v1765_v62 }
 0x734   : > { %v2944_v38 = vpop.eup %2943 }
 0x735   : > { %v1768_v59 = vmul.f32 %v2944_v38, %v3694_v0 }
 0x736   : > { %v2946_v7 = vpop.eup %2945 }
 0x737   : > { %v1769_v58 = vmul.f32 %v2946_v7, %v3696_v55  ;;  %v1770_v14 = vadd.f32 %v1768_v59, %v3704_v56 }
 0x739   : > { %v1771_v54 = vadd.f32 %v1769_v58, %v3707_v6  ;;  %v1774_v61 = vrot.slane %v1770_v14, 1  ;;  %v1780_v15 = vrot.slane %v1770_v14, 3  ;;  %v1790_v51 = vrot.slane %v1770_v14, 2  ;;  %v5625_v58 = vld [vmem:[#allocation32_spill] sm:$0xff] }
 0x73b   : > { %v1775_v8 = vrot.slane %v1771_v54, 1  ;;  %v1778_v10 = vmul.f32 %v1774_v61, %v4717_v9  ;;  %v1781_v18 = vrot.slane %v1771_v54, 3  ;;  %v1784_v2 = vmul.f32 %v1780_v15, %v1770_v14  ;;  %v5626_v14 = vld [vmem:[#allocation33_spill] sm:$0xff]  ;;  %v5628_v61 = vld [vmem:[#allocation35_spill] sm:$0xff] }
 0x73c   : > { %v1791_v62 = vrot.slane %v1771_v54, 2  ;;  %v5629_v15 = vld [vmem:[#allocation13_spill] sm:$0xff] }
 0x73d   : > { %v1779_v3 = vmul.f32 %v1775_v8, %v4719_v53  ;;  %v1785_v1 = vmul.f32 %v1781_v18, %v1771_v54  ;;  %v4815_v52 = vadd.f32 %v1784_v2, %v1778_v10  ;;  %v5627_v54 = vld [vmem:[#allocation34_spill] sm:$0xff]  ;;  %v5630_v8 = vld [vmem:[#allocation12_spill] sm:$0xff]  ;;  %v5632_v18 = vld [vmem:[#allocation9_spill] sm:$0xff] }
 0x73e   : > { %v5631_v10 = vld [vmem:[#allocation8_spill] sm:$0xff]  ;;  %v5633_v2 = vld [vmem:[#allocation17_spill] sm:$0xff] }
 0x73f   : > { %v4817_v38 = vadd.f32 %v1785_v1, %v1779_v3  ;;  %2947 = vtanh.f32 %v4815_v52  ;;  %v5634_v3 = vld [vmem:[#allocation16_spill] sm:$0xff]  ;;  %v5635_v1 = vld [vmem:[#allocation10_spill] sm:$0xff] }
 0x741   : > { %2949 = vtanh.f32 %v4817_v38 }
 0x745   : > { %v2948_v57 = vpop.eup %2947 }
 0x746   : > { %v4821_v59 = vmul.f32 %v2948_v57, %v1790_v51  ;;  %v5636_v51 = vld [vmem:[#allocation11_spill] sm:$0xff]  ;;  %v5637_v57 = vld [vmem:[#allocation21_spill] sm:$0xff] }
 0x747   : > { %v2950_v7 = vpop.eup %2949 }
 0x748   : > { %5623 = vst [vmem:[#allocation23_spill] sm:$0xff] %v4821_v59  ;;  %v4823_v9 = vmul.f32 %v2950_v7, %v1791_v62  ;;  %v5638_v62 = vld [vmem:[#allocation20_spill] sm:$0xff]  ;;  %v5639_v7 = vld [vmem:[#allocation14_spill] sm:$0xff] }
 0x749   : > { %1802 = vst [vmem:[#allocation1] ss:$9 sm:$0xff] %v4821_v59  ;;  %v5642_v59 = vld [vmem:[#allocation27_spill] sm:$0xff] }
 0x74a   : > { %5624 = vst [vmem:[#allocation31_spill] sm:$0xff] %v4823_v9 }
 0x74b   : > { %1804 = vst [vmem:[#allocation1 + $0x1] ss:$9 sm:$0xff] %v4823_v9  ;;  %v5641_v9 = vld [vmem:[#allocation28_spill] sm:$0xff] }
 0x752   : > { %v1805_v53 = vld [vmem:[#allocation1] sm:$0xff] }
 0x753   : > { %1823 = vmatmul.f32.vlgmr.msra.gmra.mxu0 %v1805_v53  ;;  %1843 = vmatmul.f32.vlgmr.msra.gmra.mxu1 %v1805_v53 }
 0x754   : > { %1863 = vmatmul.f32.vlgmr.msra.gmra.mxu2 %v1805_v53  ;;  %1883 = vmatmul.f32.vlgmr.msra.gmra.mxu3 %v1805_v53  ;;  %v5640_v53 = vld [vmem:[#allocation15_spill] sm:$0xff] }
 0x755   : > { %2089 = vmatpush.msra.mxu0 %v4515_v4  ;;  %2109 = vmatpush.msra.mxu1 %v4518_v19 }
 0x756   : > { %2129 = vmatpush.msra.mxu2 %v4521_v5  ;;  %2149 = vmatpush.msra.mxu3 %v4524_v16 }
 0x757   : > { %2090 = vmatpush.msra.mxu0 %v4527_v23  ;;  %2110 = vmatpush.msra.mxu1 %v4530_v24 }
 0x758   : > { %2130 = vmatpush.msra.mxu2 %v4533_v37  ;;  %2150 = vmatpush.msra.mxu3 %v4536_v17 }
 0x759   : > { %2091 = vmatpush.msra.mxu0 %v4539_v25  ;;  %2111 = vmatpush.msra.mxu1 %v4542_v12 }
 0x75a   : > { %2131 = vmatpush.msra.mxu2 %v4545_v63  ;;  %2151 = vmatpush.msra.mxu3 %v4548_v33 }
 0x75b   : > { %2092 = vmatpush.msra.mxu0 %v4551_v22  ;;  %2112 = vmatpush.msra.mxu1 %v4554_v13 }
 0x75c   : > { %2132 = vmatpush.msra.mxu2 %v4557_v20  ;;  %2152 = vmatpush.msra.mxu3 %v4560_v21 }
 0x75d   : > { %2093 = vmatpush.msra.mxu0 %v4563_v26  ;;  %2113 = vmatpush.msra.mxu1 %v4566_v27 }
 0x75e   : > { %2133 = vmatpush.msra.mxu2 %v4569_v28  ;;  %2153 = vmatpush.msra.mxu3 %v4572_v11 }
 0x75f   : > { %2094 = vmatpush.msra.mxu0 %v4575_v60  ;;  %2114 = vmatpush.msra.mxu1 %v4578_v29 }
 0x760   : > { %2134 = vmatpush.msra.mxu2 %v4581_v30  ;;  %2154 = vmatpush.msra.mxu3 %v4584_v31 }
 0x761   : > { %2095 = vmatpush.msra.mxu0 %v4587_v32  ;;  %2115 = vmatpush.msra.mxu1 %v4590_v34 }
 0x762   : > { %2135 = vmatpush.msra.mxu2 %v4593_v35  ;;  %2155 = vmatpush.msra.mxu3 %v4596_v36 }
 0x763   : > { %2096 = vmatpush.msra.mxu0 %v4599_v39  ;;  %2116 = vmatpush.msra.mxu1 %v4602_v40 }
 0x764   : > { %2136 = vmatpush.msra.mxu2 %v4605_v41  ;;  %2156 = vmatpush.msra.mxu3 %v4608_v42 }
 0x765   : > { %2097 = vmatpush.msra.mxu0 %v4611_v43  ;;  %2117 = vmatpush.msra.mxu1 %v4614_v44 }
 0x766   : > { %2137 = vmatpush.msra.mxu2 %v4617_v45  ;;  %2157 = vmatpush.msra.mxu3 %v4620_v46 }
 0x767   : > { %2098 = vmatpush.msra.mxu0 %v4623_v47  ;;  %2118 = vmatpush.msra.mxu1 %v4626_v48 }
 0x768   : > { %2138 = vmatpush.msra.mxu2 %v4629_v49  ;;  %2158 = vmatpush.msra.mxu3 %v4632_v50 }
 0x769   : > { %2099 = vmatpush.msra.mxu0 %v5625_v58  ;;  %2119 = vmatpush.msra.mxu1 %v5626_v14 }
 0x76a   : > { %2139 = vmatpush.msra.mxu2 %v5627_v54  ;;  %2159 = vmatpush.msra.mxu3 %v5628_v61  ;;  %v2815_v61 = vld [vmem:[%s3346_s7 + $0x62] ss:$8 sm:$0xf] }
 0x76b   : > { %2100 = vmatpush.msra.mxu0 %v5629_v15  ;;  %2120 = vmatpush.msra.mxu1 %v5630_v8  ;;  %v2814_v15 = vld [vmem:[%s3346_s7 + $0x22] ss:$8 sm:$0xf] }
 0x76c   : > { %2140 = vmatpush.msra.mxu2 %v5631_v10  ;;  %2160 = vmatpush.msra.mxu3 %v5632_v18 }
 0x76d   : > { %2101 = vmatpush.msra.mxu0 %v5633_v2  ;;  %2121 = vmatpush.msra.mxu1 %v5634_v3  ;;  %v5643_v2 = vld [vmem:[#allocation25_spill] sm:$0xff]  ;;  %v5644_v3 = vld [vmem:[#allocation24_spill] sm:$0xff] }
 0x76e   : > { %2141 = vmatpush.msra.mxu2 %v5635_v1  ;;  %2161 = vmatpush.msra.mxu3 %v5636_v51  ;;  %v5645_v1 = vld [vmem:[#allocation37_spill] sm:$0xff]  ;;  %v5646_v51 = vld [vmem:[#allocation22_spill] sm:$0xff] }
 0x76f   : > { %2102 = vmatpush.msra.mxu0 %v5637_v57  ;;  %2122 = vmatpush.msra.mxu1 %v5638_v62  ;;  %v5647_v57 = vld [vmem:[#allocation36_spill] sm:$0xff]  ;;  %v5648_v62 = vld [vmem:[#allocation18_spill] sm:$0xff] }
 0x770   : > { %2142 = vmatpush.msra.mxu2 %v5639_v7  ;;  %2162 = vmatpush.msra.mxu3 %v5640_v53 }
 0x771   : > { %2103 = vmatpush.msra.mxu0 %v5641_v9  ;;  %2123 = vmatpush.msra.mxu1 %v5642_v59 }
 0x772   : > { %2143 = vmatpush.msra.mxu2 %v5643_v2  ;;  %2163 = vmatpush.msra.mxu3 %v5644_v3 }
 0x773   : > { %2104 = vmatpush.msra.mxu0 %v5645_v1  ;;  %2124 = vmatpush.msra.mxu1 %v5646_v51 }
 0x774   : > { %2144 = vmatpush.msra.mxu2 %v5647_v57  ;;  %2164 = vmatpush.msra.mxu3 %v5648_v62 }
 0x7d0   : > { %v1844_v7 = vpop.f32.mrf.mxu1  ;;  %v1824_v59 = vpop.f32.mrf.mxu0 }
 0x7d1   : > { %v1891_v53 = vrot.slane %v1844_v7, 7 }
 0x7d3   : > { %v1894_v2 = vsel %vm393_vm1, %v1824_v59, %v1891_v53  ;;  %v1897_v3 = vsel %vm399_vm2, %v1824_v59, %v1891_v53 }
 0x7d7   : > { %v1864_v18 = vpop.f32.mrf.mxu2  ;;  %v1884_v10 = vpop.f32.mrf.mxu3 }
 0x7d8   : > { %v1892_v9 = vrot.slane %v1864_v18, 6  ;;  %v1893_v8 = vrot.slane %v1884_v10, 5 }
 0x7da   : > { %v1895_v1 = vsel %vm395_vm3, %v1892_v9, %v1893_v8  ;;  %v1898_v51 = vsel %vm401_vm0, %v1892_v9, %v1893_v8 }
 0x7db   : > { %v1896_v57 = vsel %vm397_vm4, %v1894_v2, %v1895_v1  ;;  %v1899_v62 = vsel %vm403_vm5, %v1897_v3, %v1898_v51 }
 0x7dc   : > { %v1900_v7 = vrot.slane %v1899_v62, 1  ;;  %v1903_v54 = vadd.f32 %v2814_v15, %v1896_v57 }
 0x7de   : > { %v1904_v14 = vadd.f32 %v2815_v61, %v1900_v7  ;;  %v1905_v10 = vmul.f32 %v1903_v54, %v3694_v0 }
 0x7e0   : > { %v1906_v18 = vmul.f32 %v1904_v14, %v3696_v55  ;;  %2951 = vtanh.f32 %v1905_v10 }
 0x7e2   : > { %2953 = vtanh.f32 %v1906_v18 }
 0x7e6   : > { %v2952_v58 = vpop.eup %2951 }
 0x7e7   : > { %v1909_v59 = vmul.f32 %v2952_v58, %v3694_v0 }
 0x7e8   : > { %v2954_v53 = vpop.eup %2953 }
 0x7e9   : > { %v1910_v9 = vmul.f32 %v2954_v53, %v3696_v55  ;;  %v1911_v8 = vadd.f32 %v1909_v59, %v3704_v56 }
 0x7eb   : > { %v1912_v2 = vadd.f32 %v1910_v9, %v3707_v6  ;;  %v1915_v3 = vrot.slane %v1911_v8, 1  ;;  %v1921_v1 = vrot.slane %v1911_v8, 3  ;;  %v1931_v7 = vrot.slane %v1911_v8, 2  ;;  %v5651_v9 = vld [vmem:[#allocation32_spill] sm:$0xff] }
 0x7ed   : > { %v1916_v15 = vrot.slane %v1912_v2, 1  ;;  %v1919_v61 = vmul.f32 %v1915_v3, %v4815_v52  ;;  %v1922_v54 = vrot.slane %v1912_v2, 3  ;;  %v1925_v51 = vmul.f32 %v1921_v1, %v1911_v8  ;;  %v5652_v8 = vld [vmem:[#allocation33_spill] sm:$0xff]  ;;  %v5654_v3 = vld [vmem:[#allocation35_spill] sm:$0xff] }
 0x7ee   : > { %v1932_v18 = vrot.slane %v1912_v2, 2  ;;  %v5655_v1 = vld [vmem:[#allocation13_spill] sm:$0xff] }
 0x7ef   : > { %v1920_v14 = vmul.f32 %v1916_v15, %v4817_v38  ;;  %v1926_v57 = vmul.f32 %v1922_v54, %v1912_v2  ;;  %v4907_v62 = vadd.f32 %v1925_v51, %v1919_v61  ;;  %v5653_v2 = vld [vmem:[#allocation34_spill] sm:$0xff]  ;;  %v5656_v15 = vld [vmem:[#allocation12_spill] sm:$0xff]  ;;  %v5658_v54 = vld [vmem:[#allocation9_spill] sm:$0xff] }
 0x7f0   : > { %v5657_v61 = vld [vmem:[#allocation8_spill] sm:$0xff]  ;;  %v5659_v51 = vld [vmem:[#allocation17_spill] sm:$0xff] }
 0x7f1   : > { %v4909_v58 = vadd.f32 %v1926_v57, %v1920_v14  ;;  %2955 = vtanh.f32 %v4907_v62  ;;  %v5660_v14 = vld [vmem:[#allocation16_spill] sm:$0xff]  ;;  %v5661_v57 = vld [vmem:[#allocation10_spill] sm:$0xff] }
 0x7f3   : > { %2957 = vtanh.f32 %v4909_v58 }
 0x7f7   : > { %v2956_v10 = vpop.eup %2955 }
 0x7f8   : > { %v4913_v59 = vmul.f32 %v2956_v10, %v1931_v7  ;;  %v5662_v7 = vld [vmem:[#allocation11_spill] sm:$0xff]  ;;  %v5663_v10 = vld [vmem:[#allocation21_spill] sm:$0xff] }
 0x7f9   : > { %v2958_v53 = vpop.eup %2957 }
 0x7fa   : > { %5649 = vst [vmem:[#allocation38_spill] sm:$0xff] %v4913_v59  ;;  %v4915_v52 = vmul.f32 %v2958_v53, %v1932_v18  ;;  %v5664_v18 = vld [vmem:[#allocation20_spill] sm:$0xff]  ;;  %v5665_v53 = vld [vmem:[#allocation14_spill] sm:$0xff] }
 0x7fb   : > { %1943 = vst [vmem:[#allocation1] ss:$9 sm:$0xff] %v4913_v59  ;;  %v5668_v59 = vld [vmem:[#allocation27_spill] sm:$0xff] }
 0x7fc   : > { %5650 = vst [vmem:[#allocation39_spill] sm:$0xff] %v4915_v52 }
 0x7fd   : > { %1945 = vst [vmem:[#allocation1 + $0x1] ss:$9 sm:$0xff] %v4915_v52  ;;  %v5667_v52 = vld [vmem:[#allocation28_spill] sm:$0xff] }
 0x804   : > { %v1946_v38 = vld [vmem:[#allocation1] sm:$0xff] }
 0x805   : > { %1964 = vmatmul.f32.vlgmr.msrb.gmra.mxu0 %v1946_v38  ;;  %1984 = vmatmul.f32.vlgmr.msrb.gmra.mxu1 %v1946_v38 }
 0x806   : > { %2004 = vmatmul.f32.vlgmr.msrb.gmra.mxu2 %v1946_v38  ;;  %2024 = vmatmul.f32.vlgmr.msrb.gmra.mxu3 %v1946_v38  ;;  %v5666_v38 = vld [vmem:[#allocation15_spill] sm:$0xff] }
 0x807   : > { %2230 = vmatpush.msrb.mxu0 %v4515_v4  ;;  %2250 = vmatpush.msrb.mxu1 %v4518_v19 }
 0x808   : > { %2270 = vmatpush.msrb.mxu2 %v4521_v5  ;;  %2290 = vmatpush.msrb.mxu3 %v4524_v16 }
 0x809   : > { %2231 = vmatpush.msrb.mxu0 %v4527_v23  ;;  %2251 = vmatpush.msrb.mxu1 %v4530_v24 }
 0x80a   : > { %2271 = vmatpush.msrb.mxu2 %v4533_v37  ;;  %2291 = vmatpush.msrb.mxu3 %v4536_v17 }
 0x80b   : > { %2232 = vmatpush.msrb.mxu0 %v4539_v25  ;;  %2252 = vmatpush.msrb.mxu1 %v4542_v12 }
 0x80c   : > { %2272 = vmatpush.msrb.mxu2 %v4545_v63  ;;  %2292 = vmatpush.msrb.mxu3 %v4548_v33 }
 0x80d   : > { %2233 = vmatpush.msrb.mxu0 %v4551_v22  ;;  %2253 = vmatpush.msrb.mxu1 %v4554_v13 }
 0x80e   : > { %2273 = vmatpush.msrb.mxu2 %v4557_v20  ;;  %2293 = vmatpush.msrb.mxu3 %v4560_v21 }
 0x80f   : > { %2234 = vmatpush.msrb.mxu0 %v4563_v26  ;;  %2254 = vmatpush.msrb.mxu1 %v4566_v27 }
 0x810   : > { %2274 = vmatpush.msrb.mxu2 %v4569_v28  ;;  %2294 = vmatpush.msrb.mxu3 %v4572_v11 }
 0x811   : > { %2235 = vmatpush.msrb.mxu0 %v4575_v60  ;;  %2255 = vmatpush.msrb.mxu1 %v4578_v29 }
 0x812   : > { %2275 = vmatpush.msrb.mxu2 %v4581_v30  ;;  %2295 = vmatpush.msrb.mxu3 %v4584_v31 }
 0x813   : > { %2236 = vmatpush.msrb.mxu0 %v4587_v32  ;;  %2256 = vmatpush.msrb.mxu1 %v4590_v34 }
 0x814   : > { %2276 = vmatpush.msrb.mxu2 %v4593_v35  ;;  %2296 = vmatpush.msrb.mxu3 %v4596_v36 }
 0x815   : > { %2237 = vmatpush.msrb.mxu0 %v4599_v39  ;;  %2257 = vmatpush.msrb.mxu1 %v4602_v40 }
 0x816   : > { %2277 = vmatpush.msrb.mxu2 %v4605_v41  ;;  %2297 = vmatpush.msrb.mxu3 %v4608_v42 }
 0x817   : > { %2238 = vmatpush.msrb.mxu0 %v4611_v43  ;;  %2258 = vmatpush.msrb.mxu1 %v4614_v44 }
 0x818   : > { %2278 = vmatpush.msrb.mxu2 %v4617_v45  ;;  %2298 = vmatpush.msrb.mxu3 %v4620_v46 }
 0x819   : > { %2239 = vmatpush.msrb.mxu0 %v4623_v47  ;;  %2259 = vmatpush.msrb.mxu1 %v4626_v48 }
 0x81a   : > { %2279 = vmatpush.msrb.mxu2 %v4629_v49  ;;  %2299 = vmatpush.msrb.mxu3 %v4632_v50 }
 0x81b   : > { %2240 = vmatpush.msrb.mxu0 %v5651_v9  ;;  %2260 = vmatpush.msrb.mxu1 %v5652_v8 }
 0x81c   : > { %2280 = vmatpush.msrb.mxu2 %v5653_v2  ;;  %2300 = vmatpush.msrb.mxu3 %v5654_v3  ;;  %v2817_v3 = vld [vmem:[%s3346_s7 + $0x63] ss:$8 sm:$0xf] }
 0x81d   : > { %2241 = vmatpush.msrb.mxu0 %v5655_v1  ;;  %2261 = vmatpush.msrb.mxu1 %v5656_v15  ;;  %v2816_v1 = vld [vmem:[%s3346_s7 + $0x23] ss:$8 sm:$0xf] }
 0x81e   : > { %2281 = vmatpush.msrb.mxu2 %v5657_v61  ;;  %2301 = vmatpush.msrb.mxu3 %v5658_v54 }
 0x81f   : > { %2242 = vmatpush.msrb.mxu0 %v5659_v51  ;;  %2262 = vmatpush.msrb.mxu1 %v5660_v14  ;;  %v5669_v51 = vld [vmem:[#allocation25_spill] sm:$0xff]  ;;  %v5670_v14 = vld [vmem:[#allocation24_spill] sm:$0xff] }
 0x820   : > { %2282 = vmatpush.msrb.mxu2 %v5661_v57  ;;  %2302 = vmatpush.msrb.mxu3 %v5662_v7  ;;  %v5671_v57 = vld [vmem:[#allocation37_spill] sm:$0xff]  ;;  %v5672_v7 = vld [vmem:[#allocation22_spill] sm:$0xff] }
 0x821   : > { %2243 = vmatpush.msrb.mxu0 %v5663_v10  ;;  %2263 = vmatpush.msrb.mxu1 %v5664_v18  ;;  %v5673_v10 = vld [vmem:[#allocation36_spill] sm:$0xff]  ;;  %v5674_v18 = vld [vmem:[#allocation18_spill] sm:$0xff] }
 0x822   : > { %2283 = vmatpush.msrb.mxu2 %v5665_v53  ;;  %2303 = vmatpush.msrb.mxu3 %v5666_v38 }
 0x823   : > { %2244 = vmatpush.msrb.mxu0 %v5667_v52  ;;  %2264 = vmatpush.msrb.mxu1 %v5668_v59 }
 0x824   : > { %2284 = vmatpush.msrb.mxu2 %v5669_v51  ;;  %2304 = vmatpush.msrb.mxu3 %v5670_v14 }
 0x825   : > { %2245 = vmatpush.msrb.mxu0 %v5671_v57  ;;  %2265 = vmatpush.msrb.mxu1 %v5672_v7 }
 0x826   : > { %2285 = vmatpush.msrb.mxu2 %v5673_v10  ;;  %2305 = vmatpush.msrb.mxu3 %v5674_v18 }
 0x882   : > { %v1985_v53 = vpop.f32.mrf.mxu1  ;;  %v1965_v59 = vpop.f32.mrf.mxu0 }
 0x883   : > { %v2032_v38 = vrot.slane %v1985_v53, 7 }
 0x885   : > { %v2035_v51 = vsel %vm393_vm1, %v1965_v59, %v2032_v38  ;;  %v2038_v14 = vsel %vm399_vm2, %v1965_v59, %v2032_v38 }
 0x889   : > { %v2005_v54 = vpop.f32.mrf.mxu2  ;;  %v2025_v61 = vpop.f32.mrf.mxu3 }
 0x88a   : > { %v2033_v52 = vrot.slane %v2005_v54, 6  ;;  %v2034_v15 = vrot.slane %v2025_v61, 5 }
 0x88c   : > { %v2036_v57 = vsel %vm395_vm3, %v2033_v52, %v2034_v15  ;;  %v2039_v7 = vsel %vm401_vm0, %v2033_v52, %v2034_v15 }
 0x88d   : > { %v2037_v10 = vsel %vm397_vm4, %v2035_v51, %v2036_v57  ;;  %v2040_v18 = vsel %vm403_vm5, %v2038_v14, %v2039_v7 }
 0x88e   : > { %v2041_v53 = vrot.slane %v2040_v18, 1  ;;  %v2044_v2 = vadd.f32 %v2816_v1, %v2037_v10 }
 0x890   : > { %v2045_v8 = vadd.f32 %v2817_v3, %v2041_v53  ;;  %v2046_v61 = vmul.f32 %v2044_v2, %v3694_v0 }
 0x892   : > { %v2047_v54 = vmul.f32 %v2045_v8, %v3696_v55  ;;  %2959 = vtanh.f32 %v2046_v61 }
 0x894   : > { %2961 = vtanh.f32 %v2047_v54 }
 0x898   : > { %v2960_v9 = vpop.eup %2959 }
 0x899   : > { %v2050_v59 = vmul.f32 %v2960_v9, %v3694_v0 }
 0x89a   : > { %v2962_v38 = vpop.eup %2961 }
 0x89b   : > { %v2051_v52 = vmul.f32 %v2962_v38, %v3696_v55  ;;  %v2052_v15 = vadd.f32 %v2050_v59, %v3704_v56 }
 0x89d   : > { %v2053_v51 = vadd.f32 %v2051_v52, %v3707_v6  ;;  %v2056_v14 = vrot.slane %v2052_v15, 1  ;;  %v2062_v57 = vrot.slane %v2052_v15, 3  ;;  %v2072_v53 = vrot.slane %v2052_v15, 2 }
 0x89f   : > { %v2057_v1 = vrot.slane %v2053_v51, 1  ;;  %v2060_v3 = vmul.f32 %v2056_v14, %v4907_v62  ;;  %v2063_v2 = vrot.slane %v2053_v51, 3  ;;  %v2066_v7 = vmul.f32 %v2062_v57, %v2052_v15 }
 0x8a0   : > { %v2073_v54 = vrot.slane %v2053_v51, 2 }
 0x8a1   : > { %v2061_v8 = vmul.f32 %v2057_v1, %v4909_v58  ;;  %v2067_v10 = vmul.f32 %v2063_v2, %v2053_v51  ;;  %v4999_v18 = vadd.f32 %v2066_v7, %v2060_v3 }
 0x8a3   : > { %v5001_v9 = vadd.f32 %v2067_v10, %v2061_v8  ;;  %2963 = vtanh.f32 %v4999_v18 }
 0x8a5   : > { %2965 = vtanh.f32 %v5001_v9 }
 0x8a9   : > { %v2964_v61 = vpop.eup %2963 }
 0x8aa   : > { %v5005_v59 = vmul.f32 %v2964_v61, %v2072_v53 }
 0x8ab   : > { %v2966_v38 = vpop.eup %2965 }
 0x8ac   : > { %v5007_v62 = vmul.f32 %v2966_v38, %v2073_v54  ;;  %2084 = vst [vmem:[#allocation1] ss:$9 sm:$0xff] %v5005_v59 }
 0x8ae   : > { %2086 = vst [vmem:[#allocation1 + $0x1] ss:$9 sm:$0xff] %v5007_v62 }
 0x8b5   : > { %v2087_v58 = vld [vmem:[#allocation1] sm:$0xff] }
 0x8b6   : > { %2105 = vmatmul.f32.vlgmr.msra.gmra.mxu0 %v2087_v58  ;;  %2125 = vmatmul.f32.vlgmr.msra.gmra.mxu1 %v2087_v58 }
 0x8b7   : > { %2145 = vmatmul.f32.vlgmr.msra.gmra.mxu2 %v2087_v58  ;;  %2165 = vmatmul.f32.vlgmr.msra.gmra.mxu3 %v2087_v58 }
 0x8b8   : > { %2371 = vmatpush.msra.mxu0 %v4515_v4  ;;  %2391 = vmatpush.msra.mxu1 %v4518_v19  ;;  %v5675_v4 = vld [vmem:[#allocation32_spill] sm:$0xff]  ;;  %v5676_v19 = vld [vmem:[#allocation33_spill] sm:$0xff] }
 0x8b9   : > { %2411 = vmatpush.msra.mxu2 %v4521_v5  ;;  %2431 = vmatpush.msra.mxu3 %v4524_v16  ;;  %v5677_v5 = vld [vmem:[#allocation34_spill] sm:$0xff]  ;;  %v5678_v16 = vld [vmem:[#allocation35_spill] sm:$0xff] }
 0x8ba   : > { %2372 = vmatpush.msra.mxu0 %v4527_v23  ;;  %2392 = vmatpush.msra.mxu1 %v4530_v24  ;;  %v5679_v23 = vld [vmem:[#allocation13_spill] sm:$0xff]  ;;  %v5680_v24 = vld [vmem:[#allocation12_spill] sm:$0xff] }
 0x8bb   : > { %2412 = vmatpush.msra.mxu2 %v4533_v37  ;;  %2432 = vmatpush.msra.mxu3 %v4536_v17  ;;  %v5681_v37 = vld [vmem:[#allocation8_spill] sm:$0xff]  ;;  %v5682_v17 = vld [vmem:[#allocation9_spill] sm:$0xff] }
 0x8bc   : > { %2373 = vmatpush.msra.mxu0 %v4539_v25  ;;  %2393 = vmatpush.msra.mxu1 %v4542_v12  ;;  %v5683_v25 = vld [vmem:[#allocation17_spill] sm:$0xff]  ;;  %v5684_v12 = vld [vmem:[#allocation16_spill] sm:$0xff] }
 0x8bd   : > { %2413 = vmatpush.msra.mxu2 %v4545_v63  ;;  %2433 = vmatpush.msra.mxu3 %v4548_v33  ;;  %v5685_v63 = vld [vmem:[#allocation10_spill] sm:$0xff]  ;;  %v5686_v33 = vld [vmem:[#allocation11_spill] sm:$0xff] }
 0x8be   : > { %2374 = vmatpush.msra.mxu0 %v4551_v22  ;;  %2394 = vmatpush.msra.mxu1 %v4554_v13  ;;  %v5687_v22 = vld [vmem:[#allocation21_spill] sm:$0xff]  ;;  %v5688_v13 = vld [vmem:[#allocation20_spill] sm:$0xff] }
 0x8bf   : > { %2414 = vmatpush.msra.mxu2 %v4557_v20  ;;  %2434 = vmatpush.msra.mxu3 %v4560_v21  ;;  %v5689_v20 = vld [vmem:[#allocation14_spill] sm:$0xff]  ;;  %v5690_v21 = vld [vmem:[#allocation15_spill] sm:$0xff] }
 0x8c0   : > { %2375 = vmatpush.msra.mxu0 %v4563_v26  ;;  %2395 = vmatpush.msra.mxu1 %v4566_v27  ;;  %v5691_v26 = vld [vmem:[#allocation28_spill] sm:$0xff]  ;;  %v5692_v27 = vld [vmem:[#allocation27_spill] sm:$0xff] }
 0x8c1   : > { %2415 = vmatpush.msra.mxu2 %v4569_v28  ;;  %2435 = vmatpush.msra.mxu3 %v4572_v11  ;;  %v5693_v28 = vld [vmem:[#allocation25_spill] sm:$0xff]  ;;  %v5694_v11 = vld [vmem:[#allocation24_spill] sm:$0xff] }
 0x8c2   : > { %2376 = vmatpush.msra.mxu0 %v4575_v60  ;;  %2396 = vmatpush.msra.mxu1 %v4578_v29  ;;  %v5695_v60 = vld [vmem:[#allocation37_spill] sm:$0xff]  ;;  %v5696_v29 = vld [vmem:[#allocation22_spill] sm:$0xff] }
 0x8c3   : > { %2416 = vmatpush.msra.mxu2 %v4581_v30  ;;  %2436 = vmatpush.msra.mxu3 %v4584_v31  ;;  %v5697_v30 = vld [vmem:[#allocation36_spill] sm:$0xff]  ;;  %v5698_v31 = vld [vmem:[#allocation18_spill] sm:$0xff] }
 0x8c4   : > { %2377 = vmatpush.msra.mxu0 %v4587_v32  ;;  %2397 = vmatpush.msra.mxu1 %v4590_v34 }
 0x8c5   : > { %2417 = vmatpush.msra.mxu2 %v4593_v35  ;;  %2437 = vmatpush.msra.mxu3 %v4596_v36 }
 0x8c6   : > { %2378 = vmatpush.msra.mxu0 %v4599_v39  ;;  %2398 = vmatpush.msra.mxu1 %v4602_v40 }
 0x8c7   : > { %2418 = vmatpush.msra.mxu2 %v4605_v41  ;;  %2438 = vmatpush.msra.mxu3 %v4608_v42  ;;  %v2818_v42 = vld [vmem:[%s3346_s7 + $0x24] ss:$8 sm:$0xf] }
 0x8c8   : > { %2379 = vmatpush.msra.mxu0 %v4611_v43  ;;  %2399 = vmatpush.msra.mxu1 %v4614_v44 }
 0x8c9   : > { %2419 = vmatpush.msra.mxu2 %v4617_v45  ;;  %2439 = vmatpush.msra.mxu3 %v4620_v46 }
 0x8ca   : > { %2380 = vmatpush.msra.mxu0 %v4623_v47  ;;  %2400 = vmatpush.msra.mxu1 %v4626_v48  ;;  %v2819_v47 = vld [vmem:[%s3346_s7 + $0x64] ss:$8 sm:$0xf] }
 0x8cb   : > { %2420 = vmatpush.msra.mxu2 %v4629_v49  ;;  %2440 = vmatpush.msra.mxu3 %v4632_v50 }
 0x8cc   : > { %2381 = vmatpush.msra.mxu0 %v5675_v4  ;;  %2401 = vmatpush.msra.mxu1 %v5676_v19 }
 0x8cd   : > { %2421 = vmatpush.msra.mxu2 %v5677_v5  ;;  %2441 = vmatpush.msra.mxu3 %v5678_v16 }
 0x8ce   : > { %2382 = vmatpush.msra.mxu0 %v5679_v23  ;;  %2402 = vmatpush.msra.mxu1 %v5680_v24 }
 0x8cf   : > { %2422 = vmatpush.msra.mxu2 %v5681_v37  ;;  %2442 = vmatpush.msra.mxu3 %v5682_v17 }
 0x8d0   : > { %2383 = vmatpush.msra.mxu0 %v5683_v25  ;;  %2403 = vmatpush.msra.mxu1 %v5684_v12  ;;  %v3127_v12 = vld [vmem:[#allocation5 + $0x1e0] sm:$0xff] }
 0x8d1   : > { %2423 = vmatpush.msra.mxu2 %v5685_v63  ;;  %2443 = vmatpush.msra.mxu3 %v5686_v33  ;;  %v3128_v63 = vld [vmem:[#allocation5 + $0x1e8] sm:$0xff]  ;;  %v3129_v33 = vld [vmem:[#allocation5 + $0x1f0] sm:$0xff] }
 0x8d2   : > { %2384 = vmatpush.msra.mxu0 %v5687_v22  ;;  %2404 = vmatpush.msra.mxu1 %v5688_v13  ;;  %v3130_v22 = vld [vmem:[#allocation5 + $0x1f8] sm:$0xff]  ;;  %v3131_v13 = vld [vmem:[#allocation5 + $0x1c0] sm:$0xff] }
 0x8d3   : > { %2424 = vmatpush.msra.mxu2 %v5689_v20  ;;  %2444 = vmatpush.msra.mxu3 %v5690_v21  ;;  %v3132_v20 = vld [vmem:[#allocation5 + $0x1c8] sm:$0xff]  ;;  %v3133_v21 = vld [vmem:[#allocation5 + $0x1d0] sm:$0xff] }
 0x8d4   : > { %2385 = vmatpush.msra.mxu0 %v5691_v26  ;;  %2405 = vmatpush.msra.mxu1 %v5692_v27  ;;  %v3134_v27 = vld [vmem:[#allocation5 + $0x1d8] sm:$0xff] }
 0x8d5   : > { %2425 = vmatpush.msra.mxu2 %v5693_v28  ;;  %2445 = vmatpush.msra.mxu3 %v5694_v11  ;;  %v3135_v28 = vld [vmem:[#allocation5 + $0x1a0] sm:$0xff]  ;;  %v3136_v11 = vld [vmem:[#allocation5 + $0x1a8] sm:$0xff] }
 0x8d6   : > { %2386 = vmatpush.msra.mxu0 %v5695_v60  ;;  %2406 = vmatpush.msra.mxu1 %v5696_v29 }
 0x8d7   : > { %2426 = vmatpush.msra.mxu2 %v5697_v30  ;;  %2446 = vmatpush.msra.mxu3 %v5698_v31  ;;  %v3137_v30 = vld [vmem:[#allocation5 + $0x1b0] sm:$0xff]  ;;  %v3138_v31 = vld [vmem:[#allocation5 + $0x1b8] sm:$0xff] }
 0x933   : > { %v2126_v32 = vpop.f32.mrf.mxu1  ;;  %v2106_v41 = vpop.f32.mrf.mxu0 }
 0x934   : > { %v2173_v34 = vrot.slane %v2126_v32, 7  ;;  %v3139_v32 = vld [vmem:[#allocation5 + $0x180] sm:$0xff] }
 0x936   : > { %v2176_v43 = vsel %vm393_vm1, %v2106_v41, %v2173_v34  ;;  %v2179_v44 = vsel %vm399_vm2, %v2106_v41, %v2173_v34  ;;  %v3140_v34 = vld [vmem:[#allocation5 + $0x188] sm:$0xff]  ;;  %v3145_v41 = vld [vmem:[#allocation5 + $0x170] sm:$0xff] }
 0x93a   : > { %v2146_v35 = vpop.f32.mrf.mxu2  ;;  %v2166_v36 = vpop.f32.mrf.mxu3 }
 0x93b   : > { %v2174_v39 = vrot.slane %v2146_v35, 6  ;;  %v2175_v40 = vrot.slane %v2166_v36, 5  ;;  %v3141_v35 = vld [vmem:[#allocation5 + $0x190] sm:$0xff]  ;;  %v3142_v36 = vld [vmem:[#allocation5 + $0x198] sm:$0xff] }
 0x93d   : > { %v2177_v45 = vsel %vm395_vm3, %v2174_v39, %v2175_v40  ;;  %v2180_v46 = vsel %vm401_vm0, %v2174_v39, %v2175_v40  ;;  %v3143_v39 = vld [vmem:[#allocation5 + $0x160] sm:$0xff]  ;;  %v3144_v40 = vld [vmem:[#allocation5 + $0x168] sm:$0xff] }
 0x93e   : > { %v2178_v48 = vsel %vm397_vm4, %v2176_v43, %v2177_v45  ;;  %v2181_v49 = vsel %vm403_vm5, %v2179_v44, %v2180_v46  ;;  %v3147_v43 = vld [vmem:[#allocation5 + $0x140] sm:$0xff]  ;;  %v3148_v44 = vld [vmem:[#allocation5 + $0x148] sm:$0xff]  ;;  %v3149_v45 = vld [vmem:[#allocation5 + $0x150] sm:$0xff] }
 0x93f   : > { %v2182_v50 = vrot.slane %v2181_v49, 1  ;;  %v2185_v52 = vadd.f32 %v2818_v42, %v2178_v48  ;;  %v3146_v42 = vld [vmem:[#allocation5 + $0x178] sm:$0xff]  ;;  %v3152_v48 = vld [vmem:[#allocation5 + $0x128] sm:$0xff]  ;;  %v3153_v49 = vld [vmem:[#allocation5 + $0x130] sm:$0xff] }
 0x940   : > { %v3150_v46 = vld [vmem:[#allocation5 + $0x158] sm:$0xff] }
 0x941   : > { %v2186_v15 = vadd.f32 %v2819_v47, %v2182_v50  ;;  %v2187_v51 = vmul.f32 %v2185_v52, %v3694_v0  ;;  %v3151_v47 = vld [vmem:[#allocation5 + $0x120] sm:$0xff]  ;;  %v3154_v50 = vld [vmem:[#allocation5 + $0x138] sm:$0xff] }
 0x942   : > { %v3155_v52 = vld [vmem:[#allocation5 + $0x100] sm:$0xff] }
 0x943   : > { %v2188_v14 = vmul.f32 %v2186_v15, %v3696_v55  ;;  %2967 = vtanh.f32 %v2187_v51  ;;  %v3156_v15 = vld [vmem:[#allocation5 + $0x108] sm:$0xff]  ;;  %v3157_v51 = vld [vmem:[#allocation5 + $0x110] sm:$0xff] }
 0x945   : > { %2969 = vtanh.f32 %v2188_v14  ;;  %v3158_v14 = vld [vmem:[#allocation5 + $0x118] sm:$0xff] }
 0x949   : > { %v2968_v57 = vpop.eup %2967 }
 0x94a   : > { %v2191_v1 = vmul.f32 %v2968_v57, %v3694_v0  ;;  %v3159_v57 = vld [vmem:[#allocation5 + $0xe0] sm:$0xff] }
 0x94b   : > { %v2970_v3 = vpop.eup %2969 }
 0x94c   : > { %v2192_v2 = vmul.f32 %v2970_v3, %v3696_v55  ;;  %v2193_v7 = vadd.f32 %v2191_v1, %v3704_v56  ;;  %v3160_v1 = vld [vmem:[#allocation5 + $0xe8] sm:$0xff]  ;;  %v3161_v3 = vld [vmem:[#allocation5 + $0xf0] sm:$0xff] }
 0x94e   : > { %v2194_v8 = vadd.f32 %v2192_v2, %v3707_v6  ;;  %v2197_v10 = vrot.slane %v2193_v7, 1  ;;  %v2203_v53 = vrot.slane %v2193_v7, 3  ;;  %v2213_v23 = vrot.slane %v2193_v7, 2  ;;  %v3162_v2 = vld [vmem:[#allocation5 + $0xf8] sm:$0xff] }
 0x950   : > { %v2198_v61 = vrot.slane %v2194_v8, 1  ;;  %v2201_v54 = vmul.f32 %v2197_v10, %v4999_v18  ;;  %v2204_v38 = vrot.slane %v2194_v8, 3  ;;  %v2207_v58 = vmul.f32 %v2203_v53, %v2193_v7  ;;  %v3163_v7 = vld [vmem:[#allocation5 + $0xc0] sm:$0xff]  ;;  %v3165_v10 = vld [vmem:[#allocation5 + $0xd0] sm:$0xff]  ;;  %v3166_v53 = vld [vmem:[#allocation5 + $0xd8] sm:$0xff] }
 0x951   : > { %v2214_v37 = vrot.slane %v2194_v8, 2 }
 0x952   : > { %v2202_v4 = vmul.f32 %v2198_v61, %v5001_v9  ;;  %v2208_v19 = vmul.f32 %v2204_v38, %v2194_v8  ;;  %v5091_v5 = vadd.f32 %v2207_v58, %v2201_v54  ;;  %v3164_v8 = vld [vmem:[#allocation5 + $0xc8] sm:$0xff]  ;;  %v3167_v61 = vld [vmem:[#allocation5 + $0xa0] sm:$0xff]  ;;  %v3169_v38 = vld [vmem:[#allocation5 + $0xb0] sm:$0xff] }
 0x953   : > { %v3168_v54 = vld [vmem:[#allocation5 + $0xa8] sm:$0xff]  ;;  %v3170_v58 = vld [vmem:[#allocation5 + $0xb8] sm:$0xff] }
 0x954   : > { %v5093_v16 = vadd.f32 %v2208_v19, %v2202_v4  ;;  %2971 = vtanh.f32 %v5091_v5  ;;  %v3171_v4 = vld [vmem:[#allocation5 + $0x80] sm:$0xff]  ;;  %v3172_v19 = vld [vmem:[#allocation5 + $0x88] sm:$0xff] }
 0x956   : > { %2973 = vtanh.f32 %v5093_v16 }
 0x95a   : > { %v2972_v24 = vpop.eup %2971 }
 0x95b   : > { %v5097_v17 = vmul.f32 %v2972_v24, %v2213_v23  ;;  %v3173_v23 = vld [vmem:[#allocation5 + $0x90] sm:$0xff]  ;;  %v3174_v24 = vld [vmem:[#allocation5 + $0x98] sm:$0xff] }
 0x95c   : > { %v2974_v25 = vpop.eup %2973 }
 0x95d   : > { %v5099_v18 = vmul.f32 %v2974_v25, %v2214_v37  ;;  %2225 = vst [vmem:[#allocation1] ss:$9 sm:$0xff] %v5097_v17  ;;  %v3175_v37 = vld [vmem:[#allocation5 + $0x60] sm:$0xff]  ;;  %v3176_v25 = vld [vmem:[#allocation5 + $0x68] sm:$0xff] }
 0x95f   : > { %2227 = vst [vmem:[#allocation1 + $0x1] ss:$9 sm:$0xff] %v5099_v18 }
 0x966   : > { %v2228_v9 = vld [vmem:[#allocation1] sm:$0xff] }
 0x967   : > { %2246 = vmatmul.f32.vlgmr.msrb.gmra.mxu0 %v2228_v9  ;;  %2266 = vmatmul.f32.vlgmr.msrb.gmra.mxu1 %v2228_v9 }
 0x968   : > { %2286 = vmatmul.f32.vlgmr.msrb.gmra.mxu2 %v2228_v9  ;;  %2306 = vmatmul.f32.vlgmr.msrb.gmra.mxu3 %v2228_v9  ;;  %v3177_v9 = vld [vmem:[#allocation5 + $0x70] sm:$0xff] }
 0x969   : > { %2512 = vmatpush.msrb.mxu0 %v3127_v12  ;;  %2532 = vmatpush.msrb.mxu1 %v3128_v63  ;;  %v3178_v12 = vld [vmem:[#allocation5 + $0x78] sm:$0xff]  ;;  %v3179_v63 = vld [vmem:[#allocation5 + $0x40] sm:$0xff] }
 0x96a   : > { %2552 = vmatpush.msrb.mxu2 %v3129_v33  ;;  %2572 = vmatpush.msrb.mxu3 %v3130_v22  ;;  %v3180_v33 = vld [vmem:[#allocation5 + $0x48] sm:$0xff]  ;;  %v3181_v22 = vld [vmem:[#allocation5 + $0x50] sm:$0xff] }
 0x96b   : > { %2513 = vmatpush.msrb.mxu0 %v3131_v13  ;;  %2533 = vmatpush.msrb.mxu1 %v3132_v20  ;;  %v3182_v13 = vld [vmem:[#allocation5 + $0x58] sm:$0xff]  ;;  %v3183_v20 = vld [vmem:[#allocation5 + $0x28] sm:$0xff] }
 0x96c   : > { %2553 = vmatpush.msrb.mxu2 %v3133_v21  ;;  %2573 = vmatpush.msrb.mxu3 %v3134_v27  ;;  %v3184_v21 = vld [vmem:[#allocation5 + $0x30] sm:$0xff]  ;;  %v3185_v27 = vld [vmem:[#allocation5 + $0x38] sm:$0xff] }
 0x96d   : > { %2514 = vmatpush.msrb.mxu0 %v3135_v28  ;;  %2534 = vmatpush.msrb.mxu1 %v3136_v11  ;;  %v3186_v28 = vld [vmem:[#allocation5 + $0x10] sm:$0xff]  ;;  %v3187_v11 = vld [vmem:[#allocation5 + $0x18] sm:$0xff] }
 0x96e   : > { %2554 = vmatpush.msrb.mxu2 %v3137_v30  ;;  %2574 = vmatpush.msrb.mxu3 %v3138_v31 }
 0x96f   : > { %2515 = vmatpush.msrb.mxu0 %v3139_v32  ;;  %2535 = vmatpush.msrb.mxu1 %v3140_v34 }
 0x970   : > { %2555 = vmatpush.msrb.mxu2 %v3141_v35  ;;  %2575 = vmatpush.msrb.mxu3 %v3142_v36 }
 0x971   : > { %2516 = vmatpush.msrb.mxu0 %v3143_v39  ;;  %2536 = vmatpush.msrb.mxu1 %v3144_v40  ;;  %v2820_v39 = vld [vmem:[%s3346_s7 + $0x25] ss:$8 sm:$0xf] }
 0x972   : > { %2556 = vmatpush.msrb.mxu2 %v3145_v41  ;;  %2576 = vmatpush.msrb.mxu3 %v3146_v42  ;;  %v2821_v42 = vld [vmem:[%s3346_s7 + $0x65] ss:$8 sm:$0xf] }
 0x973   : > { %2517 = vmatpush.msrb.mxu0 %v3147_v43  ;;  %2537 = vmatpush.msrb.mxu1 %v3148_v44 }
 0x974   : > { %2557 = vmatpush.msrb.mxu2 %v3149_v45  ;;  %2577 = vmatpush.msrb.mxu3 %v3150_v46 }
 0x975   : > { %2518 = vmatpush.msrb.mxu0 %v3151_v47  ;;  %2538 = vmatpush.msrb.mxu1 %v3152_v48 }
 0x976   : > { %2558 = vmatpush.msrb.mxu2 %v3153_v49  ;;  %2578 = vmatpush.msrb.mxu3 %v3154_v50 }
 0x977   : > { %2519 = vmatpush.msrb.mxu0 %v3155_v52  ;;  %2539 = vmatpush.msrb.mxu1 %v3156_v15 }
 0x978   : > { %2559 = vmatpush.msrb.mxu2 %v3157_v51  ;;  %2579 = vmatpush.msrb.mxu3 %v3158_v14 }
 0x979   : > { %2520 = vmatpush.msrb.mxu0 %v3159_v57  ;;  %2540 = vmatpush.msrb.mxu1 %v3160_v1 }
 0x97a   : > { %2560 = vmatpush.msrb.mxu2 %v3161_v3  ;;  %2580 = vmatpush.msrb.mxu3 %v3162_v2 }
 0x97b   : > { %2521 = vmatpush.msrb.mxu0 %v3163_v7  ;;  %2541 = vmatpush.msrb.mxu1 %v3164_v8 }
 0x97c   : > { %2561 = vmatpush.msrb.mxu2 %v3165_v10  ;;  %2581 = vmatpush.msrb.mxu3 %v3166_v53 }
 0x97d   : > { %2522 = vmatpush.msrb.mxu0 %v3167_v61  ;;  %2542 = vmatpush.msrb.mxu1 %v3168_v54 }
 0x97e   : > { %2562 = vmatpush.msrb.mxu2 %v3169_v38  ;;  %2582 = vmatpush.msrb.mxu3 %v3170_v58 }
 0x97f   : > { %2523 = vmatpush.msrb.mxu0 %v3171_v4  ;;  %2543 = vmatpush.msrb.mxu1 %v3172_v19 }
 0x980   : > { %2563 = vmatpush.msrb.mxu2 %v3173_v23  ;;  %2583 = vmatpush.msrb.mxu3 %v3174_v24 }
 0x981   : > { %2524 = vmatpush.msrb.mxu0 %v3175_v37  ;;  %2544 = vmatpush.msrb.mxu1 %v3176_v25 }
 0x982   : > { %2564 = vmatpush.msrb.mxu2 %v3177_v9  ;;  %2584 = vmatpush.msrb.mxu3 %v3178_v12 }
 0x983   : > { %2525 = vmatpush.msrb.mxu0 %v3179_v63  ;;  %2545 = vmatpush.msrb.mxu1 %v3180_v33 }
 0x984   : > { %2565 = vmatpush.msrb.mxu2 %v3181_v22  ;;  %2585 = vmatpush.msrb.mxu3 %v3182_v13  ;;  %v2822_v13 = vld [vmem:[%s3346_s7 + $0x26] ss:$8 sm:$0xf] }
 0x985   : > { %2526 = vmatpush.msrb.mxu0 %v5691_v26  ;;  %2546 = vmatpush.msrb.mxu1 %v3183_v20 }
 0x986   : > { %2566 = vmatpush.msrb.mxu2 %v3184_v21  ;;  %2586 = vmatpush.msrb.mxu3 %v3185_v27 }
 0x987   : > { %2527 = vmatpush.msrb.mxu0 %v5695_v60  ;;  %2547 = vmatpush.msrb.mxu1 %v5696_v29 }
 0x988   : > { %2567 = vmatpush.msrb.mxu2 %v3186_v28  ;;  %2587 = vmatpush.msrb.mxu3 %v3187_v11  ;;  %v2823_v11 = vld [vmem:[%s3346_s7 + $0x66] ss:$8 sm:$0xf] }
 0x9e4   : > { %v2267_v30 = vpop.f32.mrf.mxu1  ;;  %v2247_v36 = vpop.f32.mrf.mxu0 }
 0x9e5   : > { %v2314_v31 = vrot.slane %v2267_v30, 7 }
 0x9e7   : > { %v2317_v40 = vsel %vm393_vm1, %v2247_v36, %v2314_v31  ;;  %v2320_v41 = vsel %vm399_vm2, %v2247_v36, %v2314_v31 }
 0x9eb   : > { %v2287_v32 = vpop.f32.mrf.mxu2  ;;  %v2307_v26 = vpop.f32.mrf.mxu3 }
 0x9ec   : > { %v2315_v34 = vrot.slane %v2287_v32, 6  ;;  %v2316_v35 = vrot.slane %v2307_v26, 5 }
 0x9ee   : > { %v2318_v60 = vsel %vm395_vm3, %v2315_v34, %v2316_v35  ;;  %v2321_v29 = vsel %vm401_vm0, %v2315_v34, %v2316_v35 }
 0x9ef   : > { %v2319_v43 = vsel %vm397_vm4, %v2317_v40, %v2318_v60  ;;  %v2322_v44 = vsel %vm403_vm5, %v2320_v41, %v2321_v29 }
 0x9f0   : > { %v2323_v45 = vrot.slane %v2322_v44, 1  ;;  %v2326_v46 = vadd.f32 %v2820_v39, %v2319_v43 }
 0x9f2   : > { %v2327_v47 = vadd.f32 %v2821_v42, %v2323_v45  ;;  %v2328_v48 = vmul.f32 %v2326_v46, %v3694_v0 }
 0x9f4   : > { %v2329_v49 = vmul.f32 %v2327_v47, %v3696_v55  ;;  %2975 = vtanh.f32 %v2328_v48 }
 0x9f6   : > { %2977 = vtanh.f32 %v2329_v49 }
 0x9fa   : > { %v2976_v50 = vpop.eup %2975 }
 0x9fb   : > { %v2332_v52 = vmul.f32 %v2976_v50, %v3694_v0 }
 0x9fc   : > { %v2978_v15 = vpop.eup %2977 }
 0x9fd   : > { %v2333_v51 = vmul.f32 %v2978_v15, %v3696_v55  ;;  %v2334_v14 = vadd.f32 %v2332_v52, %v3704_v56 }
 0x9ff   : > { %v2335_v57 = vadd.f32 %v2333_v51, %v3707_v6  ;;  %v2338_v1 = vrot.slane %v2334_v14, 1  ;;  %v2344_v3 = vrot.slane %v2334_v14, 3  ;;  %v2354_v58 = vrot.slane %v2334_v14, 2 }
 0xa01   : > { %v2339_v2 = vrot.slane %v2335_v57, 1  ;;  %v2342_v7 = vmul.f32 %v2338_v1, %v5091_v5  ;;  %v2345_v8 = vrot.slane %v2335_v57, 3  ;;  %v2348_v10 = vmul.f32 %v2344_v3, %v2334_v14 }
 0xa02   : > { %v2355_v19 = vrot.slane %v2335_v57, 2 }
 0xa03   : > { %v2343_v53 = vmul.f32 %v2339_v2, %v5093_v16  ;;  %v2349_v61 = vmul.f32 %v2345_v8, %v2335_v57  ;;  %v2350_v54 = vadd.f32 %v2348_v10, %v2342_v7  ;;  %v5699_v8 = vld [vmem:[#allocation19_spill] sm:$0xff]  ;;  %v5700_v10 = vld [vmem:[#allocation29_spill] sm:$0xff] }
 0xa05   : > { %v2351_v38 = vadd.f32 %v2349_v61, %v2343_v53  ;;  %2979 = vtanh.f32 %v2350_v54  ;;  %v5701_v61 = vld [vmem:[#allocation23_spill] sm:$0xff] }
 0xa07   : > { %2981 = vtanh.f32 %v2351_v38 }
 0xa0b   : > { %v2980_v4 = vpop.eup %2979 }
 0xa0c   : > { %v5122_v23 = vmul.f32 %v2980_v4, %v2354_v58  ;;  %v5703_v58 = vld [vmem:[#allocation38_spill] sm:$0xff]  ;;  %v5704_v4 = vld [vmem:[#allocation39_spill] sm:$0xff] }
 0xa0d   : > { %v2982_v24 = vpop.eup %2981 }
 0xa0e   : > { %v5124_v37 = vmul.f32 %v2982_v24, %v2355_v19  ;;  %2366 = vst [vmem:[#allocation1] ss:$9 sm:$0xff] %v5122_v23 }
 0xa10   : > { %2368 = vst [vmem:[#allocation1 + $0x1] ss:$9 sm:$0xff] %v5124_v37 }
 0xa17   : > { %v2369_v5 = vld [vmem:[#allocation1] sm:$0xff] }
 0xa18   : > { %2387 = vmatmul.f32.vlgmr.msra.gmra.mxu0 %v2369_v5  ;;  %2407 = vmatmul.f32.vlgmr.msra.gmra.mxu1 %v2369_v5 }
 0xa19   : > { %2427 = vmatmul.f32.vlgmr.msra.gmra.mxu2 %v2369_v5  ;;  %2447 = vmatmul.f32.vlgmr.msra.gmra.mxu3 %v2369_v5 }
 0xa95   : > { %v2408_v16 = vpop.f32.mrf.mxu1  ;;  %v2388_v22 = vpop.f32.mrf.mxu0 }
 0xa96   : > { %v2455_v25 = vrot.slane %v2408_v16, 7 }
 0xa98   : > { %v2458_v20 = vsel %vm393_vm1, %v2388_v22, %v2455_v25  ;;  %v2461_v21 = vsel %vm399_vm2, %v2388_v22, %v2455_v25 }
 0xa9c   : > { %v2428_v9 = vpop.f32.mrf.mxu2  ;;  %v2448_v12 = vpop.f32.mrf.mxu3 }
 0xa9d   : > { %v2456_v63 = vrot.slane %v2428_v9, 6  ;;  %v2457_v33 = vrot.slane %v2448_v12, 5 }
 0xa9f   : > { %v2459_v27 = vsel %vm395_vm3, %v2456_v63, %v2457_v33  ;;  %v2462_v28 = vsel %vm401_vm0, %v2456_v63, %v2457_v33 }
 0xaa0   : > { %v2460_v30 = vsel %vm397_vm4, %v2458_v20, %v2459_v27  ;;  %v2463_v31 = vsel %vm403_vm5, %v2461_v21, %v2462_v28  ;;  %v2824_v27 = vld [vmem:[%s3346_s7 + $0x27] ss:$8 sm:$0xf] }
 0xaa1   : > { %v2464_v32 = vrot.slane %v2463_v31, 1  ;;  %v2467_v26 = vadd.f32 %v2822_v13, %v2460_v30  ;;  %v2825_v30 = vld [vmem:[%s3346_s7 + $0x67] ss:$8 sm:$0xf] }
 0xaa3   : > { %v2468_v34 = vadd.f32 %v2823_v11, %v2464_v32  ;;  %v2469_v35 = vmul.f32 %v2467_v26, %v3694_v0 }
 0xaa5   : > { %v2470_v36 = vmul.f32 %v2468_v34, %v3696_v55  ;;  %2983 = vtanh.f32 %v2469_v35 }
 0xaa7   : > { %2985 = vtanh.f32 %v2470_v36 }
 0xaab   : > { %v2984_v39 = vpop.eup %2983 }
 0xaac   : > { %v2473_v40 = vmul.f32 %v2984_v39, %v3694_v0 }
 0xaad   : > { %v2986_v41 = vpop.eup %2985 }
 0xaae   : > { %v2474_v60 = vmul.f32 %v2986_v41, %v3696_v55  ;;  %v2475_v29 = vadd.f32 %v2473_v40, %v3704_v56 }
 0xab0   : > { %v2476_v42 = vadd.f32 %v2474_v60, %v3707_v6  ;;  %v2479_v43 = vrot.slane %v2475_v29, 1  ;;  %v2485_v44 = vrot.slane %v2475_v29, 3  ;;  %v2495_v51 = vrot.slane %v2475_v29, 2 }
 0xab2   : > { %v2480_v45 = vrot.slane %v2476_v42, 1  ;;  %v2483_v46 = vmul.f32 %v2479_v43, %v2350_v54  ;;  %v2486_v47 = vrot.slane %v2476_v42, 3  ;;  %v2489_v48 = vmul.f32 %v2485_v44, %v2475_v29  ;;  %v5702_v54 = vld [vmem:[#allocation31_spill] sm:$0xff] }
 0xab3   : > { %v2496_v57 = vrot.slane %v2476_v42, 2 }
 0xab4   : > { %v2484_v49 = vmul.f32 %v2480_v45, %v2351_v38  ;;  %v2490_v50 = vmul.f32 %v2486_v47, %v2476_v42  ;;  %v5142_v52 = vadd.f32 %v2489_v48, %v2483_v46 }
 0xab6   : > { %v5144_v15 = vadd.f32 %v2490_v50, %v2484_v49  ;;  %2987 = vtanh.f32 %v5142_v52 }
 0xab8   : > { %2989 = vtanh.f32 %v5144_v15 }
 0xabc   : > { %v2988_v14 = vpop.eup %2987 }
 0xabd   : > { %v2499_v1 = vmul.f32 %v2988_v14, %v2495_v51 }
 0xabe   : > { %v2990_v3 = vpop.eup %2989 }
 0xabf   : > { %v2500_v2 = vmul.f32 %v2990_v3, %v2496_v57  ;;  %2507 = vst [vmem:[#allocation1] ss:$9 sm:$0xff] %v2499_v1 }
 0xac1   : > { %2509 = vst [vmem:[#allocation1 + $0x1] ss:$9 sm:$0xff] %v2500_v2 }
 0xac8   : > { %v2510_v7 = vld [vmem:[#allocation1] sm:$0xff] }
 0xac9   : > { %2528 = vmatmul.f32.vlgmr.msrb.gmra.mxu0 %v2510_v7  ;;  %2642 = vst [vmem:[#allocation1] ss:$9 sm:$0xff] %v5699_v8  ;;  %2548 = vmatmul.f32.vlgmr.msrb.gmra.mxu1 %v2510_v7 }
 0xaca   : > { %2644 = vst [vmem:[#allocation1 + $0x1] ss:$9 sm:$0xff] %v5700_v10  ;;  %2568 = vmatmul.f32.vlgmr.msrb.gmra.mxu2 %v2510_v7  ;;  %2588 = vmatmul.f32.vlgmr.msrb.gmra.mxu3 %v2510_v7 }
 0xad1   : > { %v2645_v53 = vld [vmem:[#allocation1] sm:$0xff] }
 0xad2   : > { %2646 = vst [vmem:[#allocation1] ss:$9 sm:$0xff] %v5701_v61 }
 0xad3   : > { %2648 = vst [vmem:[#allocation1 + $0x1] ss:$9 sm:$0xff] %v5702_v54 }
 0xada   : > { %v2649_v38 = vld [vmem:[#allocation1] sm:$0xff] }
 0xadb   : > { %2650 = vst [vmem:[#allocation1] ss:$9 sm:$0xff] %v5703_v58  ;;  %v2676_v24 = vrot.slane %v2649_v38, 6 }
 0xadc   : > { %2652 = vst [vmem:[#allocation1 + $0x1] ss:$9 sm:$0xff] %v5704_v4 }
 0xadd   : > { %v2682_v9 = vsel %vm397_vm4, %v2645_v53, %v2676_v24 }
 0xae3   : > { %v2653_v19 = vld [vmem:[#allocation1] sm:$0xff] }
 0xae4   : > { %2654 = vst [vmem:[#allocation1] ss:$9 sm:$0xff] %v5005_v59  ;;  %v2677_v16 = vrot.slane %v2653_v19, 4 }
 0xae5   : > { %2656 = vst [vmem:[#allocation1 + $0x1] ss:$9 sm:$0xff] %v5007_v62 }
 0xaec   : > { %v2657_v5 = vld [vmem:[#allocation1] sm:$0xff] }
 0xaed   : > { %2658 = vst [vmem:[#allocation1] ss:$9 sm:$0xff] %v5097_v17  ;;  %v2678_v25 = vrot.slane %v2657_v5, 2 }
 0xaee   : > { %2660 = vst [vmem:[#allocation1 + $0x1] ss:$9 sm:$0xff] %v5099_v18 }
 0xaef   : > { %v2683_v12 = vsel %vm1505_vm6, %v2677_v16, %v2678_v25 }
 0xaf0   : > { %v2684_v63 = vsel %vm1507_vm7, %v2682_v9, %v2683_v12 }
 0xaf1   : > { %2690 = vst [vmem:[%s3356_s17 + $0x10] sm:$0xff] %v2684_v63 }
 0xaf5   : > { %v2661_v33 = vld [vmem:[#allocation1] sm:$0xff] }
 0xaf6   : > { %2662 = vst [vmem:[#allocation1] ss:$9 sm:$0xff] %v5122_v23 }
 0xaf7   : > { %2664 = vst [vmem:[#allocation1 + $0x1] ss:$9 sm:$0xff] %v5124_v37 }
 0xafe   : > { %v2665_v59 = vld [vmem:[#allocation1] sm:$0xff] }
 0xaff   : > { %2666 = vst [vmem:[#allocation1] ss:$9 sm:$0xff] %v2499_v1 }
 0xb00   : > { %2668 = vst [vmem:[#allocation1 + $0x1] ss:$9 sm:$0xff] %v2500_v2 }
 0xb07   : > { %v2669_v3 = vld [vmem:[#allocation1] sm:$0xff] }
 0xb08   : > { %v2680_v8 = vrot.slane %v2669_v3, 4 }
 0xb46   : > { %v2549_v62 = vpop.f32.mrf.mxu1  ;;  %v2529_v21 = vpop.f32.mrf.mxu0 }
 0xb47   : > { %v2596_v17 = vrot.slane %v2549_v62, 7 }
 0xb49   : > { %v2599_v28 = vsel %vm393_vm1, %v2529_v21, %v2596_v17  ;;  %v2602_v11 = vsel %vm399_vm2, %v2529_v21, %v2596_v17 }
 0xb4d   : > { %v2569_v18 = vpop.f32.mrf.mxu2  ;;  %v2589_v22 = vpop.f32.mrf.mxu3 }
 0xb4e   : > { %v2597_v13 = vrot.slane %v2569_v18, 6  ;;  %v2598_v20 = vrot.slane %v2589_v22, 5 }
 0xb50   : > { %v2600_v23 = vsel %vm395_vm3, %v2597_v13, %v2598_v20  ;;  %v2603_v37 = vsel %vm401_vm0, %v2597_v13, %v2598_v20 }
 0xb51   : > { %v2601_v31 = vsel %vm397_vm4, %v2599_v28, %v2600_v23  ;;  %v2604_v32 = vsel %vm403_vm5, %v2602_v11, %v2603_v37 }
 0xb52   : > { %v2605_v26 = vrot.slane %v2604_v32, 1  ;;  %v2608_v34 = vadd.f32 %v2824_v27, %v2601_v31 }
 0xb54   : > { %v2609_v35 = vadd.f32 %v2825_v30, %v2605_v26  ;;  %v2610_v36 = vmul.f32 %v2608_v34, %v3694_v0 }
 0xb56   : > { %v2611_v39 = vmul.f32 %v2609_v35, %v3696_v55  ;;  %2991 = vtanh.f32 %v2610_v36 }
 0xb58   : > { %2993 = vtanh.f32 %v2611_v39 }
 0xb5c   : > { %v2992_v40 = vpop.eup %2991 }
 0xb5d   : > { %v2614_v41 = vmul.f32 %v2992_v40, %v3694_v0 }
 0xb5e   : > { %v2994_v60 = vpop.eup %2993 }
 0xb5f   : > { %v2615_v29 = vmul.f32 %v2994_v60, %v3696_v55  ;;  %v2616_v42 = vadd.f32 %v2614_v41, %v3704_v56 }
 0xb61   : > { %v2617_v43 = vadd.f32 %v2615_v29, %v3707_v6  ;;  %v2620_v44 = vrot.slane %v2616_v42, 1  ;;  %v2626_v45 = vrot.slane %v2616_v42, 3  ;;  %v2636_v0 = vrot.slane %v2616_v42, 2 }
 0xb63   : > { %v2621_v46 = vrot.slane %v2617_v43, 1  ;;  %v2624_v47 = vmul.f32 %v2620_v44, %v5142_v52  ;;  %v2627_v48 = vrot.slane %v2617_v43, 3  ;;  %v2630_v49 = vmul.f32 %v2626_v45, %v2616_v42 }
 0xb64   : > { %v2637_v1 = vrot.slane %v2617_v43, 2  ;;  %v2679_v52 = vrot.slane %v2665_v59, 6 }
 0xb65   : > { %v2625_v50 = vmul.f32 %v2621_v46, %v5144_v15  ;;  %v2631_v51 = vmul.f32 %v2627_v48, %v2617_v43  ;;  %v2632_v14 = vadd.f32 %v2630_v49, %v2624_v47 }
 0xb66   : > { %v2685_v15 = vsel %vm397_vm4, %v2661_v33, %v2679_v52 }
 0xb67   : > { %v2633_v57 = vadd.f32 %v2631_v51, %v2625_v50  ;;  %2995 = vtanh.f32 %v2632_v14 }
 0xb69   : > { %2997 = vtanh.f32 %v2633_v57 }
 0xb6d   : > { %v2996_v55 = vpop.eup %2995 }
 0xb6e   : > { %v2640_v56 = vmul.f32 %v2996_v55, %v2636_v0 }
 0xb6f   : > { %v2998_v6 = vpop.eup %2997 }
 0xb70   : > { %v2641_v2 = vmul.f32 %v2998_v6, %v2637_v1  ;;  %2672 = vst [vmem:[#allocation1] ss:$9 sm:$0xff] %v2640_v56 }
 0xb72   : > { %2674 = vst [vmem:[#allocation1 + $0x1] ss:$9 sm:$0xff] %v2641_v2 }
 0xb79   : > { %v2675_v7 = vld [vmem:[#allocation1] sm:$0xff] }
 0xb7a   : > { %v2681_v10 = vrot.slane %v2675_v7, 2  ;;  %2692 = vst [vmem:[#allocation1] ss:$9 sm:$0xff] %v2640_v56 }
 0xb7b   : > { %2694 = vst [vmem:[#allocation1 + $0x1] ss:$9 sm:$0xff] %v2641_v2 }
 0xb7c   : > { %v2686_v53 = vsel %vm1505_vm6, %v2680_v8, %v2681_v10 }
 0xb7d   : > { %v2687_v61 = vsel %vm1507_vm7, %v2685_v15, %v2686_v53 }
 0xb7e   : > { %2691 = vst [vmem:[%s3356_s17 + $0x18] sm:$0xff] %v2687_v61 }
 0xb82   : > { %v2695_v54 = vld [vmem:[#allocation1] sm:$0xff] }
 0xb83   : > { %2697 = vst [vmem:[#allocation2] sm:$0x3] %v2695_v54 }
 0xb84   : > { %2700 = vst [vmem:[#allocation1] ss:$9 sm:$0xff] %v2632_v14 }
 0xb85   : > { %2702 = vst [vmem:[#allocation1 + $0x1] ss:$9 sm:$0xff] %v2633_v57 }
 0xb8c   : > { %v2703_v38 = vld [vmem:[#allocation1] sm:$0xff] }
 0xb8d   : > { %2705 = vst [vmem:[#allocation3] sm:$0x3] %v2703_v38 }
 0xb8e PF: > { %p10_p13 = scmp.ge.s32.totalorder %s3287_s13, 4   ;;  %s5705_s9 = smov %s3240_s10 }
 0xb8f   : > { %s5706_s10 = smov %s3297_s16  ;;  %s5707_s11 = smov %s3287_s13 }
 0xb90   :  { %12 = sbr.rel (!%p10_p13) target bundleno = 2 (0x2), region = 159 }
 0xb95   :  { %2728 = vsyncpa [#allocation6], 1 }
 0xb96   :  { %2730 = vsyncpa [#allocation6 + $0x1], 1 }

</bundles_post_ra>
